<compile_context>
chip_gen: v7x
topology: tpu7x:2x2x1
jax: 0.10.0
libtpu: 0.0.40
codegen_flags: <defaults>
</compile_context>

<pallas_src>
import numpy as np

import jax
import jax.numpy as jnp
from jax.experimental import pallas as pl
from jax.experimental.pallas import tpu as pltpu


# ----------------------------------------------------------------------------
# Fused Pallas kernel: entire ATeamNet forward on 2-D VMEM slabs.
# ----------------------------------------------------------------------------
def _ateamnet_kernel(*refs):
    (a0,
     c1su, c1sd, c1w0, c1w1, c1w2, c1b,
     p1pe, p1po, p1se, p1so,
     c2su, c2sd, c2w0, c2w1, c2w2, c2b,
     p2pe, p2po, p2se, p2so,
     c3su, c3sd, c3w0, c3w1, c3w2, c3b,
     p3pe, p3po, p3se, p3so,
     c4su, c4sd, c4w0, c4w1, c4w2, c4b,
     sel0, sel1, w1a, w1b, b1, w2a, w2b, b2, wadv, badv, wval, bval,
     o_ref) = refs

    def dot(a, b):
        return jnp.dot(a, b, preferred_element_type=jnp.float32)

    def conv(a, su, sd, w0, w1, w2, brow):
        # y taps via row-shift matrices; x taps + channel contraction are
        # folded into the banded weight matrices w0/w1/w2 (im2col in-kernel).
        up = dot(su[...], a)          # row r <- a[r-1]  (ky = 0)
        dn = dot(sd[...], a)          # row r <- a[r+1]  (ky = 2)
        pre = dot(up, w0[...]) + dot(a, w1[...]) + dot(dn, w2[...]) + brow[...]
        return jnp.maximum(pre, 0.0)

    def pool(x, pe, po, se, so):
        xc = jnp.maximum(dot(x, se[...]), dot(x, so[...]))       # pool over x
        return jnp.maximum(dot(pe[...], xc), dot(po[...], xc))   # pool over y

    a = a0[...]
    a = conv(a, c1su, c1sd, c1w0, c1w1, c1w2, c1b)
    a = pool(a, p1pe, p1po, p1se, p1so)
    a = conv(a, c2su, c2sd, c2w0, c2w1, c2w2, c2b)
    a = pool(a, p2pe, p2po, p2se, p2so)
    a = conv(a, c3su, c3sd, c3w0, c3w1, c3w2, c3b)
    a = pool(a, p3pe, p3po, p3se, p3so)
    a = conv(a, c4su, c4sd, c4w0, c4w1, c4w2, c4b)

    # Dueling head. sel0/sel1 gather the two valid rows of the 2x2 map; the
    # torch (c,h,w) flatten order is baked into the precomputed w1a/w1b and
    # w2a/w2b weight halves.
    r0 = dot(sel0[...], a)                     # (B, Wp4*C)
    r1 = dot(sel1[...], a)
    y = jnp.maximum(dot(r0, w1a[...]) + dot(r1, w1b[...]) + b1[...], 0.0)
    z = jnp.maximum(dot(r0, w2a[...]) + dot(r1, w2b[...]) + b2[...], 0.0)
    adv = dot(y, wadv[...]) + badv[...]
    # width-1 value head as a VPU row reduction (no 1-lane MXU matmul).
    val = jnp.sum(z * wval[...], axis=1, keepdims=True) + bval[...]
    o_ref[...] = (val + adv - jnp.mean(adv, axis=1, keepdims=True)
                  ).astype(o_ref.dtype)


# ----------------------------------------------------------------------------
# One-time parameter repacking (hoisted out of the jitted forward).
# ----------------------------------------------------------------------------
def _conv_mats(w_torch, b_torch, H, W, B):
    """3x3/stride1/pad1 conv as (row-shift, banded-weight) matmuls on the
    padded slab (B*(H+2), (W+2)*Cin) -> (B*(H+2), (W+2)*Cout)."""
    w = np.asarray(w_torch, np.float32)        # (Cout, Cin, 3, 3)
    bias = np.asarray(b_torch, np.float32)
    cout, cin = w.shape[0], w.shape[1]
    Hp, Wp = H + 2, W + 2
    R = B * Hp
    su = np.zeros((R, R), np.float32)          # up[r]   = a[r-1]
    sd = np.zeros((R, R), np.float32)          # down[r] = a[r+1]
    for r in range(R):
        if r % Hp != 0:
            su[r, r - 1] = 1.0
        if (r + 1) % Hp != 0:
            sd[r, r + 1] = 1.0
    wb = [np.zeros((Wp * cin, Wp * cout), np.float32) for _ in range(3)]
    for ky in range(3):
        for x in range(W):                     # valid output columns only
            xo = x + 1
            for kx in range(3):
                xi = xo + kx - 1               # 0 .. Wp-1, always in range
                wb[ky][xi * cin:(xi + 1) * cin,
                       xo * cout:(xo + 1) * cout] = w[:, :, ky, kx].T
    brow = np.zeros((1, Wp * cout), np.float32)
    for x in range(W):
        brow[0, (x + 1) * cout:(x + 2) * cout] = bias
    return [su, sd, wb[0], wb[1], wb[2], brow]


def _pool_mats(H, W, C, B):
    """MaxPool2d(2) as selection matmuls; output slab has zero borders so it is
    already padded for the next conv."""
    Hp, Wp = H + 2, W + 2
    Ho, Wo = H // 2, W // 2
    Hop, Wop = Ho + 2, Wo + 2
    pe = np.zeros((B * Hop, B * Hp), np.float32)
    po = np.zeros((B * Hop, B * Hp), np.float32)
    for n in range(B):
        for y in range(Ho):
            pe[n * Hop + y + 1, n * Hp + 2 * y + 1] = 1.0
            po[n * Hop + y + 1, n * Hp + 2 * y + 2] = 1.0
    se = np.zeros((Wp * C, Wop * C), np.float32)
    so = np.zeros((Wp * C, Wop * C), np.float32)
    for x in range(Wo):
        for c in range(C):
            se[(2 * x + 1) * C + c, (x + 1) * C + c] = 1.0
            so[(2 * x + 2) * C + c, (x + 1) * C + c] = 1.0
    return [pe, po, se, so]


def _head_mats(params, H4, W4, C, B):
    """Dueling-head weights rearranged for the padded-slab layout; torch's
    NCHW flatten (c,h,w) ordering is folded into the FC weight halves."""
    Hp4, Wp4 = H4 + 2, W4 + 2
    sels = []
    for h in range(H4):
        s = np.zeros((B, B * Hp4), np.float32)
        for n in range(B):
            s[n, n * Hp4 + h + 1] = 1.0
        sels.append(s)

    def fc_halves(w_fc):                       # torch (64, C*H4*W4)
        w_fc = np.asarray(w_fc, np.float32)
        halves = []
        for h in range(H4):
            m = np.zeros((Wp4 * C, w_fc.shape[0]), np.float32)
            for x in range(W4):
                for c in range(C):
                    m[(x + 1) * C + c, :] = w_fc[:, c * H4 * W4 + h * W4 + x]
            halves.append(m)
        return halves

    w1a, w1b = fc_halves(params["fc1"][0])
    w2a, w2b = fc_halves(params["fc2"][0])
    b1 = np.asarray(params["fc1"][1], np.float32).reshape(1, -1)
    b2 = np.asarray(params["fc2"][1], np.float32).reshape(1, -1)
    wadv = np.asarray(params["fc1_adv"][0], np.float32).T       # (64, A)
    badv = np.asarray(params["fc1_adv"][1], np.float32).reshape(1, -1)
    wval = np.asarray(params["fc2_val"][0], np.float32).reshape(1, -1)
    bval = np.asarray(params["fc2_val"][1], np.float32).reshape(1, 1)
    return [sels[0], sels[1], w1a, w1b, b1, w2a, w2b, b2, wadv, badv, wval, bval]


def prepare_params(params, B, H, W):
    """One-time repacking of torch-layout params into the constant matrices
    consumed by the fused kernel."""
    mats = []
    h, w = H, W
    for li, name in enumerate(["conv1", "conv2", "conv3", "conv4"]):
        wt, bt = params[name]
        mats += _conv_mats(wt, bt, h, w, B)
        if li < 3:
            mats += _pool_mats(h, w, int(wt.shape[0]), B)
            h, w = h // 2, w // 2
    assert (h, w) == (2, 2), "head packing assumes a 2x2 final map (16x16 input)"
    mats += _head_mats(params, h, w, 8, B)
    return tuple(jnp.asarray(m) for m in mats)


# ----------------------------------------------------------------------------
# Parameter init (deterministic, kaiming-normal weights like the nn.Module).
# ----------------------------------------------------------------------------
def init_params(key, input_size, output_size):
    def kaiming(k, shape, fan_in):
        return jax.random.normal(k, shape, jnp.float32) * jnp.sqrt(2.0 / fan_in)

    def bias(k, shape, fan_in):
        bnd = 1.0 / jnp.sqrt(fan_in)
        return jax.random.uniform(k, shape, jnp.float32, -bnd, bnd)

    fc_in = int(input_size * 8 / 64)
    keys = jax.random.split(key, 16)
    p = {}
    p["conv1"] = (kaiming(keys[0], (8, 3, 3, 3), 3 * 9), bias(keys[1], (8,), 3 * 9))
    p["conv2"] = (kaiming(keys[2], (8, 8, 3, 3), 8 * 9), bias(keys[3], (8,), 8 * 9))
    p["conv3"] = (kaiming(keys[4], (8, 8, 3, 3), 8 * 9), bias(keys[5], (8,), 8 * 9))
    p["conv4"] = (kaiming(keys[6], (8, 8, 3, 3), 8 * 9), bias(keys[7], (8,), 8 * 9))
    p["fc1"] = (kaiming(keys[8], (64, fc_in), fc_in), bias(keys[9], (64,), fc_in))
    p["fc2"] = (kaiming(keys[10], (64, fc_in), fc_in), bias(keys[11], (64,), fc_in))
    p["fc1_adv"] = (kaiming(keys[12], (output_size, 64), 64),
                    bias(keys[13], (output_size,), 64))
    p["fc2_val"] = (kaiming(keys[14], (1, 64), 64), bias(keys[15], (1,), 64))
    return p


# ----------------------------------------------------------------------------
# Jitted forward: minimal XLA glue on the raw input, then one fused kernel.
# ----------------------------------------------------------------------------
def _full_spec(shape):
    return pl.BlockSpec(shape, lambda i, _n=len(shape): (0,) * _n)


@jax.jit
def ateamnet_forward(x_nchw, packed):
    B, C_in, H, W = x_nchw.shape
    out_size = packed[-3].shape[1]                     # badv: (1, output_size)
    x = jnp.transpose(x_nchw, (0, 2, 3, 1))            # NCHW -> NHWC
    xpad = jnp.pad(x, ((0, 0), (1, 1), (1, 1), (0, 0)))
    a0 = xpad.reshape(B * (H + 2), (W + 2) * C_in)     # padded 2-D slab

    args = (a0,) + tuple(packed)
    return pl.pallas_call(
        _ateamnet_kernel,
        out_shape=jax.ShapeDtypeStruct((B, out_size), jnp.float32),
        grid=(1,),
        in_specs=[_full_spec(a.shape) for a in args],
        out_specs=_full_spec((B, out_size)),
        compiler_params=pltpu.CompilerParams(dimension_semantics=("arbitrary",)),
    )(*args)


# ----------------------------------------------------------------------------
if __name__ == "__main__":
    key = jax.random.PRNGKey(0)
    k_x, k_p = jax.random.split(key)

    B, H, W = 2, 16, 16                 # input 3x16x16
    input_size = H * W                  # fc in_features = 256*8/64 = 32
    output_size = 4

    x = jax.random.normal(k_x, (B, 3, H, W), jnp.float32)   # NCHW like torch
    params = init_params(k_p, input_size, output_size)
    packed = prepare_params(params, B, H, W)   # one-time weight repacking

    out = ateamnet_forward(x, packed)
    out = jax.block_until_ready(out)
    assert out.shape == (B, output_size), out.shape
    assert bool(jnp.all(jnp.isfinite(out)))
    print("KERNEL_OK")
</pallas_src>

<mosaic_0001>
module attributes {stable_mosaic.version = 11 : i64} {
  func.func @_ateamnet_kernel(%arg0: i32, %arg1: memref<36x54xf32, #tpu.memory_space<vmem>>, %arg2: memref<36x36xf32, #tpu.memory_space<vmem>>, %arg3: memref<36x36xf32, #tpu.memory_space<vmem>>, %arg4: memref<54x144xf32, #tpu.memory_space<vmem>>, %arg5: memref<54x144xf32, #tpu.memory_space<vmem>>, %arg6: memref<54x144xf32, #tpu.memory_space<vmem>>, %arg7: memref<1x144xf32, #tpu.memory_space<vmem>>, %arg8: memref<20x36xf32, #tpu.memory_space<vmem>>, %arg9: memref<20x36xf32, #tpu.memory_space<vmem>>, %arg10: memref<144x80xf32, #tpu.memory_space<vmem>>, %arg11: memref<144x80xf32, #tpu.memory_space<vmem>>, %arg12: memref<20x20xf32, #tpu.memory_space<vmem>>, %arg13: memref<20x20xf32, #tpu.memory_space<vmem>>, %arg14: memref<80x80xf32, #tpu.memory_space<vmem>>, %arg15: memref<80x80xf32, #tpu.memory_space<vmem>>, %arg16: memref<80x80xf32, #tpu.memory_space<vmem>>, %arg17: memref<1x80xf32, #tpu.memory_space<vmem>>, %arg18: memref<12x20xf32, #tpu.memory_space<vmem>>, %arg19: memref<12x20xf32, #tpu.memory_space<vmem>>, %arg20: memref<80x48xf32, #tpu.memory_space<vmem>>, %arg21: memref<80x48xf32, #tpu.memory_space<vmem>>, %arg22: memref<12x12xf32, #tpu.memory_space<vmem>>, %arg23: memref<12x12xf32, #tpu.memory_space<vmem>>, %arg24: memref<48x48xf32, #tpu.memory_space<vmem>>, %arg25: memref<48x48xf32, #tpu.memory_space<vmem>>, %arg26: memref<48x48xf32, #tpu.memory_space<vmem>>, %arg27: memref<1x48xf32, #tpu.memory_space<vmem>>, %arg28: memref<8x12xf32, #tpu.memory_space<vmem>>, %arg29: memref<8x12xf32, #tpu.memory_space<vmem>>, %arg30: memref<48x32xf32, #tpu.memory_space<vmem>>, %arg31: memref<48x32xf32, #tpu.memory_space<vmem>>, %arg32: memref<8x8xf32, #tpu.memory_space<vmem>>, %arg33: memref<8x8xf32, #tpu.memory_space<vmem>>, %arg34: memref<32x32xf32, #tpu.memory_space<vmem>>, %arg35: memref<32x32xf32, #tpu.memory_space<vmem>>, %arg36: memref<32x32xf32, #tpu.memory_space<vmem>>, %arg37: memref<1x32xf32, #tpu.memory_space<vmem>>, %arg38: memref<2x8xf32, #tpu.memory_space<vmem>>, %arg39: memref<2x8xf32, #tpu.memory_space<vmem>>, %arg40: memref<32x64xf32, #tpu.memory_space<vmem>>, %arg41: memref<32x64xf32, #tpu.memory_space<vmem>>, %arg42: memref<1x64xf32, #tpu.memory_space<vmem>>, %arg43: memref<32x64xf32, #tpu.memory_space<vmem>>, %arg44: memref<32x64xf32, #tpu.memory_space<vmem>>, %arg45: memref<1x64xf32, #tpu.memory_space<vmem>>, %arg46: memref<64x4xf32, #tpu.memory_space<vmem>>, %arg47: memref<1x4xf32, #tpu.memory_space<vmem>>, %arg48: memref<1x64xf32, #tpu.memory_space<vmem>>, %arg49: memref<1x1xf32, #tpu.memory_space<vmem>>, %arg50: memref<2x4xf32, #tpu.memory_space<vmem>>) attributes {dimension_semantics = [#tpu.dimension_semantics<arbitrary>], iteration_bounds = array<i64: 1>, scalar_prefetch = 0 : i64, scratch_operands = 0 : i64, tpu.core_type = #tpu.core_type<tc>, window_params = [{pipeline_mode = #tpu.pipeline_mode<synchronous>, transform_indices = @transform_0, window_bounds = array<i64: 36, 54>}, {pipeline_mode = #tpu.pipeline_mode<synchronous>, transform_indices = @transform_1, window_bounds = array<i64: 36, 36>}, {pipeline_mode = #tpu.pipeline_mode<synchronous>, transform_indices = @transform_2, window_bounds = array<i64: 36, 36>}, {pipeline_mode = #tpu.pipeline_mode<synchronous>, transform_indices = @transform_3, window_bounds = array<i64: 54, 144>}, {pipeline_mode = #tpu.pipeline_mode<synchronous>, transform_indices = @transform_4, window_bounds = array<i64: 54, 144>}, {pipeline_mode = #tpu.pipeline_mode<synchronous>, transform_indices = @transform_5, window_bounds = array<i64: 54, 144>}, {pipeline_mode = #tpu.pipeline_mode<synchronous>, transform_indices = @transform_6, window_bounds = array<i64: 1, 144>}, {pipeline_mode = #tpu.pipeline_mode<synchronous>, transform_indices = @transform_7, window_bounds = array<i64: 20, 36>}, {pipeline_mode = #tpu.pipeline_mode<synchronous>, transform_indices = @transform_8, window_bounds = array<i64: 20, 36>}, {pipeline_mode = #tpu.pipeline_mode<synchronous>, transform_indices = @transform_9, window_bounds = array<i64: 144, 80>}, {pipeline_mode = #tpu.pipeline_mode<synchronous>, transform_indices = @transform_10, window_bounds = array<i64: 144, 80>}, {pipeline_mode = #tpu.pipeline_mode<synchronous>, transform_indices = @transform_11, window_bounds = array<i64: 20, 20>}, {pipeline_mode = #tpu.pipeline_mode<synchronous>, transform_indices = @transform_12, window_bounds = array<i64: 20, 20>}, {pipeline_mode = #tpu.pipeline_mode<synchronous>, transform_indices = @transform_13, window_bounds = array<i64: 80, 80>}, {pipeline_mode = #tpu.pipeline_mode<synchronous>, transform_indices = @transform_14, window_bounds = array<i64: 80, 80>}, {pipeline_mode = #tpu.pipeline_mode<synchronous>, transform_indices = @transform_15, window_bounds = array<i64: 80, 80>}, {pipeline_mode = #tpu.pipeline_mode<synchronous>, transform_indices = @transform_16, window_bounds = array<i64: 1, 80>}, {pipeline_mode = #tpu.pipeline_mode<synchronous>, transform_indices = @transform_17, window_bounds = array<i64: 12, 20>}, {pipeline_mode = #tpu.pipeline_mode<synchronous>, transform_indices = @transform_18, window_bounds = array<i64: 12, 20>}, {pipeline_mode = #tpu.pipeline_mode<synchronous>, transform_indices = @transform_19, window_bounds = array<i64: 80, 48>}, {pipeline_mode = #tpu.pipeline_mode<synchronous>, transform_indices = @transform_20, window_bounds = array<i64: 80, 48>}, {pipeline_mode = #tpu.pipeline_mode<synchronous>, transform_indices = @transform_21, window_bounds = array<i64: 12, 12>}, {pipeline_mode = #tpu.pipeline_mode<synchronous>, transform_indices = @transform_22, window_bounds = array<i64: 12, 12>}, {pipeline_mode = #tpu.pipeline_mode<synchronous>, transform_indices = @transform_23, window_bounds = array<i64: 48, 48>}, {pipeline_mode = #tpu.pipeline_mode<synchronous>, transform_indices = @transform_24, window_bounds = array<i64: 48, 48>}, {pipeline_mode = #tpu.pipeline_mode<synchronous>, transform_indices = @transform_25, window_bounds = array<i64: 48, 48>}, {pipeline_mode = #tpu.pipeline_mode<synchronous>, transform_indices = @transform_26, window_bounds = array<i64: 1, 48>}, {pipeline_mode = #tpu.pipeline_mode<synchronous>, transform_indices = @transform_27, window_bounds = array<i64: 8, 12>}, {pipeline_mode = #tpu.pipeline_mode<synchronous>, transform_indices = @transform_28, window_bounds = array<i64: 8, 12>}, {pipeline_mode = #tpu.pipeline_mode<synchronous>, transform_indices = @transform_29, window_bounds = array<i64: 48, 32>}, {pipeline_mode = #tpu.pipeline_mode<synchronous>, transform_indices = @transform_30, window_bounds = array<i64: 48, 32>}, {pipeline_mode = #tpu.pipeline_mode<synchronous>, transform_indices = @transform_31, window_bounds = array<i64: 8, 8>}, {pipeline_mode = #tpu.pipeline_mode<synchronous>, transform_indices = @transform_32, window_bounds = array<i64: 8, 8>}, {pipeline_mode = #tpu.pipeline_mode<synchronous>, transform_indices = @transform_33, window_bounds = array<i64: 32, 32>}, {pipeline_mode = #tpu.pipeline_mode<synchronous>, transform_indices = @transform_34, window_bounds = array<i64: 32, 32>}, {pipeline_mode = #tpu.pipeline_mode<synchronous>, transform_indices = @transform_35, window_bounds = array<i64: 32, 32>}, {pipeline_mode = #tpu.pipeline_mode<synchronous>, transform_indices = @transform_36, window_bounds = array<i64: 1, 32>}, {pipeline_mode = #tpu.pipeline_mode<synchronous>, transform_indices = @transform_37, window_bounds = array<i64: 2, 8>}, {pipeline_mode = #tpu.pipeline_mode<synchronous>, transform_indices = @transform_38, window_bounds = array<i64: 2, 8>}, {pipeline_mode = #tpu.pipeline_mode<synchronous>, transform_indices = @transform_39, window_bounds = array<i64: 32, 64>}, {pipeline_mode = #tpu.pipeline_mode<synchronous>, transform_indices = @transform_40, window_bounds = array<i64: 32, 64>}, {pipeline_mode = #tpu.pipeline_mode<synchronous>, transform_indices = @transform_41, window_bounds = array<i64: 1, 64>}, {pipeline_mode = #tpu.pipeline_mode<synchronous>, transform_indices = @transform_42, window_bounds = array<i64: 32, 64>}, {pipeline_mode = #tpu.pipeline_mode<synchronous>, transform_indices = @transform_43, window_bounds = array<i64: 32, 64>}, {pipeline_mode = #tpu.pipeline_mode<synchronous>, transform_indices = @transform_44, window_bounds = array<i64: 1, 64>}, {pipeline_mode = #tpu.pipeline_mode<synchronous>, transform_indices = @transform_45, window_bounds = array<i64: 64, 4>}, {pipeline_mode = #tpu.pipeline_mode<synchronous>, transform_indices = @transform_46, window_bounds = array<i64: 1, 4>}, {pipeline_mode = #tpu.pipeline_mode<synchronous>, transform_indices = @transform_47, window_bounds = array<i64: 1, 64>}, {pipeline_mode = #tpu.pipeline_mode<synchronous>, transform_indices = @transform_48, window_bounds = array<i64: 1, 1>}, {pipeline_mode = #tpu.pipeline_mode<synchronous>, transform_indices = @transform_49, window_bounds = array<i64: 2, 4>}]} {
    %c0 = arith.constant 0 : index
    %c0_0 = arith.constant 0 : index
    %0 = vector.load %arg1[%c0, %c0_0] : memref<36x54xf32, #tpu.memory_space<vmem>>, vector<36x54xf32>
    %c0_1 = arith.constant 0 : index
    %c0_2 = arith.constant 0 : index
    %1 = vector.load %arg2[%c0_1, %c0_2] : memref<36x36xf32, #tpu.memory_space<vmem>>, vector<36x36xf32>
    %cst = arith.constant dense<0.000000e+00> : vector<36x54xf32>
    %2 = tpu.matmul %1, %0, %cst {dimension_numbers = #tpu.dot_dimension_numbers<[1], [0], [0], [1], [0, 0, 1, 1], [], []>} : vector<36x36xf32>, vector<36x54xf32>, vector<36x54xf32> -> vector<36x54xf32>
    %c0_3 = arith.constant 0 : index
    %c0_4 = arith.constant 0 : index
    %3 = vector.load %arg3[%c0_3, %c0_4] : memref<36x36xf32, #tpu.memory_space<vmem>>, vector<36x36xf32>
    %cst_5 = arith.constant dense<0.000000e+00> : vector<36x54xf32>
    %4 = tpu.matmul %3, %0, %cst_5 {dimension_numbers = #tpu.dot_dimension_numbers<[1], [0], [0], [1], [0, 0, 1, 1], [], []>} : vector<36x36xf32>, vector<36x54xf32>, vector<36x54xf32> -> vector<36x54xf32>
    %c0_6 = arith.constant 0 : index
    %c0_7 = arith.constant 0 : index
    %5 = vector.load %arg4[%c0_6, %c0_7] : memref<54x144xf32, #tpu.memory_space<vmem>>, vector<54x144xf32>
    %cst_8 = arith.constant dense<0.000000e+00> : vector<36x144xf32>
    %6 = tpu.matmul %2, %5, %cst_8 {dimension_numbers = #tpu.dot_dimension_numbers<[1], [0], [0], [1], [0, 0, 1, 1], [], []>} : vector<36x54xf32>, vector<54x144xf32>, vector<36x144xf32> -> vector<36x144xf32>
    %c0_9 = arith.constant 0 : index
    %c0_10 = arith.constant 0 : index
    %7 = vector.load %arg5[%c0_9, %c0_10] : memref<54x144xf32, #tpu.memory_space<vmem>>, vector<54x144xf32>
    %cst_11 = arith.constant dense<0.000000e+00> : vector<36x144xf32>
    %8 = tpu.matmul %0, %7, %cst_11 {dimension_numbers = #tpu.dot_dimension_numbers<[1], [0], [0], [1], [0, 0, 1, 1], [], []>} : vector<36x54xf32>, vector<54x144xf32>, vector<36x144xf32> -> vector<36x144xf32>
    %9 = arith.addf %6, %8 : vector<36x144xf32>
    %c0_12 = arith.constant 0 : index
    %c0_13 = arith.constant 0 : index
    %10 = vector.load %arg6[%c0_12, %c0_13] : memref<54x144xf32, #tpu.memory_space<vmem>>, vector<54x144xf32>
    %cst_14 = arith.constant dense<0.000000e+00> : vector<36x144xf32>
    %11 = tpu.matmul %4, %10, %cst_14 {dimension_numbers = #tpu.dot_dimension_numbers<[1], [0], [0], [1], [0, 0, 1, 1], [], []>} : vector<36x54xf32>, vector<54x144xf32>, vector<36x144xf32> -> vector<36x144xf32>
    %12 = arith.addf %9, %11 : vector<36x144xf32>
    %c0_15 = arith.constant 0 : index
    %c0_16 = arith.constant 0 : index
    %13 = vector.load %arg7[%c0_15, %c0_16] : memref<1x144xf32, #tpu.memory_space<vmem>>, vector<1x144xf32>
    %14 = vector.broadcast %13 : vector<1x144xf32> to vector<36x144xf32>
    %15 = arith.addf %12, %14 : vector<36x144xf32>
    %cst_17 = arith.constant 0.000000e+00 : f32
    %16 = vector.broadcast %cst_17 : f32 to vector<36x144xf32>
    %17 = arith.maximumf %15, %16 : vector<36x144xf32>
    %c0_18 = arith.constant 0 : index
    %c0_19 = arith.constant 0 : index
    %18 = vector.load %arg10[%c0_18, %c0_19] : memref<144x80xf32, #tpu.memory_space<vmem>>, vector<144x80xf32>
    %cst_20 = arith.constant dense<0.000000e+00> : vector<36x80xf32>
    %19 = tpu.matmul %17, %18, %cst_20 {dimension_numbers = #tpu.dot_dimension_numbers<[1], [0], [0], [1], [0, 0, 1, 1], [], []>} : vector<36x144xf32>, vector<144x80xf32>, vector<36x80xf32> -> vector<36x80xf32>
    %c0_21 = arith.constant 0 : index
    %c0_22 = arith.constant 0 : index
    %20 = vector.load %arg11[%c0_21, %c0_22] : memref<144x80xf32, #tpu.memory_space<vmem>>, vector<144x80xf32>
    %cst_23 = arith.constant dense<0.000000e+00> : vector<36x80xf32>
    %21 = tpu.matmul %17, %20, %cst_23 {dimension_numbers = #tpu.dot_dimension_numbers<[1], [0], [0], [1], [0, 0, 1, 1], [], []>} : vector<36x144xf32>, vector<144x80xf32>, vector<36x80xf32> -> vector<36x80xf32>
    %22 = arith.maximumf %19, %21 : vector<36x80xf32>
    %c0_24 = arith.constant 0 : index
    %c0_25 = arith.constant 0 : index
    %23 = vector.load %arg8[%c0_24, %c0_25] : memref<20x36xf32, #tpu.memory_space<vmem>>, vector<20x36xf32>
    %cst_26 = arith.constant dense<0.000000e+00> : vector<20x80xf32>
    %24 = tpu.matmul %23, %22, %cst_26 {dimension_numbers = #tpu.dot_dimension_numbers<[1], [0], [0], [1], [0, 0, 1, 1], [], []>} : vector<20x36xf32>, vector<36x80xf32>, vector<20x80xf32> -> vector<20x80xf32>
    %c0_27 = arith.constant 0 : index
    %c0_28 = arith.constant 0 : index
    %25 = vector.load %arg9[%c0_27, %c0_28] : memref<20x36xf32, #tpu.memory_space<vmem>>, vector<20x36xf32>
    %cst_29 = arith.constant dense<0.000000e+00> : vector<20x80xf32>
    %26 = tpu.matmul %25, %22, %cst_29 {dimension_numbers = #tpu.dot_dimension_numbers<[1], [0], [0], [1], [0, 0, 1, 1], [], []>} : vector<20x36xf32>, vector<36x80xf32>, vector<20x80xf32> -> vector<20x80xf32>
    %27 = arith.maximumf %24, %26 : vector<20x80xf32>
    %c0_30 = arith.constant 0 : index
    %c0_31 = arith.constant 0 : index
    %28 = vector.load %arg12[%c0_30, %c0_31] : memref<20x20xf32, #tpu.memory_space<vmem>>, vector<20x20xf32>
    %cst_32 = arith.constant dense<0.000000e+00> : vector<20x80xf32>
    %29 = tpu.matmul %28, %27, %cst_32 {dimension_numbers = #tpu.dot_dimension_numbers<[1], [0], [0], [1], [0, 0, 1, 1], [], []>} : vector<20x20xf32>, vector<20x80xf32>, vector<20x80xf32> -> vector<20x80xf32>
    %c0_33 = arith.constant 0 : index
    %c0_34 = arith.constant 0 : index
    %30 = vector.load %arg13[%c0_33, %c0_34] : memref<20x20xf32, #tpu.memory_space<vmem>>, vector<20x20xf32>
    %cst_35 = arith.constant dense<0.000000e+00> : vector<20x80xf32>
    %31 = tpu.matmul %30, %27, %cst_35 {dimension_numbers = #tpu.dot_dimension_numbers<[1], [0], [0], [1], [0, 0, 1, 1], [], []>} : vector<20x20xf32>, vector<20x80xf32>, vector<20x80xf32> -> vector<20x80xf32>
    %c0_36 = arith.constant 0 : index
    %c0_37 = arith.constant 0 : index
    %32 = vector.load %arg14[%c0_36, %c0_37] : memref<80x80xf32, #tpu.memory_space<vmem>>, vector<80x80xf32>
    %cst_38 = arith.constant dense<0.000000e+00> : vector<20x80xf32>
    %33 = tpu.matmul %29, %32, %cst_38 {dimension_numbers = #tpu.dot_dimension_numbers<[1], [0], [0], [1], [0, 0, 1, 1], [], []>} : vector<20x80xf32>, vector<80x80xf32>, vector<20x80xf32> -> vector<20x80xf32>
    %c0_39 = arith.constant 0 : index
    %c0_40 = arith.constant 0 : index
    %34 = vector.load %arg15[%c0_39, %c0_40] : memref<80x80xf32, #tpu.memory_space<vmem>>, vector<80x80xf32>
    %cst_41 = arith.constant dense<0.000000e+00> : vector<20x80xf32>
    %35 = tpu.matmul %27, %34, %cst_41 {dimension_numbers = #tpu.dot_dimension_numbers<[1], [0], [0], [1], [0, 0, 1, 1], [], []>} : vector<20x80xf32>, vector<80x80xf32>, vector<20x80xf32> -> vector<20x80xf32>
    %36 = arith.addf %33, %35 : vector<20x80xf32>
    %c0_42 = arith.constant 0 : index
    %c0_43 = arith.constant 0 : index
    %37 = vector.load %arg16[%c0_42, %c0_43] : memref<80x80xf32, #tpu.memory_space<vmem>>, vector<80x80xf32>
    %cst_44 = arith.constant dense<0.000000e+00> : vector<20x80xf32>
    %38 = tpu.matmul %31, %37, %cst_44 {dimension_numbers = #tpu.dot_dimension_numbers<[1], [0], [0], [1], [0, 0, 1, 1], [], []>} : vector<20x80xf32>, vector<80x80xf32>, vector<20x80xf32> -> vector<20x80xf32>
    %39 = arith.addf %36, %38 : vector<20x80xf32>
    %c0_45 = arith.constant 0 : index
    %c0_46 = arith.constant 0 : index
    %40 = vector.load %arg17[%c0_45, %c0_46] : memref<1x80xf32, #tpu.memory_space<vmem>>, vector<1x80xf32>
    %41 = vector.broadcast %40 : vector<1x80xf32> to vector<20x80xf32>
    %42 = arith.addf %39, %41 : vector<20x80xf32>
    %cst_47 = arith.constant 0.000000e+00 : f32
    %43 = vector.broadcast %cst_47 : f32 to vector<20x80xf32>
    %44 = arith.maximumf %42, %43 : vector<20x80xf32>
    %c0_48 = arith.constant 0 : index
    %c0_49 = arith.constant 0 : index
    %45 = vector.load %arg20[%c0_48, %c0_49] : memref<80x48xf32, #tpu.memory_space<vmem>>, vector<80x48xf32>
    %cst_50 = arith.constant dense<0.000000e+00> : vector<20x48xf32>
    %46 = tpu.matmul %44, %45, %cst_50 {dimension_numbers = #tpu.dot_dimension_numbers<[1], [0], [0], [1], [0, 0, 1, 1], [], []>} : vector<20x80xf32>, vector<80x48xf32>, vector<20x48xf32> -> vector<20x48xf32>
    %c0_51 = arith.constant 0 : index
    %c0_52 = arith.constant 0 : index
    %47 = vector.load %arg21[%c0_51, %c0_52] : memref<80x48xf32, #tpu.memory_space<vmem>>, vector<80x48xf32>
    %cst_53 = arith.constant dense<0.000000e+00> : vector<20x48xf32>
    %48 = tpu.matmul %44, %47, %cst_53 {dimension_numbers = #tpu.dot_dimension_numbers<[1], [0], [0], [1], [0, 0, 1, 1], [], []>} : vector<20x80xf32>, vector<80x48xf32>, vector<20x48xf32> -> vector<20x48xf32>
    %49 = arith.maximumf %46, %48 : vector<20x48xf32>
    %c0_54 = arith.constant 0 : index
    %c0_55 = arith.constant 0 : index
    %50 = vector.load %arg18[%c0_54, %c0_55] : memref<12x20xf32, #tpu.memory_space<vmem>>, vector<12x20xf32>
    %cst_56 = arith.constant dense<0.000000e+00> : vector<12x48xf32>
    %51 = tpu.matmul %50, %49, %cst_56 {dimension_numbers = #tpu.dot_dimension_numbers<[1], [0], [0], [1], [0, 0, 1, 1], [], []>} : vector<12x20xf32>, vector<20x48xf32>, vector<12x48xf32> -> vector<12x48xf32>
    %c0_57 = arith.constant 0 : index
    %c0_58 = arith.constant 0 : index
    %52 = vector.load %arg19[%c0_57, %c0_58] : memref<12x20xf32, #tpu.memory_space<vmem>>, vector<12x20xf32>
    %cst_59 = arith.constant dense<0.000000e+00> : vector<12x48xf32>
    %53 = tpu.matmul %52, %49, %cst_59 {dimension_numbers = #tpu.dot_dimension_numbers<[1], [0], [0], [1], [0, 0, 1, 1], [], []>} : vector<12x20xf32>, vector<20x48xf32>, vector<12x48xf32> -> vector<12x48xf32>
    %54 = arith.maximumf %51, %53 : vector<12x48xf32>
    %c0_60 = arith.constant 0 : index
    %c0_61 = arith.constant 0 : index
    %55 = vector.load %arg22[%c0_60, %c0_61] : memref<12x12xf32, #tpu.memory_space<vmem>>, vector<12x12xf32>
    %cst_62 = arith.constant dense<0.000000e+00> : vector<12x48xf32>
    %56 = tpu.matmul %55, %54, %cst_62 {dimension_numbers = #tpu.dot_dimension_numbers<[1], [0], [0], [1], [0, 0, 1, 1], [], []>} : vector<12x12xf32>, vector<12x48xf32>, vector<12x48xf32> -> vector<12x48xf32>
    %c0_63 = arith.constant 0 : index
    %c0_64 = arith.constant 0 : index
    %57 = vector.load %arg23[%c0_63, %c0_64] : memref<12x12xf32, #tpu.memory_space<vmem>>, vector<12x12xf32>
    %cst_65 = arith.constant dense<0.000000e+00> : vector<12x48xf32>
    %58 = tpu.matmul %57, %54, %cst_65 {dimension_numbers = #tpu.dot_dimension_numbers<[1], [0], [0], [1], [0, 0, 1, 1], [], []>} : vector<12x12xf32>, vector<12x48xf32>, vector<12x48xf32> -> vector<12x48xf32>
    %c0_66 = arith.constant 0 : index
    %c0_67 = arith.constant 0 : index
    %59 = vector.load %arg24[%c0_66, %c0_67] : memref<48x48xf32, #tpu.memory_space<vmem>>, vector<48x48xf32>
    %cst_68 = arith.constant dense<0.000000e+00> : vector<12x48xf32>
    %60 = tpu.matmul %56, %59, %cst_68 {dimension_numbers = #tpu.dot_dimension_numbers<[1], [0], [0], [1], [0, 0, 1, 1], [], []>} : vector<12x48xf32>, vector<48x48xf32>, vector<12x48xf32> -> vector<12x48xf32>
    %c0_69 = arith.constant 0 : index
    %c0_70 = arith.constant 0 : index
    %61 = vector.load %arg25[%c0_69, %c0_70] : memref<48x48xf32, #tpu.memory_space<vmem>>, vector<48x48xf32>
    %cst_71 = arith.constant dense<0.000000e+00> : vector<12x48xf32>
    %62 = tpu.matmul %54, %61, %cst_71 {dimension_numbers = #tpu.dot_dimension_numbers<[1], [0], [0], [1], [0, 0, 1, 1], [], []>} : vector<12x48xf32>, vector<48x48xf32>, vector<12x48xf32> -> vector<12x48xf32>
    %63 = arith.addf %60, %62 : vector<12x48xf32>
    %c0_72 = arith.constant 0 : index
    %c0_73 = arith.constant 0 : index
    %64 = vector.load %arg26[%c0_72, %c0_73] : memref<48x48xf32, #tpu.memory_space<vmem>>, vector<48x48xf32>
    %cst_74 = arith.constant dense<0.000000e+00> : vector<12x48xf32>
    %65 = tpu.matmul %58, %64, %cst_74 {dimension_numbers = #tpu.dot_dimension_numbers<[1], [0], [0], [1], [0, 0, 1, 1], [], []>} : vector<12x48xf32>, vector<48x48xf32>, vector<12x48xf32> -> vector<12x48xf32>
    %66 = arith.addf %63, %65 : vector<12x48xf32>
    %c0_75 = arith.constant 0 : index
    %c0_76 = arith.constant 0 : index
    %67 = vector.load %arg27[%c0_75, %c0_76] : memref<1x48xf32, #tpu.memory_space<vmem>>, vector<1x48xf32>
    %68 = vector.broadcast %67 : vector<1x48xf32> to vector<12x48xf32>
    %69 = arith.addf %66, %68 : vector<12x48xf32>
    %cst_77 = arith.constant 0.000000e+00 : f32
    %70 = vector.broadcast %cst_77 : f32 to vector<12x48xf32>
    %71 = arith.maximumf %69, %70 : vector<12x48xf32>
    %c0_78 = arith.constant 0 : index
    %c0_79 = arith.constant 0 : index
    %72 = vector.load %arg30[%c0_78, %c0_79] : memref<48x32xf32, #tpu.memory_space<vmem>>, vector<48x32xf32>
    %cst_80 = arith.constant dense<0.000000e+00> : vector<12x32xf32>
    %73 = tpu.matmul %71, %72, %cst_80 {dimension_numbers = #tpu.dot_dimension_numbers<[1], [0], [0], [1], [0, 0, 1, 1], [], []>} : vector<12x48xf32>, vector<48x32xf32>, vector<12x32xf32> -> vector<12x32xf32>
    %c0_81 = arith.constant 0 : index
    %c0_82 = arith.constant 0 : index
    %74 = vector.load %arg31[%c0_81, %c0_82] : memref<48x32xf32, #tpu.memory_space<vmem>>, vector<48x32xf32>
    %cst_83 = arith.constant dense<0.000000e+00> : vector<12x32xf32>
    %75 = tpu.matmul %71, %74, %cst_83 {dimension_numbers = #tpu.dot_dimension_numbers<[1], [0], [0], [1], [0, 0, 1, 1], [], []>} : vector<12x48xf32>, vector<48x32xf32>, vector<12x32xf32> -> vector<12x32xf32>
    %76 = arith.maximumf %73, %75 : vector<12x32xf32>
    %c0_84 = arith.constant 0 : index
    %c0_85 = arith.constant 0 : index
    %77 = vector.load %arg28[%c0_84, %c0_85] : memref<8x12xf32, #tpu.memory_space<vmem>>, vector<8x12xf32>
    %cst_86 = arith.constant dense<0.000000e+00> : vector<8x32xf32>
    %78 = tpu.matmul %77, %76, %cst_86 {dimension_numbers = #tpu.dot_dimension_numbers<[1], [0], [0], [1], [0, 0, 1, 1], [], []>} : vector<8x12xf32>, vector<12x32xf32>, vector<8x32xf32> -> vector<8x32xf32>
    %c0_87 = arith.constant 0 : index
    %c0_88 = arith.constant 0 : index
    %79 = vector.load %arg29[%c0_87, %c0_88] : memref<8x12xf32, #tpu.memory_space<vmem>>, vector<8x12xf32>
    %cst_89 = arith.constant dense<0.000000e+00> : vector<8x32xf32>
    %80 = tpu.matmul %79, %76, %cst_89 {dimension_numbers = #tpu.dot_dimension_numbers<[1], [0], [0], [1], [0, 0, 1, 1], [], []>} : vector<8x12xf32>, vector<12x32xf32>, vector<8x32xf32> -> vector<8x32xf32>
    %81 = arith.maximumf %78, %80 : vector<8x32xf32>
    %c0_90 = arith.constant 0 : index
    %c0_91 = arith.constant 0 : index
    %82 = vector.load %arg32[%c0_90, %c0_91] : memref<8x8xf32, #tpu.memory_space<vmem>>, vector<8x8xf32>
    %cst_92 = arith.constant dense<0.000000e+00> : vector<8x32xf32>
    %83 = tpu.matmul %82, %81, %cst_92 {dimension_numbers = #tpu.dot_dimension_numbers<[1], [0], [0], [1], [0, 0, 1, 1], [], []>} : vector<8x8xf32>, vector<8x32xf32>, vector<8x32xf32> -> vector<8x32xf32>
    %c0_93 = arith.constant 0 : index
    %c0_94 = arith.constant 0 : index
    %84 = vector.load %arg33[%c0_93, %c0_94] : memref<8x8xf32, #tpu.memory_space<vmem>>, vector<8x8xf32>
    %cst_95 = arith.constant dense<0.000000e+00> : vector<8x32xf32>
    %85 = tpu.matmul %84, %81, %cst_95 {dimension_numbers = #tpu.dot_dimension_numbers<[1], [0], [0], [1], [0, 0, 1, 1], [], []>} : vector<8x8xf32>, vector<8x32xf32>, vector<8x32xf32> -> vector<8x32xf32>
    %c0_96 = arith.constant 0 : index
    %c0_97 = arith.constant 0 : index
    %86 = vector.load %arg34[%c0_96, %c0_97] : memref<32x32xf32, #tpu.memory_space<vmem>>, vector<32x32xf32>
    %cst_98 = arith.constant dense<0.000000e+00> : vector<8x32xf32>
    %87 = tpu.matmul %83, %86, %cst_98 {dimension_numbers = #tpu.dot_dimension_numbers<[1], [0], [0], [1], [0, 0, 1, 1], [], []>} : vector<8x32xf32>, vector<32x32xf32>, vector<8x32xf32> -> vector<8x32xf32>
    %c0_99 = arith.constant 0 : index
    %c0_100 = arith.constant 0 : index
    %88 = vector.load %arg35[%c0_99, %c0_100] : memref<32x32xf32, #tpu.memory_space<vmem>>, vector<32x32xf32>
    %cst_101 = arith.constant dense<0.000000e+00> : vector<8x32xf32>
    %89 = tpu.matmul %81, %88, %cst_101 {dimension_numbers = #tpu.dot_dimension_numbers<[1], [0], [0], [1], [0, 0, 1, 1], [], []>} : vector<8x32xf32>, vector<32x32xf32>, vector<8x32xf32> -> vector<8x32xf32>
    %90 = arith.addf %87, %89 : vector<8x32xf32>
    %c0_102 = arith.constant 0 : index
    %c0_103 = arith.constant 0 : index
    %91 = vector.load %arg36[%c0_102, %c0_103] : memref<32x32xf32, #tpu.memory_space<vmem>>, vector<32x32xf32>
    %cst_104 = arith.constant dense<0.000000e+00> : vector<8x32xf32>
    %92 = tpu.matmul %85, %91, %cst_104 {dimension_numbers = #tpu.dot_dimension_numbers<[1], [0], [0], [1], [0, 0, 1, 1], [], []>} : vector<8x32xf32>, vector<32x32xf32>, vector<8x32xf32> -> vector<8x32xf32>
    %93 = arith.addf %90, %92 : vector<8x32xf32>
    %c0_105 = arith.constant 0 : index
    %c0_106 = arith.constant 0 : index
    %94 = vector.load %arg37[%c0_105, %c0_106] : memref<1x32xf32, #tpu.memory_space<vmem>>, vector<1x32xf32>
    %95 = vector.broadcast %94 : vector<1x32xf32> to vector<8x32xf32>
    %96 = arith.addf %93, %95 : vector<8x32xf32>
    %cst_107 = arith.constant 0.000000e+00 : f32
    %97 = vector.broadcast %cst_107 : f32 to vector<8x32xf32>
    %98 = arith.maximumf %96, %97 : vector<8x32xf32>
    %c0_108 = arith.constant 0 : index
    %c0_109 = arith.constant 0 : index
    %99 = vector.load %arg38[%c0_108, %c0_109] : memref<2x8xf32, #tpu.memory_space<vmem>>, vector<2x8xf32>
    %cst_110 = arith.constant dense<0.000000e+00> : vector<2x32xf32>
    %100 = tpu.matmul %99, %98, %cst_110 {dimension_numbers = #tpu.dot_dimension_numbers<[1], [0], [0], [1], [0, 0, 1, 1], [], []>} : vector<2x8xf32>, vector<8x32xf32>, vector<2x32xf32> -> vector<2x32xf32>
    %c0_111 = arith.constant 0 : index
    %c0_112 = arith.constant 0 : index
    %101 = vector.load %arg39[%c0_111, %c0_112] : memref<2x8xf32, #tpu.memory_space<vmem>>, vector<2x8xf32>
    %cst_113 = arith.constant dense<0.000000e+00> : vector<2x32xf32>
    %102 = tpu.matmul %101, %98, %cst_113 {dimension_numbers = #tpu.dot_dimension_numbers<[1], [0], [0], [1], [0, 0, 1, 1], [], []>} : vector<2x8xf32>, vector<8x32xf32>, vector<2x32xf32> -> vector<2x32xf32>
    %c0_114 = arith.constant 0 : index
    %c0_115 = arith.constant 0 : index
    %103 = vector.load %arg40[%c0_114, %c0_115] : memref<32x64xf32, #tpu.memory_space<vmem>>, vector<32x64xf32>
    %cst_116 = arith.constant dense<0.000000e+00> : vector<2x64xf32>
    %104 = tpu.matmul %100, %103, %cst_116 {dimension_numbers = #tpu.dot_dimension_numbers<[1], [0], [0], [1], [0, 0, 1, 1], [], []>} : vector<2x32xf32>, vector<32x64xf32>, vector<2x64xf32> -> vector<2x64xf32>
    %c0_117 = arith.constant 0 : index
    %c0_118 = arith.constant 0 : index
    %105 = vector.load %arg41[%c0_117, %c0_118] : memref<32x64xf32, #tpu.memory_space<vmem>>, vector<32x64xf32>
    %cst_119 = arith.constant dense<0.000000e+00> : vector<2x64xf32>
    %106 = tpu.matmul %102, %105, %cst_119 {dimension_numbers = #tpu.dot_dimension_numbers<[1], [0], [0], [1], [0, 0, 1, 1], [], []>} : vector<2x32xf32>, vector<32x64xf32>, vector<2x64xf32> -> vector<2x64xf32>
    %107 = arith.addf %104, %106 : vector<2x64xf32>
    %c0_120 = arith.constant 0 : index
    %c0_121 = arith.constant 0 : index
    %108 = vector.load %arg42[%c0_120, %c0_121] : memref<1x64xf32, #tpu.memory_space<vmem>>, vector<1x64xf32>
    %109 = vector.broadcast %108 : vector<1x64xf32> to vector<2x64xf32>
    %110 = arith.addf %107, %109 : vector<2x64xf32>
    %cst_122 = arith.constant 0.000000e+00 : f32
    %111 = vector.broadcast %cst_122 : f32 to vector<2x64xf32>
    %112 = arith.maximumf %110, %111 : vector<2x64xf32>
    %c0_123 = arith.constant 0 : index
    %c0_124 = arith.constant 0 : index
    %113 = vector.load %arg43[%c0_123, %c0_124] : memref<32x64xf32, #tpu.memory_space<vmem>>, vector<32x64xf32>
    %cst_125 = arith.constant dense<0.000000e+00> : vector<2x64xf32>
    %114 = tpu.matmul %100, %113, %cst_125 {dimension_numbers = #tpu.dot_dimension_numbers<[1], [0], [0], [1], [0, 0, 1, 1], [], []>} : vector<2x32xf32>, vector<32x64xf32>, vector<2x64xf32> -> vector<2x64xf32>
    %c0_126 = arith.constant 0 : index
    %c0_127 = arith.constant 0 : index
    %115 = vector.load %arg44[%c0_126, %c0_127] : memref<32x64xf32, #tpu.memory_space<vmem>>, vector<32x64xf32>
    %cst_128 = arith.constant dense<0.000000e+00> : vector<2x64xf32>
    %116 = tpu.matmul %102, %115, %cst_128 {dimension_numbers = #tpu.dot_dimension_numbers<[1], [0], [0], [1], [0, 0, 1, 1], [], []>} : vector<2x32xf32>, vector<32x64xf32>, vector<2x64xf32> -> vector<2x64xf32>
    %117 = arith.addf %114, %116 : vector<2x64xf32>
    %c0_129 = arith.constant 0 : index
    %c0_130 = arith.constant 0 : index
    %118 = vector.load %arg45[%c0_129, %c0_130] : memref<1x64xf32, #tpu.memory_space<vmem>>, vector<1x64xf32>
    %119 = vector.broadcast %118 : vector<1x64xf32> to vector<2x64xf32>
    %120 = arith.addf %117, %119 : vector<2x64xf32>
    %cst_131 = arith.constant 0.000000e+00 : f32
    %121 = vector.broadcast %cst_131 : f32 to vector<2x64xf32>
    %122 = arith.maximumf %120, %121 : vector<2x64xf32>
    %c0_132 = arith.constant 0 : index
    %c0_133 = arith.constant 0 : index
    %123 = vector.load %arg46[%c0_132, %c0_133] : memref<64x4xf32, #tpu.memory_space<vmem>>, vector<64x4xf32>
    %cst_134 = arith.constant dense<0.000000e+00> : vector<2x4xf32>
    %124 = tpu.matmul %112, %123, %cst_134 {dimension_numbers = #tpu.dot_dimension_numbers<[1], [0], [0], [1], [0, 0, 1, 1], [], []>} : vector<2x64xf32>, vector<64x4xf32>, vector<2x4xf32> -> vector<2x4xf32>
    %c0_135 = arith.constant 0 : index
    %c0_136 = arith.constant 0 : index
    %125 = vector.load %arg47[%c0_135, %c0_136] : memref<1x4xf32, #tpu.memory_space<vmem>>, vector<1x4xf32>
    %126 = vector.broadcast %125 : vector<1x4xf32> to vector<2x4xf32>
    %127 = arith.addf %124, %126 : vector<2x4xf32>
    %c0_137 = arith.constant 0 : index
    %c0_138 = arith.constant 0 : index
    %128 = vector.load %arg48[%c0_137, %c0_138] : memref<1x64xf32, #tpu.memory_space<vmem>>, vector<1x64xf32>
    %129 = vector.broadcast %128 : vector<1x64xf32> to vector<2x64xf32>
    %130 = arith.mulf %122, %129 : vector<2x64xf32>
    %cst_139 = arith.constant dense<0.000000e+00> : vector<2xf32>
    %131 = vector.multi_reduction <add>, %130, %cst_139 [1] : vector<2x64xf32> to vector<2xf32>
    %132 = vector.shape_cast %131 : vector<2xf32> to vector<2x1xf32>
    %c0_140 = arith.constant 0 : index
    %c0_141 = arith.constant 0 : index
    %133 = vector.load %arg49[%c0_140, %c0_141] : memref<1x1xf32, #tpu.memory_space<vmem>>, vector<1x1xf32>
    %134 = vector.broadcast %133 : vector<1x1xf32> to vector<2x1xf32>
    %135 = arith.addf %132, %134 : vector<2x1xf32>
    %136 = vector.broadcast %135 : vector<2x1xf32> to vector<2x4xf32>
    %137 = arith.addf %136, %127 : vector<2x4xf32>
    %cst_142 = arith.constant dense<0.000000e+00> : vector<2xf32>
    %138 = vector.multi_reduction <add>, %127, %cst_142 [1] : vector<2x4xf32> to vector<2xf32>
    %139 = vector.shape_cast %138 : vector<2xf32> to vector<2x1xf32>
    %cst_143 = arith.constant 4.000000e+00 : f32
    %140 = vector.broadcast %cst_143 : f32 to vector<2x1xf32>
    %141 = arith.divf %139, %140 : vector<2x1xf32>
    %142 = vector.broadcast %141 : vector<2x1xf32> to vector<2x4xf32>
    %143 = arith.subf %137, %142 : vector<2x4xf32>
    %c0_144 = arith.constant 0 : index
    %c0_145 = arith.constant 0 : index
    %144 = vector.load %arg50[%c0_144, %c0_145] : memref<2x4xf32, #tpu.memory_space<vmem>>, vector<2x4xf32>
    tpu.vector_store %arg50[%c0_144, %c0_145], %143 {strides = array<i32>} : memref<2x4xf32, #tpu.memory_space<vmem>>, vector<2x4xf32>,
    return
  }
  func.func @transform_0(%arg0: i32) -> (i32, i32) {
    %c0_i32 = arith.constant 0 : i32
    %c0_i32_0 = arith.constant 0 : i32
    %c0_i32_1 = arith.constant 0 : i32
    return %c0_i32, %c0_i32_0 : i32, i32
  }
  func.func @transform_1(%arg0: i32) -> (i32, i32) {
    %c0_i32 = arith.constant 0 : i32
    %c0_i32_0 = arith.constant 0 : i32
    %c0_i32_1 = arith.constant 0 : i32
    return %c0_i32, %c0_i32_0 : i32, i32
  }
  func.func @transform_2(%arg0: i32) -> (i32, i32) {
    %c0_i32 = arith.constant 0 : i32
    %c0_i32_0 = arith.constant 0 : i32
    %c0_i32_1 = arith.constant 0 : i32
    return %c0_i32, %c0_i32_0 : i32, i32
  }
  func.func @transform_3(%arg0: i32) -> (i32, i32) {
    %c0_i32 = arith.constant 0 : i32
    %c0_i32_0 = arith.constant 0 : i32
    %c0_i32_1 = arith.constant 0 : i32
    return %c0_i32, %c0_i32_0 : i32, i32
  }
  func.func @transform_4(%arg0: i32) -> (i32, i32) {
    %c0_i32 = arith.constant 0 : i32
    %c0_i32_0 = arith.constant 0 : i32
    %c0_i32_1 = arith.constant 0 : i32
    return %c0_i32, %c0_i32_0 : i32, i32
  }
  func.func @transform_5(%arg0: i32) -> (i32, i32) {
    %c0_i32 = arith.constant 0 : i32
    %c0_i32_0 = arith.constant 0 : i32
    %c0_i32_1 = arith.constant 0 : i32
    return %c0_i32, %c0_i32_0 : i32, i32
  }
  func.func @transform_6(%arg0: i32) -> (i32, i32) {
    %c0_i32 = arith.constant 0 : i32
    %c0_i32_0 = arith.constant 0 : i32
    %c0_i32_1 = arith.constant 0 : i32
    return %c0_i32, %c0_i32_0 : i32, i32
  }
  func.func @transform_7(%arg0: i32) -> (i32, i32) {
    %c0_i32 = arith.constant 0 : i32
    %c0_i32_0 = arith.constant 0 : i32
    %c0_i32_1 = arith.constant 0 : i32
    return %c0_i32, %c0_i32_0 : i32, i32
  }
  func.func @transform_8(%arg0: i32) -> (i32, i32) {
    %c0_i32 = arith.constant 0 : i32
    %c0_i32_0 = arith.constant 0 : i32
    %c0_i32_1 = arith.constant 0 : i32
    return %c0_i32, %c0_i32_0 : i32, i32
  }
  func.func @transform_9(%arg0: i32) -> (i32, i32) {
    %c0_i32 = arith.constant 0 : i32
    %c0_i32_0 = arith.constant 0 : i32
    %c0_i32_1 = arith.constant 0 : i32
    return %c0_i32, %c0_i32_0 : i32, i32
  }
  func.func @transform_10(%arg0: i32) -> (i32, i32) {
    %c0_i32 = arith.constant 0 : i32
    %c0_i32_0 = arith.constant 0 : i32
    %c0_i32_1 = arith.constant 0 : i32
    return %c0_i32, %c0_i32_0 : i32, i32
  }
  func.func @transform_11(%arg0: i32) -> (i32, i32) {
    %c0_i32 = arith.constant 0 : i32
    %c0_i32_0 = arith.constant 0 : i32
    %c0_i32_1 = arith.constant 0 : i32
    return %c0_i32, %c0_i32_0 : i32, i32
  }
  func.func @transform_12(%arg0: i32) -> (i32, i32) {
    %c0_i32 = arith.constant 0 : i32
    %c0_i32_0 = arith.constant 0 : i32
    %c0_i32_1 = arith.constant 0 : i32
    return %c0_i32, %c0_i32_0 : i32, i32
  }
  func.func @transform_13(%arg0: i32) -> (i32, i32) {
    %c0_i32 = arith.constant 0 : i32
    %c0_i32_0 = arith.constant 0 : i32
    %c0_i32_1 = arith.constant 0 : i32
    return %c0_i32, %c0_i32_0 : i32, i32
  }
  func.func @transform_14(%arg0: i32) -> (i32, i32) {
    %c0_i32 = arith.constant 0 : i32
    %c0_i32_0 = arith.constant 0 : i32
    %c0_i32_1 = arith.constant 0 : i32
    return %c0_i32, %c0_i32_0 : i32, i32
  }
  func.func @transform_15(%arg0: i32) -> (i32, i32) {
    %c0_i32 = arith.constant 0 : i32
    %c0_i32_0 = arith.constant 0 : i32
    %c0_i32_1 = arith.constant 0 : i32
    return %c0_i32, %c0_i32_0 : i32, i32
  }
  func.func @transform_16(%arg0: i32) -> (i32, i32) {
    %c0_i32 = arith.constant 0 : i32
    %c0_i32_0 = arith.constant 0 : i32
    %c0_i32_1 = arith.constant 0 : i32
    return %c0_i32, %c0_i32_0 : i32, i32
  }
  func.func @transform_17(%arg0: i32) -> (i32, i32) {
    %c0_i32 = arith.constant 0 : i32
    %c0_i32_0 = arith.constant 0 : i32
    %c0_i32_1 = arith.constant 0 : i32
    return %c0_i32, %c0_i32_0 : i32, i32
  }
  func.func @transform_18(%arg0: i32) -> (i32, i32) {
    %c0_i32 = arith.constant 0 : i32
    %c0_i32_0 = arith.constant 0 : i32
    %c0_i32_1 = arith.constant 0 : i32
    return %c0_i32, %c0_i32_0 : i32, i32
  }
  func.func @transform_19(%arg0: i32) -> (i32, i32) {
    %c0_i32 = arith.constant 0 : i32
    %c0_i32_0 = arith.constant 0 : i32
    %c0_i32_1 = arith.constant 0 : i32
    return %c0_i32, %c0_i32_0 : i32, i32
  }
  func.func @transform_20(%arg0: i32) -> (i32, i32) {
    %c0_i32 = arith.constant 0 : i32
    %c0_i32_0 = arith.constant 0 : i32
    %c0_i32_1 = arith.constant 0 : i32
    return %c0_i32, %c0_i32_0 : i32, i32
  }
  func.func @transform_21(%arg0: i32) -> (i32, i32) {
    %c0_i32 = arith.constant 0 : i32
    %c0_i32_0 = arith.constant 0 : i32
    %c0_i32_1 = arith.constant 0 : i32
    return %c0_i32, %c0_i32_0 : i32, i32
  }
  func.func @transform_22(%arg0: i32) -> (i32, i32) {
    %c0_i32 = arith.constant 0 : i32
    %c0_i32_0 = arith.constant 0 : i32
    %c0_i32_1 = arith.constant 0 : i32
    return %c0_i32, %c0_i32_0 : i32, i32
  }
  func.func @transform_23(%arg0: i32) -> (i32, i32) {
    %c0_i32 = arith.constant 0 : i32
    %c0_i32_0 = arith.constant 0 : i32
    %c0_i32_1 = arith.constant 0 : i32
    return %c0_i32, %c0_i32_0 : i32, i32
  }
  func.func @transform_24(%arg0: i32) -> (i32, i32) {
    %c0_i32 = arith.constant 0 : i32
    %c0_i32_0 = arith.constant 0 : i32
    %c0_i32_1 = arith.constant 0 : i32
    return %c0_i32, %c0_i32_0 : i32, i32
  }
  func.func @transform_25(%arg0: i32) -> (i32, i32) {
    %c0_i32 = arith.constant 0 : i32
    %c0_i32_0 = arith.constant 0 : i32
    %c0_i32_1 = arith.constant 0 : i32
    return %c0_i32, %c0_i32_0 : i32, i32
  }
  func.func @transform_26(%arg0: i32) -> (i32, i32) {
    %c0_i32 = arith.constant 0 : i32
    %c0_i32_0 = arith.constant 0 : i32
    %c0_i32_1 = arith.constant 0 : i32
    return %c0_i32, %c0_i32_0 : i32, i32
  }
  func.func @transform_27(%arg0: i32) -> (i32, i32) {
    %c0_i32 = arith.constant 0 : i32
    %c0_i32_0 = arith.constant 0 : i32
    %c0_i32_1 = arith.constant 0 : i32
    return %c0_i32, %c0_i32_0 : i32, i32
  }
  func.func @transform_28(%arg0: i32) -> (i32, i32) {
    %c0_i32 = arith.constant 0 : i32
    %c0_i32_0 = arith.constant 0 : i32
    %c0_i32_1 = arith.constant 0 : i32
    return %c0_i32, %c0_i32_0 : i32, i32
  }
  func.func @transform_29(%arg0: i32) -> (i32, i32) {
    %c0_i32 = arith.constant 0 : i32
    %c0_i32_0 = arith.constant 0 : i32
    %c0_i32_1 = arith.constant 0 : i32
    return %c0_i32, %c0_i32_0 : i32, i32
  }
  func.func @transform_30(%arg0: i32) -> (i32, i32) {
    %c0_i32 = arith.constant 0 : i32
    %c0_i32_0 = arith.constant 0 : i32
    %c0_i32_1 = arith.constant 0 : i32
    return %c0_i32, %c0_i32_0 : i32, i32
  }
  func.func @transform_31(%arg0: i32) -> (i32, i32) {
    %c0_i32 = arith.constant 0 : i32
    %c0_i32_0 = arith.constant 0 : i32
    %c0_i32_1 = arith.constant 0 : i32
    return %c0_i32, %c0_i32_0 : i32, i32
  }
  func.func @transform_32(%arg0: i32) -> (i32, i32) {
    %c0_i32 = arith.constant 0 : i32
    %c0_i32_0 = arith.constant 0 : i32
    %c0_i32_1 = arith.constant 0 : i32
    return %c0_i32, %c0_i32_0 : i32, i32
  }
  func.func @transform_33(%arg0: i32) -> (i32, i32) {
    %c0_i32 = arith.constant 0 : i32
    %c0_i32_0 = arith.constant 0 : i32
    %c0_i32_1 = arith.constant 0 : i32
    return %c0_i32, %c0_i32_0 : i32, i32
  }
  func.func @transform_34(%arg0: i32) -> (i32, i32) {
    %c0_i32 = arith.constant 0 : i32
    %c0_i32_0 = arith.constant 0 : i32
    %c0_i32_1 = arith.constant 0 : i32
    return %c0_i32, %c0_i32_0 : i32, i32
  }
  func.func @transform_35(%arg0: i32) -> (i32, i32) {
    %c0_i32 = arith.constant 0 : i32
    %c0_i32_0 = arith.constant 0 : i32
    %c0_i32_1 = arith.constant 0 : i32
    return %c0_i32, %c0_i32_0 : i32, i32
  }
  func.func @transform_36(%arg0: i32) -> (i32, i32) {
    %c0_i32 = arith.constant 0 : i32
    %c0_i32_0 = arith.constant 0 : i32
    %c0_i32_1 = arith.constant 0 : i32
    return %c0_i32, %c0_i32_0 : i32, i32
  }
  func.func @transform_37(%arg0: i32) -> (i32, i32) {
    %c0_i32 = arith.constant 0 : i32
    %c0_i32_0 = arith.constant 0 : i32
    %c0_i32_1 = arith.constant 0 : i32
    return %c0_i32, %c0_i32_0 : i32, i32
  }
  func.func @transform_38(%arg0: i32) -> (i32, i32) {
    %c0_i32 = arith.constant 0 : i32
    %c0_i32_0 = arith.constant 0 : i32
    %c0_i32_1 = arith.constant 0 : i32
    return %c0_i32, %c0_i32_0 : i32, i32
  }
  func.func @transform_39(%arg0: i32) -> (i32, i32) {
    %c0_i32 = arith.constant 0 : i32
    %c0_i32_0 = arith.constant 0 : i32
    %c0_i32_1 = arith.constant 0 : i32
    return %c0_i32, %c0_i32_0 : i32, i32
  }
  func.func @transform_40(%arg0: i32) -> (i32, i32) {
    %c0_i32 = arith.constant 0 : i32
    %c0_i32_0 = arith.constant 0 : i32
    %c0_i32_1 = arith.constant 0 : i32
    return %c0_i32, %c0_i32_0 : i32, i32
  }
  func.func @transform_41(%arg0: i32) -> (i32, i32) {
    %c0_i32 = arith.constant 0 : i32
    %c0_i32_0 = arith.constant 0 : i32
    %c0_i32_1 = arith.constant 0 : i32
    return %c0_i32, %c0_i32_0 : i32, i32
  }
  func.func @transform_42(%arg0: i32) -> (i32, i32) {
    %c0_i32 = arith.constant 0 : i32
    %c0_i32_0 = arith.constant 0 : i32
    %c0_i32_1 = arith.constant 0 : i32
    return %c0_i32, %c0_i32_0 : i32, i32
  }
  func.func @transform_43(%arg0: i32) -> (i32, i32) {
    %c0_i32 = arith.constant 0 : i32
    %c0_i32_0 = arith.constant 0 : i32
    %c0_i32_1 = arith.constant 0 : i32
    return %c0_i32, %c0_i32_0 : i32, i32
  }
  func.func @transform_44(%arg0: i32) -> (i32, i32) {
    %c0_i32 = arith.constant 0 : i32
    %c0_i32_0 = arith.constant 0 : i32
    %c0_i32_1 = arith.constant 0 : i32
    return %c0_i32, %c0_i32_0 : i32, i32
  }
  func.func @transform_45(%arg0: i32) -> (i32, i32) {
    %c0_i32 = arith.constant 0 : i32
    %c0_i32_0 = arith.constant 0 : i32
    %c0_i32_1 = arith.constant 0 : i32
    return %c0_i32, %c0_i32_0 : i32, i32
  }
  func.func @transform_46(%arg0: i32) -> (i32, i32) {
    %c0_i32 = arith.constant 0 : i32
    %c0_i32_0 = arith.constant 0 : i32
    %c0_i32_1 = arith.constant 0 : i32
    return %c0_i32, %c0_i32_0 : i32, i32
  }
  func.func @transform_47(%arg0: i32) -> (i32, i32) {
    %c0_i32 = arith.constant 0 : i32
    %c0_i32_0 = arith.constant 0 : i32
    %c0_i32_1 = arith.constant 0 : i32
    return %c0_i32, %c0_i32_0 : i32, i32
  }
  func.func @transform_48(%arg0: i32) -> (i32, i32) {
    %c0_i32 = arith.constant 0 : i32
    %c0_i32_0 = arith.constant 0 : i32
    %c0_i32_1 = arith.constant 0 : i32
    return %c0_i32, %c0_i32_0 : i32, i32
  }
  func.func @transform_49(%arg0: i32) -> (i32, i32) {
    %c0_i32 = arith.constant 0 : i32
    %c0_i32_0 = arith.constant 0 : i32
    %c0_i32_1 = arith.constant 0 : i32
    return %c0_i32, %c0_i32_0 : i32, i32
  }
}

</mosaic_0001>

<bundles_post_ra>
// kernel: ateamnet_forward.1
= control target key start
LH: loop header
LB: loop body
LE: loop exit
PB: predicated region body
PF: predicated region fallthrough
CT: control target
= control target key end

     0   :  { %s6229_s6 = smov 1   ;;  %s6230_s10 = smov 2   ;;  %s7346_s0 = inlined_call_operand.smem [shape: u32[50], index: -1, kind: input, shape index: {}] }
   0x1   :  { %s6320_s5 = sld [smem:[%s7346_s0]]   ;;  %s6231_s14 = smov 3  }
   0x2   :  { %s6325_s9 = sld [smem:[%s7346_s0 + %s6229_s6]]   ;;  %s6232_s18 = smov 4  }
   0x3   :  { %s6330_s13 = sld [smem:[%s7346_s0 + %s6230_s10]]   ;;  %s6233_s22 = smov 5  }
   0x4   :  { %s6335_s17 = sld [smem:[%s7346_s0 + %s6231_s14]]   ;;  %s6234_s26 = smov 6  }
   0x5   :  { %s6340_s21 = sld [smem:[%s7346_s0 + %s6232_s18]]   ;;  %s6235_s30 = smov 7  }
   0x6   :  { %s6345_s25 = sld [smem:[%s7346_s0 + %s6233_s22]]   ;;  %s6236_s4 = smov 8  }
   0x7   :  { %7378 = sst [smem:[#allocation60_spill]] %s6320_s5  ;;  %s6237_s10 = smov 9  }
   0x8   :  { %7379 = sst [smem:[#allocation61_spill]] %s6325_s9  ;;  %s6238_s15 = smov 10  }
   0x9   :  { %7380 = sst [smem:[#allocation62_spill]] %s6330_s13  ;;  %s6239_s20 = smov 11  }
   0xa   :  { %7381 = sst [smem:[#allocation63_spill]] %s6335_s17  ;;  %s6241_s1 = smov 13  }
   0xb   :  { %7382 = sst [smem:[#allocation64_spill]] %s6340_s21  ;;  %s6242_s7 = smov 14  }
   0xc   :  { %7383 = sst [smem:[#allocation65_spill]] %s6345_s25  ;;  %s6244_s22 = smov 16  }
   0xd   :  { %s6350_s29 = sld [smem:[%s7346_s0 + %s6234_s26]]   ;;  %s6240_s26 = smov 12  }
   0xe   :  { %s6355_s3 = sld [smem:[%s7346_s0 + %s6235_s30]]   ;;  %s6245_s28 = smov 17  }
   0xf   :  { %s6360_s8 = sld [smem:[%s7346_s0 + %s6236_s4]]  }
  0x10   :  { %s6365_s14 = sld [smem:[%s7346_s0 + %s6237_s10]]  }
  0x11   :  { %s6370_s19 = sld [smem:[%s7346_s0 + %s6238_s15]]   ;;  %s6243_s15 = smov 15  }
  0x12   :  { %s6375_s24 = sld [smem:[%s7346_s0 + %s6239_s20]]  }
  0x13   :  { %7384 = sst [smem:[#allocation66_spill]] %s6350_s29 }
  0x14   :  { %s6380_s30 = sld [smem:[%s7346_s0 + %s6240_s26]]  }
  0x15   :  { %s6385_s6 = sld [smem:[%s7346_s0 + %s6241_s1]]   ;;  %s6277_s1 = smov 49  }
  0x16   :  { %7385 = sst [smem:[#allocation67_spill]] %s6365_s14 }
  0x17   :  { %7386 = sst [smem:[#allocation68_spill]] %s6370_s19 }
  0x18   :  { %s6390_s12 = sld [smem:[%s7346_s0 + %s6242_s7]]   ;;  %s6246_s7 = smov 18  }
  0x19   :  { %s6395_s20 = sld [smem:[%s7346_s0 + %s6243_s15]]   ;;  %s6247_s15 = smov 19  }
  0x1a   :  { %s6400_s27 = sld [smem:[%s7346_s0 + %s6244_s22]]   ;;  %s6248_s22 = smov 20  }
  0x1b   :  { %7387 = sst [smem:[#allocation69_spill]] %s6385_s6 }
  0x1c   :  { %s6405_s4 = sld [smem:[%s7346_s0 + %s6245_s28]]   ;;  %s6249_s28 = smov 21  }
  0x1d   :  { %s6410_s6 = sld [smem:[%s7346_s0 + %s6246_s7]]   ;;  %s6250_s7 = smov 22  }
  0x1e   :  { %7388 = sst [smem:[#allocation70_spill]] %s6390_s12 }
  0x1f   :  { %7389 = sst [smem:[#allocation71_spill]] %s6395_s20 }
  0x20   :  { %7390 = sst [smem:[#allocation72_spill]] %s6400_s27 }
  0x21   :  { %s6415_s20 = sld [smem:[%s7346_s0 + %s6247_s15]]   ;;  %s6251_s15 = smov 23  }
  0x22   :  { %7391 = sst [smem:[#allocation73_spill]] %s6405_s4 }
  0x23   :  { %s6420_s12 = sld [smem:[%s7346_s0 + %s6248_s22]]   ;;  %s6252_s22 = smov 24  }
  0x24   :  { %s6425_s4 = sld [smem:[%s7346_s0 + %s6249_s28]]   ;;  %s6253_s28 = smov 25  }
  0x25   :  { %s6430_s19 = sld [smem:[%s7346_s0 + %s6250_s7]]   ;;  %s6254_s7 = smov 26  }
  0x26   :  { %s6445_s29 = sld [smem:[%s7346_s0 + %s6253_s28]]   ;;  %s6257_s28 = smov 29  }
  0x27   :  { %7392 = sst [smem:[#allocation74_spill]] %s6415_s20 }
  0x28   :  { %s6435_s20 = sld [smem:[%s7346_s0 + %s6251_s15]]   ;;  %s6255_s15 = smov 27  }
  0x29   :  { %7393 = sst [smem:[#allocation75_spill]] %s6420_s12 }
  0x2a   :  { %7394 = sst [smem:[#allocation76_spill]] %s6425_s4 }
  0x2b   :  { %s6440_s12 = sld [smem:[%s7346_s0 + %s6252_s22]]   ;;  %s6256_s22 = smov 28  }
  0x2c   :  { %7397 = sst [smem:[#allocation79_spill]] %s6445_s29 }
  0x2d   :  { %s6450_s14 = sld [smem:[%s7346_s0 + %s6254_s7]]   ;;  %s6258_s7 = smov 30  }
  0x2e   :  { %7395 = sst [smem:[#allocation77_spill]] %s6435_s20 }
  0x2f   :  { %s6455_s20 = sld [smem:[%s7346_s0 + %s6255_s15]]   ;;  %s6259_s15 = smov 31  }
  0x30   :  { %s6465_s29 = sld [smem:[%s7346_s0 + %s6257_s28]]   ;;  %s6261_s28 = smov 33  }
  0x31   :  { %7396 = sst [smem:[#allocation78_spill]] %s6440_s12 }
  0x32   :  { %s6460_s12 = sld [smem:[%s7346_s0 + %s6256_s22]]   ;;  %s6260_s22 = smov 32  }
  0x33   :  { %7398 = sst [smem:[#allocation80_spill]] %s6450_s14 }
  0x34   :  { %s6470_s25 = sld [smem:[%s7346_s0 + %s6258_s7]]   ;;  %s6262_s7 = smov 34  }
  0x35   :  { %s6475_s17 = sld [smem:[%s7346_s0 + %s6259_s15]]   ;;  %s6263_s15 = smov 35  }
  0x36   :  { %7400 = sst [smem:[#allocation82_spill]] %s6465_s29 }
  0x37   :  { %s6480_s13 = sld [smem:[%s7346_s0 + %s6260_s22]]   ;;  %s6264_s22 = smov 36  }
  0x38   :  { %7399 = sst [smem:[#allocation81_spill]] %s6460_s12 }
  0x39   :  { %s6485_s29 = sld [smem:[%s7346_s0 + %s6261_s28]]   ;;  %s6265_s28 = smov 37  }
  0x3a   :  { %7401 = sst [smem:[#allocation83_spill]] %s6470_s25 }
  0x3b   :  { %s6490_s25 = sld [smem:[%s7346_s0 + %s6262_s7]]   ;;  %s6266_s7 = smov 38  }
  0x3c   :  { %s6495_s9 = sld [smem:[%s7346_s0 + %s6263_s15]]   ;;  %s6267_s15 = smov 39  }
  0x3d   :  { %7402 = sst [smem:[#allocation84_spill]] %s6480_s13 }
  0x3e   :  { %s6500_s21 = sld [smem:[%s7346_s0 + %s6264_s22]]   ;;  %s6268_s22 = smov 40  }
  0x3f   :  { %7403 = sst [smem:[#allocation85_spill]] %s6485_s29 }
  0x40   :  { %s6505_s29 = sld [smem:[%s7346_s0 + %s6265_s28]]   ;;  %s6269_s28 = smov 41  }
  0x41   :  { %s6510_s5 = sld [smem:[%s7346_s0 + %s6266_s7]]   ;;  %s6270_s7 = smov 42  }
  0x42   :  { %7404 = sst [smem:[#allocation86_spill]] %s6495_s9 }
  0x43   :  { %s6515_s9 = sld [smem:[%s7346_s0 + %s6267_s15]]   ;;  %s6271_s15 = smov 43  }
  0x44   :  { %s6520_s13 = sld [smem:[%s7346_s0 + %s6268_s22]]   ;;  %s6272_s22 = smov 44  }
  0x45   :  { %s6530_s12 = sld [smem:[%s7346_s0 + %s6270_s7]]   ;;  %s6274_s7 = smov 46  }
  0x46   :  { %7405 = sst [smem:[#allocation87_spill]] %s6505_s29 }
  0x47   :  { %s6525_s29 = sld [smem:[%s7346_s0 + %s6269_s28]]   ;;  %s6273_s28 = smov 45  }
  0x48   :  { %s6540_s14 = sld [smem:[%s7346_s0 + %s6272_s22]]   ;;  %s6276_s22 = smov 48  }
  0x49   :  { %7406 = sst [smem:[#allocation88_spill]] %s6515_s9 }
  0x4a   :  { %s6535_s9 = sld [smem:[%s7346_s0 + %s6271_s15]]   ;;  %s6275_s15 = smov 47  }
  0x4b   :  { %s6550_s4 = sld [smem:[%s7346_s0 + %s6274_s7]]  }
  0x4c   :  { %s4308_s27 = sld [smem:[%s7346_s0 + %s6276_s22]]  }
  0x4d   :  { %7407 = sst [smem:[#allocation89_spill]] %s6525_s29 }
  0x4e   :  { %s6545_s29 = sld [smem:[%s7346_s0 + %s6273_s28]]  }
  0x50   :  { %7408 = sst [smem:[#allocation90_spill]] %s6535_s9 }
  0x51   :  { %s6555_s9 = sld [smem:[%s7346_s0 + %s6275_s15]]  }
  0x52   :  { %v104_v0 = vstv %s4308_s27 }
  0x53   :  { %105 = vst [vmem:[#allocation2] sm:$0x1] %v104_v0 }
  0x54   :  { %7409 = sst [smem:[#allocation91_spill]] %s6545_s29 }
  0x55   :  { %s6563_s29 = sld [smem:[%s7346_s0 + %s6277_s1]]  }
  0x56   :  { %106 = vsyncpa [#allocation4], 0 }
  0x57   :  { %107 = vsyncpa [#allocation7], 0 }
  0x58   :  { %108 = vsyncpa [#allocation10], 0 }
  0x59   :  { %109 = vsyncpa [#allocation13], 0 }
  0x5a   :  { %110 = vsyncpa [#allocation16], 0 }
  0x5b   :  { %111 = vsyncpa [#allocation19], 0 }
  0x5c   :  { %112 = vsyncpa [#allocation22], 0 }
  0x5d   :  { %113 = vsyncpa [#allocation25], 0 }
  0x5e   :  { %114 = vsyncpa [#allocation28], 0 }
  0x5f   :  { %115 = vsyncpa [#allocation31], 0 }
  0x60   :  { %116 = vsyncpa [#allocation34], 0 }
  0x61   :  { %117 = vsyncpa [#allocation37], 0 }
  0x62   :  { %118 = vsyncpa [#allocation40], 0 }
  0x63   :  { %119 = vsyncpa [#allocation43], 0 }
  0x64   :  { %120 = vsyncpa [#allocation5], 0  ;;  %s6278_s0 = smov [#allocation6]   ;;  %s6279_s7 = smov [#allocation9]  }
  0x65   :  { %s152_s27 = sshll.u32 %s6278_s0, 4  ;;  %s180_s10 = sshll.u32 %s6279_s7, 4  ;;  %s153_s27 = int_to_ptr.vmem [resolvable:$true] %s152_s27  ;;  %s6565_s10 = int_to_ptr.vmem [resolvable:$true] %s180_s10 }
  0x66   :  { %s5605_s11 = scalar_lea.hbm %s6360_s8, 384 }
  0x67   :  { %p5606_p0 = scmp.ne.s32.totalorder %s6360_s8, %s5605_s11  ;;  %p5609_p1 = scmp.lt.u32.totalorder %s5605_s11, %s6360_s8 }
  0x69   :  { %p5611_p2 = pnand %p5609_p1, %p5606_p0 }
  0x6b   :  { %5614 = shalt.err (!%p5611_p2)
}
  0x6c   :  { %s5615_s15 = scalar_lea.vmem %s153_s27, 384  ;;  %p5620_p4 = scmp.lt.s32.totalorder %s153_s27, %s153_s27 }
  0x6d   :  { %p5616_p3 = scmp.ne.s32.totalorder %s153_s27, %s5615_s15  ;;  %p5621_p5 = scmp.lt.s32.totalorder %s5615_s15, %s5615_s15 }
  0x6f   :  { %p5622_p6 = por %p5621_p5, %p5620_p4 }
  0x71   :  { %p5623_p7 = pnand %p5622_p6, %p5616_p3 }
  0x73   :  { %5626 = shalt.err (!%p5623_p7)
}
  0x74   :  { %s6280_s16 = smov 128   ;;  %s6281_s18 = smov 8  }
  0x75   :  { %158 = dma.hbm_to_vmem [thread:$0]  %s6360_s8, 384, %s153_s27, [#allocation7], %s6280_s16, %s6280_s16, %s6281_s18  }
  0x76   :  { %s5627_s22 = scalar_lea.hbm %s6380_s30, 384 }
  0x77   :  { %p5628_p8 = scmp.ne.s32.totalorder %s6380_s30, %s5627_s22  ;;  %p5631_p9 = scmp.lt.u32.totalorder %s5627_s22, %s6380_s30 }
  0x79   :  { %p5633_p10 = pnand %p5631_p9, %p5628_p8 }
  0x7b   :  { %5636 = shalt.err (!%p5633_p10)
}
  0x7c   :  { %s5637_s23 = scalar_lea.vmem %s6565_s10, 384  ;;  %p5642_p12 = scmp.lt.s32.totalorder %s6565_s10, %s6565_s10 }
  0x7d   :  { %p5638_p11 = scmp.ne.s32.totalorder %s6565_s10, %s5637_s23  ;;  %p5643_p13 = scmp.lt.s32.totalorder %s5637_s23, %s5637_s23 }
  0x7f   :  { %p5644_p0 = por %p5643_p13, %p5642_p12 }
  0x81   :  { %p5645_p1 = pnand %p5644_p0, %p5638_p11 }
  0x83   :  { %5648 = shalt.err (!%p5645_p1)
}
  0x84   :  { %186 = dma.hbm_to_vmem [thread:$0]  %s6380_s30, 384, %s6565_s10, [#allocation10], %s6280_s16, %s6280_s16, %s6281_s18  }
  0x85   :  { %s6282_s8 = smov [#allocation12]   ;;  %s6283_s1 = smov [#allocation15]  }
  0x86   :  { %s210_s26 = sshll.u32 %s6282_s8, 4  ;;  %s238_s28 = sshll.u32 %s6283_s1, 4  ;;  %s211_s26 = int_to_ptr.vmem [resolvable:$true] %s210_s26  ;;  %s6586_s28 = int_to_ptr.vmem [resolvable:$true] %s238_s28 }
  0x87   :  { %s5649_s2 = scalar_lea.hbm %s6410_s6, 256 }
  0x88   :  { %p5650_p2 = scmp.ne.s32.totalorder %s6410_s6, %s5649_s2  ;;  %p5653_p3 = scmp.lt.u32.totalorder %s5649_s2, %s6410_s6 }
  0x8a   :  { %p5655_p4 = pnand %p5653_p3, %p5650_p2 }
  0x8c   :  { %5658 = shalt.err (!%p5655_p4)
}
  0x8d   :  { %s5659_s0 = scalar_lea.vmem %s211_s26, 256  ;;  %p5664_p6 = scmp.lt.s32.totalorder %s211_s26, %s211_s26 }
  0x8e   :  { %p5660_p5 = scmp.ne.s32.totalorder %s211_s26, %s5659_s0  ;;  %p5665_p7 = scmp.lt.s32.totalorder %s5659_s0, %s5659_s0 }
  0x90   :  { %p5666_p8 = por %p5665_p7, %p5664_p6 }
  0x92   :  { %p5667_p9 = pnand %p5666_p8, %p5660_p5 }
  0x94   :  { %5670 = shalt.err (!%p5667_p9)
}
  0x95   :  { %216 = dma.hbm_to_vmem [thread:$0]  %s6410_s6, 256, %s211_s26, [#allocation13], %s6280_s16, %s6280_s16, %s6281_s18  }
  0x96   :  { %s5671_s30 = scalar_lea.hbm %s6430_s19, 256 }
  0x97   :  { %p5672_p10 = scmp.ne.s32.totalorder %s6430_s19, %s5671_s30  ;;  %p5675_p11 = scmp.lt.u32.totalorder %s5671_s30, %s6430_s19 }
  0x99   :  { %p5677_p12 = pnand %p5675_p11, %p5672_p10 }
  0x9b   :  { %5680 = shalt.err (!%p5677_p12)
}
  0x9c   :  { %s5681_s27 = scalar_lea.vmem %s6586_s28, 256  ;;  %p5686_p0 = scmp.lt.s32.totalorder %s6586_s28, %s6586_s28 }
  0x9d   :  { %p5682_p13 = scmp.ne.s32.totalorder %s6586_s28, %s5681_s27  ;;  %p5687_p1 = scmp.lt.s32.totalorder %s5681_s27, %s5681_s27 }
  0x9f   :  { %p5688_p2 = por %p5687_p1, %p5686_p0 }
  0xa1   :  { %p5689_p3 = pnand %p5688_p2, %p5682_p13 }
  0xa3   :  { %5692 = shalt.err (!%p5689_p3)
}
  0xa4   :  { %244 = dma.hbm_to_vmem [thread:$0]  %s6430_s19, 256, %s6586_s28, [#allocation16], %s6280_s16, %s6280_s16, %s6281_s18  }
  0xa5   :  { %s6284_s6 = smov [#allocation18]   ;;  %s6285_s10 = smov [#allocation21]  }
  0xa6   :  { %s267_s7 = sshll.u32 %s6284_s6, 4  ;;  %s291_s11 = sshll.u32 %s6285_s10, 4  ;;  %s268_s7 = int_to_ptr.vmem [resolvable:$true] %s267_s7  ;;  %s292_s11 = int_to_ptr.vmem [resolvable:$true] %s291_s11 }
  0xa7   :  { %s5693_s15 = scalar_lea.hbm %s6455_s20, 128 }
  0xa8   :  { %p5694_p4 = scmp.ne.s32.totalorder %s6455_s20, %s5693_s15  ;;  %p5697_p5 = scmp.lt.u32.totalorder %s5693_s15, %s6455_s20 }
  0xaa   :  { %p5699_p6 = pnand %p5697_p5, %p5694_p4 }
  0xac   :  { %5702 = shalt.err (!%p5699_p6)
}
  0xad   :  { %s5703_s22 = scalar_lea.vmem %s268_s7, 128  ;;  %p5708_p8 = scmp.lt.s32.totalorder %s268_s7, %s268_s7 }
  0xae   :  { %p5704_p7 = scmp.ne.s32.totalorder %s268_s7, %s5703_s22  ;;  %p5709_p9 = scmp.lt.s32.totalorder %s5703_s22, %s5703_s22 }
  0xb0   :  { %p5710_p10 = por %p5709_p9, %p5708_p8 }
  0xb2   :  { %p5711_p11 = pnand %p5710_p10, %p5704_p7 }
  0xb4   :  { %5714 = shalt.err (!%p5711_p11)
}
  0xb5   :  { %270 = dma.hbm_to_vmem [thread:$0]  %s6455_s20, 128, %s268_s7, [#allocation19]  }
  0xb6   :  { %s5715_s19 = scalar_lea.hbm %s6475_s17, 128 }
  0xb7   :  { %p5716_p12 = scmp.ne.s32.totalorder %s6475_s17, %s5715_s19  ;;  %p5719_p13 = scmp.lt.u32.totalorder %s5715_s19, %s6475_s17 }
  0xb9   :  { %p5721_p0 = pnand %p5719_p13, %p5716_p12 }
  0xbb   :  { %5724 = shalt.err (!%p5721_p0)
}
  0xbc   :  { %s5725_s23 = scalar_lea.vmem %s292_s11, 128  ;;  %p5730_p2 = scmp.lt.s32.totalorder %s292_s11, %s292_s11 }
  0xbd   :  { %p5726_p1 = scmp.ne.s32.totalorder %s292_s11, %s5725_s23  ;;  %p5731_p3 = scmp.lt.s32.totalorder %s5725_s23, %s5725_s23 }
  0xbf   :  { %p5732_p4 = por %p5731_p3, %p5730_p2 }
  0xc1   :  { %p5733_p5 = pnand %p5732_p4, %p5726_p1 }
  0xc3   :  { %5736 = shalt.err (!%p5733_p5)
}
  0xc4   :  { %294 = dma.hbm_to_vmem [thread:$0]  %s6475_s17, 128, %s292_s11, [#allocation22]  }
  0xc5   :  { %s6286_s8 = smov [#allocation24]   ;;  %s6287_s20 = smov [#allocation27]  }
  0xc6   :  { %s312_s26 = sshll.u32 %s6286_s8, 4  ;;  %s337_s1 = sshll.u32 %s6287_s20, 4  ;;  %s313_s26 = int_to_ptr.vmem [resolvable:$true] %s312_s26  ;;  %s338_s1 = int_to_ptr.vmem [resolvable:$true] %s337_s1 }
  0xc7   :  { %s5737_s28 = scalar_lea.hbm %s6490_s25, 512 }
  0xc8   :  { %p5738_p6 = scmp.ne.s32.totalorder %s6490_s25, %s5737_s28  ;;  %p5741_p7 = scmp.lt.u32.totalorder %s5737_s28, %s6490_s25 }
  0xca   :  { %p5743_p8 = pnand %p5741_p7, %p5738_p6 }
  0xcc   :  { %5746 = shalt.err (!%p5743_p8)
}
  0xcd   :  { %s5747_s2 = scalar_lea.vmem %s313_s26, 512  ;;  %p5752_p10 = scmp.lt.s32.totalorder %s313_s26, %s313_s26 }
  0xce   :  { %p5748_p9 = scmp.ne.s32.totalorder %s313_s26, %s5747_s2  ;;  %p5753_p11 = scmp.lt.s32.totalorder %s5747_s2, %s5747_s2 }
  0xd0   :  { %p5754_p12 = por %p5753_p11, %p5752_p10 }
  0xd2   :  { %p5755_p13 = pnand %p5754_p12, %p5748_p9 }
  0xd4   :  { %5758 = shalt.err (!%p5755_p13)
}
  0xd5   :  { %318 = dma.hbm_to_vmem [thread:$0]  %s6490_s25, 512, %s313_s26, [#allocation25], %s6280_s16, %s6280_s16, %s6281_s18  }
  0xd6   :  { %s5759_s17 = scalar_lea.hbm %s6500_s21, 16 }
  0xd7   :  { %p5760_p0 = scmp.ne.s32.totalorder %s6500_s21, %s5759_s17  ;;  %p5763_p1 = scmp.lt.u32.totalorder %s5759_s17, %s6500_s21 }
  0xd9   :  { %p5765_p2 = pnand %p5763_p1, %p5760_p0 }
  0xdb   :  { %5768 = shalt.err (!%p5765_p2)
}
  0xdc   :  { %s5769_s0 = scalar_lea.vmem %s338_s1, 16  ;;  %s5773_s30 = scalar_lea.vmem %s338_s1, 32 }
  0xdd   :  { %p5770_p3 = scmp.ne.s32.totalorder %s338_s1, %s5769_s0  ;;  %p5774_p4 = scmp.lt.s32.totalorder %s338_s1, %s338_s1 }
  0xde   :  { %p5775_p5 = scmp.lt.s32.totalorder %s5773_s30, %s5769_s0 }
  0xe0   :  { %p5776_p6 = por %p5775_p5, %p5774_p4 }
  0xe2   :  { %p5777_p7 = pnand %p5776_p6, %p5770_p3 }
  0xe4   :  { %5780 = shalt.err (!%p5777_p7)
}
  0xe5   :  { %340 = dma.hbm_to_vmem [thread:$0]  %s6500_s21, 16, %s338_s1, [#allocation28]  }
  0xe6   :  { %s6288_s27 = smov [#allocation30]   ;;  %s6289_s6 = smov [#allocation33]  }
  0xe7   :  { %s357_s25 = sshll.u32 %s6288_s27, 4  ;;  %s378_s7 = sshll.u32 %s6289_s6, 4  ;;  %s358_s25 = int_to_ptr.vmem [resolvable:$true] %s357_s25  ;;  %s6626_s7 = int_to_ptr.vmem [resolvable:$true] %s378_s7 }
  0xe8   :  { %s5781_s10 = scalar_lea.hbm %s6510_s5, 32 }
  0xe9   :  { %p5782_p8 = scmp.ne.s32.totalorder %s6510_s5, %s5781_s10  ;;  %p5785_p9 = scmp.lt.u32.totalorder %s5781_s10, %s6510_s5 }
  0xeb   :  { %p5787_p10 = pnand %p5785_p9, %p5782_p8 }
  0xed   :  { %5790 = shalt.err (!%p5787_p10)
}
  0xee   :  { %s5791_s11 = scalar_lea.vmem %s358_s25, 32  ;;  %p5796_p12 = scmp.lt.s32.totalorder %s358_s25, %s358_s25 }
  0xef   :  { %p5792_p11 = scmp.ne.s32.totalorder %s358_s25, %s5791_s11  ;;  %p5797_p13 = scmp.lt.s32.totalorder %s5791_s11, %s5791_s11 }
  0xf1   :  { %p5798_p0 = por %p5797_p13, %p5796_p12 }
  0xf3   :  { %p5799_p1 = pnand %p5798_p0, %p5792_p11 }
  0xf5   :  { %5802 = shalt.err (!%p5799_p1)
}
  0xf6   :  { %360 = dma.hbm_to_vmem [thread:$0]  %s6510_s5, 32, %s358_s25, [#allocation31]  }
  0xf7   :  { %s5803_s21 = scalar_lea.hbm %s6520_s13, 512 }
  0xf8   :  { %p5804_p2 = scmp.ne.s32.totalorder %s6520_s13, %s5803_s21  ;;  %p5807_p3 = scmp.lt.u32.totalorder %s5803_s21, %s6520_s13 }
  0xfa   :  { %p5809_p4 = pnand %p5807_p3, %p5804_p2 }
  0xfc   :  { %5812 = shalt.err (!%p5809_p4)
}
  0xfd   :  { %s5813_s15 = scalar_lea.vmem %s6626_s7, 512  ;;  %p5818_p6 = scmp.lt.s32.totalorder %s6626_s7, %s6626_s7 }
  0xfe   :  { %p5814_p5 = scmp.ne.s32.totalorder %s6626_s7, %s5813_s15  ;;  %p5819_p7 = scmp.lt.s32.totalorder %s5813_s15, %s5813_s15 }
 0x100   :  { %p5820_p8 = por %p5819_p7, %p5818_p6 }
 0x102   :  { %p5821_p9 = pnand %p5820_p8, %p5814_p5 }
 0x104   :  { %5824 = shalt.err (!%p5821_p9)
}
 0x105   :  { %384 = dma.hbm_to_vmem [thread:$0]  %s6520_s13, 512, %s6626_s7, [#allocation34], %s6280_s16, %s6280_s16, %s6281_s18  }
 0x106   :  { %s6290_s5 = smov [#allocation36]   ;;  %s6291_s19 = smov [#allocation39]  }
 0x107   :  { %s400_s22 = sshll.u32 %s6290_s5, 4  ;;  %s425_s23 = sshll.u32 %s6291_s19, 4  ;;  %s401_s22 = int_to_ptr.vmem [resolvable:$true] %s400_s22  ;;  %s426_s23 = int_to_ptr.vmem [resolvable:$true] %s425_s23 }
 0x108   :  { %s5825_s8 = scalar_lea.hbm %s6530_s12, 512 }
 0x109   :  { %p5826_p10 = scmp.ne.s32.totalorder %s6530_s12, %s5825_s8  ;;  %p5829_p11 = scmp.lt.u32.totalorder %s5825_s8, %s6530_s12 }
 0x10b   :  { %p5831_p12 = pnand %p5829_p11, %p5826_p10 }
 0x10d   :  { %5834 = shalt.err (!%p5831_p12)
}
 0x10e   :  { %s5835_s26 = scalar_lea.vmem %s401_s22, 512  ;;  %p5840_p0 = scmp.lt.s32.totalorder %s401_s22, %s401_s22 }
 0x10f   :  { %p5836_p13 = scmp.ne.s32.totalorder %s401_s22, %s5835_s26  ;;  %p5841_p1 = scmp.lt.s32.totalorder %s5835_s26, %s5835_s26 }
 0x111   :  { %p5842_p2 = por %p5841_p1, %p5840_p0 }
 0x113   :  { %p5843_p3 = pnand %p5842_p2, %p5836_p13 }
 0x115   :  { %5846 = shalt.err (!%p5843_p3)
}
 0x116   :  { %406 = dma.hbm_to_vmem [thread:$0]  %s6530_s12, 512, %s401_s22, [#allocation37], %s6280_s16, %s6280_s16, %s6281_s18  }
 0x117   :  { %s5847_s13 = scalar_lea.hbm %s6540_s14, 16 }
 0x118   :  { %p5848_p4 = scmp.ne.s32.totalorder %s6540_s14, %s5847_s13  ;;  %p5851_p5 = scmp.lt.u32.totalorder %s5847_s13, %s6540_s14 }
 0x11a   :  { %p5853_p6 = pnand %p5851_p5, %p5848_p4 }
 0x11c   :  { %5856 = shalt.err (!%p5853_p6)
}
 0x11d   :  { %s5857_s20 = scalar_lea.vmem %s426_s23, 16  ;;  %s5861_s1 = scalar_lea.vmem %s426_s23, 32 }
 0x11e   :  { %p5858_p7 = scmp.ne.s32.totalorder %s426_s23, %s5857_s20  ;;  %p5862_p8 = scmp.lt.s32.totalorder %s426_s23, %s426_s23 }
 0x11f   :  { %p5863_p9 = scmp.lt.s32.totalorder %s5861_s1, %s5857_s20 }
 0x121   :  { %p5864_p10 = por %p5863_p9, %p5862_p8 }
 0x123   :  { %p5865_p11 = pnand %p5864_p10, %p5858_p7 }
 0x125   :  { %5868 = shalt.err (!%p5865_p11)
}
 0x126   :  { %428 = dma.hbm_to_vmem [thread:$0]  %s6540_s14, 16, %s426_s23, [#allocation40]  }
 0x127   :  { %s6292_s28 = smov [#allocation3]   ;;  %s6293_s2 = smov [#allocation8]  }
 0x128   :  { %s140_s12 = sshll.u32 %s6292_s28, 4  ;;  %s168_s17 = sshll.u32 %s6293_s2, 4  ;;  %s141_s12 = int_to_ptr.vmem [resolvable:$true] %s140_s12  ;;  %s6655_s17 = int_to_ptr.vmem [resolvable:$true] %s168_s17 }
 0x129   :  { %s5869_s0 = scalar_lea.hbm %s6355_s3, 384 }
 0x12a   :  { %p5870_p12 = scmp.ne.s32.totalorder %s6355_s3, %s5869_s0  ;;  %p5873_p13 = scmp.lt.u32.totalorder %s5869_s0, %s6355_s3 }
 0x12c   :  { %p5875_p0 = pnand %p5873_p13, %p5870_p12 }
 0x12e   :  { %5878 = shalt.err (!%p5875_p0)
}
 0x12f   :  { %s5879_s30 = scalar_lea.vmem %s141_s12, 384  ;;  %p5884_p2 = scmp.lt.s32.totalorder %s141_s12, %s141_s12 }
 0x130   :  { %p5880_p1 = scmp.ne.s32.totalorder %s141_s12, %s5879_s30  ;;  %p5885_p3 = scmp.lt.s32.totalorder %s5879_s30, %s5879_s30 }
 0x132   :  { %p5886_p4 = por %p5885_p3, %p5884_p2 }
 0x134   :  { %p5887_p5 = pnand %p5886_p4, %p5880_p1 }
 0x136   :  { %5890 = shalt.err (!%p5887_p5)
}
 0x137   :  { %146 = dma.hbm_to_vmem [thread:$0]  %s6355_s3, 384, %s141_s12, [#allocation4], %s6280_s16, %s6280_s16, %s6281_s18  }
 0x138   :  { %s5891_s14 = scalar_lea.hbm %s6375_s24, 384 }
 0x139   :  { %p5892_p6 = scmp.ne.s32.totalorder %s6375_s24, %s5891_s14  ;;  %p5895_p7 = scmp.lt.u32.totalorder %s5891_s14, %s6375_s24 }
 0x13b   :  { %p5897_p8 = pnand %p5895_p7, %p5892_p6 }
 0x13d   :  { %5900 = shalt.err (!%p5897_p8)
}
 0x13e   :  { %s5901_s27 = scalar_lea.vmem %s6655_s17, 384  ;;  %p5906_p10 = scmp.lt.s32.totalorder %s6655_s17, %s6655_s17 }
 0x13f   :  { %p5902_p9 = scmp.ne.s32.totalorder %s6655_s17, %s5901_s27  ;;  %p5907_p11 = scmp.lt.s32.totalorder %s5901_s27, %s5901_s27 }
 0x141   :  { %p5908_p12 = por %p5907_p11, %p5906_p10 }
 0x143   :  { %p5909_p13 = pnand %p5908_p12, %p5902_p9 }
 0x145   :  { %5912 = shalt.err (!%p5909_p13)
}
 0x146   :  { %s7410_s3 = sld [smem:[#allocation72_spill]]  ;;  %s6294_s25 = smov [#allocation11]  }
 0x147   :  { %174 = dma.hbm_to_vmem [thread:$0]  %s6375_s24, 384, %s6655_s17, [#allocation7], %s6280_s16, %s6280_s16, %s6281_s18  }
 0x148   :  { %s199_s6 = sshll.u32 %s6294_s25, 4  ;;  %s6295_s7 = smov [#allocation14]   ;;  %s200_s6 = int_to_ptr.vmem [resolvable:$true] %s199_s6 }
 0x149   :  { %s226_s10 = sshll.u32 %s6295_s7, 4  ;;  %s6676_s10 = int_to_ptr.vmem [resolvable:$true] %s226_s10 }
 0x14c   :  { %s5913_s11 = scalar_lea.hbm %s7410_s3, 16 }
 0x14d   :  { %p5914_p0 = scmp.ne.s32.totalorder %s7410_s3, %s5913_s11  ;;  %p5917_p1 = scmp.lt.u32.totalorder %s5913_s11, %s7410_s3 }
 0x14f   :  { %p5919_p2 = pnand %p5917_p1, %p5914_p0 }
 0x151   :  { %5922 = shalt.err (!%p5919_p2)
}
 0x152   :  { %s5923_s21 = scalar_lea.vmem %s200_s6, 16  ;;  %s5927_s15 = scalar_lea.vmem %s200_s6, 32 }
 0x153   :  { %p5924_p3 = scmp.ne.s32.totalorder %s200_s6, %s5923_s21  ;;  %p5928_p4 = scmp.lt.s32.totalorder %s200_s6, %s200_s6 }
 0x154   :  { %p5929_p5 = scmp.lt.s32.totalorder %s5927_s15, %s5923_s21 }
 0x156   :  { %p5930_p6 = por %p5929_p5, %p5928_p4 }
 0x158   :  { %p5931_p7 = pnand %p5930_p6, %p5924_p3 }
 0x15a   :  { %5934 = shalt.err (!%p5931_p7)
}
 0x15b   :  { %s7411_s24 = sld [smem:[#allocation76_spill]] }
 0x15c   :  { %202 = dma.hbm_to_vmem [thread:$0]  %s7410_s3, 16, %s200_s6, [#allocation10]  }
 0x161   :  { %s5935_s5 = scalar_lea.hbm %s7411_s24, 256 }
 0x162   :  { %p5936_p8 = scmp.ne.s32.totalorder %s7411_s24, %s5935_s5  ;;  %p5939_p9 = scmp.lt.u32.totalorder %s5935_s5, %s7411_s24 }
 0x164   :  { %p5941_p10 = pnand %p5939_p9, %p5936_p8 }
 0x166   :  { %5944 = shalt.err (!%p5941_p10)
}
 0x167   :  { %s5945_s22 = scalar_lea.vmem %s6676_s10, 256  ;;  %p5950_p12 = scmp.lt.s32.totalorder %s6676_s10, %s6676_s10 }
 0x168   :  { %p5946_p11 = scmp.ne.s32.totalorder %s6676_s10, %s5945_s22  ;;  %p5951_p13 = scmp.lt.s32.totalorder %s5945_s22, %s5945_s22 }
 0x16a   :  { %p5952_p0 = por %p5951_p13, %p5950_p12 }
 0x16c   :  { %p5953_p1 = pnand %p5952_p0, %p5946_p11 }
 0x16e   :  { %5956 = shalt.err (!%p5953_p1)
}
 0x16f   :  { %s7412_s19 = sld [smem:[#allocation80_spill]]  ;;  %s6296_s23 = smov [#allocation17]  }
 0x170   :  { %232 = dma.hbm_to_vmem [thread:$0]  %s7411_s24, 256, %s6676_s10, [#allocation13], %s6280_s16, %s6280_s16, %s6281_s18  }
 0x171   :  { %s257_s8 = sshll.u32 %s6296_s23, 4  ;;  %s6297_s26 = smov [#allocation20]   ;;  %s258_s8 = int_to_ptr.vmem [resolvable:$true] %s257_s8 }
 0x172   :  { %s277_s13 = sshll.u32 %s6297_s26, 4  ;;  %s278_s13 = int_to_ptr.vmem [resolvable:$true] %s277_s13 }
 0x175   :  { %s5957_s20 = scalar_lea.hbm %s7412_s19, 16 }
 0x176   :  { %p5958_p2 = scmp.ne.s32.totalorder %s7412_s19, %s5957_s20  ;;  %p5961_p3 = scmp.lt.u32.totalorder %s5957_s20, %s7412_s19 }
 0x178   :  { %p5963_p4 = pnand %p5961_p3, %p5958_p2 }
 0x17a   :  { %5966 = shalt.err (!%p5963_p4)
}
 0x17b   :  { %s5967_s1 = scalar_lea.vmem %s258_s8, 16  ;;  %s5971_s28 = scalar_lea.vmem %s258_s8, 32 }
 0x17c   :  { %p5968_p5 = scmp.ne.s32.totalorder %s258_s8, %s5967_s1  ;;  %p5972_p6 = scmp.lt.s32.totalorder %s258_s8, %s258_s8 }
 0x17d   :  { %p5973_p7 = scmp.lt.s32.totalorder %s5971_s28, %s5967_s1 }
 0x17f   :  { %p5974_p8 = por %p5973_p7, %p5972_p6 }
 0x181   :  { %p5975_p9 = pnand %p5974_p8, %p5968_p5 }
 0x183   :  { %5978 = shalt.err (!%p5975_p9)
}
 0x184   :  { %s7413_s12 = sld [smem:[#allocation81_spill]] }
 0x185   :  { %260 = dma.hbm_to_vmem [thread:$0]  %s7412_s19, 16, %s258_s8, [#allocation16]  }
 0x18a   :  { %s5979_s2 = scalar_lea.hbm %s7413_s12, 128 }
 0x18b   :  { %p5980_p10 = scmp.ne.s32.totalorder %s7413_s12, %s5979_s2  ;;  %p5983_p11 = scmp.lt.u32.totalorder %s5979_s2, %s7413_s12 }
 0x18d   :  { %p5985_p12 = pnand %p5983_p11, %p5980_p10 }
 0x18f   :  { %5988 = shalt.err (!%p5985_p12)
}
 0x190   :  { %s5989_s17 = scalar_lea.vmem %s278_s13, 128  ;;  %p5994_p0 = scmp.lt.s32.totalorder %s278_s13, %s278_s13 }
 0x191   :  { %p5990_p13 = scmp.ne.s32.totalorder %s278_s13, %s5989_s17  ;;  %p5995_p1 = scmp.lt.s32.totalorder %s5989_s17, %s5989_s17 }
 0x193   :  { %p5996_p2 = por %p5995_p1, %p5994_p0 }
 0x195   :  { %p5997_p3 = pnand %p5996_p2, %p5990_p13 }
 0x197   :  { %6000 = shalt.err (!%p5997_p3)
}
 0x198   :  { %s7414_s0 = sld [smem:[#allocation84_spill]]  ;;  %s6298_s30 = smov [#allocation23]  }
 0x199   :  { %280 = dma.hbm_to_vmem [thread:$0]  %s7413_s12, 128, %s278_s13, [#allocation19]  }
 0x19a   :  { %s301_s14 = sshll.u32 %s6298_s30, 4  ;;  %s6299_s27 = smov [#allocation26]   ;;  %s302_s14 = int_to_ptr.vmem [resolvable:$true] %s301_s14 }
 0x19b   :  { %s324_s3 = sshll.u32 %s6299_s27, 4  ;;  %s6702_s3 = int_to_ptr.vmem [resolvable:$true] %s324_s3 }
 0x19e   :  { %s6001_s25 = scalar_lea.hbm %s7414_s0, 128 }
 0x19f   :  { %p6002_p4 = scmp.ne.s32.totalorder %s7414_s0, %s6001_s25  ;;  %p6005_p5 = scmp.lt.u32.totalorder %s6001_s25, %s7414_s0 }
 0x1a1   :  { %p6007_p6 = pnand %p6005_p5, %p6002_p4 }
 0x1a3   :  { %6010 = shalt.err (!%p6007_p6)
}
 0x1a4   :  { %s6011_s6 = scalar_lea.vmem %s302_s14, 128  ;;  %p6016_p8 = scmp.lt.s32.totalorder %s302_s14, %s302_s14 }
 0x1a5   :  { %p6012_p7 = scmp.ne.s32.totalorder %s302_s14, %s6011_s6  ;;  %p6017_p9 = scmp.lt.s32.totalorder %s6011_s6, %s6011_s6 }
 0x1a7   :  { %p6018_p10 = por %p6017_p9, %p6016_p8 }
 0x1a9   :  { %p6019_p11 = pnand %p6018_p10, %p6012_p7 }
 0x1ab   :  { %6022 = shalt.err (!%p6019_p11)
}
 0x1ac   :  { %s7415_s7 = sld [smem:[#allocation86_spill]] }
 0x1ad   :  { %304 = dma.hbm_to_vmem [thread:$0]  %s7414_s0, 128, %s302_s14, [#allocation22]  }
 0x1b2   :  { %s6023_s10 = scalar_lea.hbm %s7415_s7, 512 }
 0x1b3   :  { %p6024_p12 = scmp.ne.s32.totalorder %s7415_s7, %s6023_s10  ;;  %p6027_p13 = scmp.lt.u32.totalorder %s6023_s10, %s7415_s7 }
 0x1b5   :  { %p6029_p0 = pnand %p6027_p13, %p6024_p12 }
 0x1b7   :  { %6032 = shalt.err (!%p6029_p0)
}
 0x1b8   :  { %s6033_s11 = scalar_lea.vmem %s6702_s3, 512  ;;  %p6038_p2 = scmp.lt.s32.totalorder %s6702_s3, %s6702_s3 }
 0x1b9   :  { %p6034_p1 = scmp.ne.s32.totalorder %s6702_s3, %s6033_s11  ;;  %p6039_p3 = scmp.lt.s32.totalorder %s6033_s11, %s6033_s11 }
 0x1bb   :  { %p6040_p4 = por %p6039_p3, %p6038_p2 }
 0x1bd   :  { %p6041_p5 = pnand %p6040_p4, %p6034_p1 }
 0x1bf   :  { %6044 = shalt.err (!%p6041_p5)
}
 0x1c0   :  { %s7416_s21 = sld [smem:[#allocation87_spill]]  ;;  %s6300_s15 = smov [#allocation29]  }
 0x1c1   :  { %330 = dma.hbm_to_vmem [thread:$0]  %s7415_s7, 512, %s6702_s3, [#allocation25], %s6280_s16, %s6280_s16, %s6281_s18  }
 0x1c2   :  { %s347_s24 = sshll.u32 %s6300_s15, 4  ;;  %s6301_s5 = smov [#allocation32]   ;;  %s348_s24 = int_to_ptr.vmem [resolvable:$true] %s347_s24 }
 0x1c3   :  { %s366_s22 = sshll.u32 %s6301_s5, 4  ;;  %s6720_s22 = int_to_ptr.vmem [resolvable:$true] %s366_s22 }
 0x1c6   :  { %s6045_s19 = scalar_lea.hbm %s7416_s21, 32 }
 0x1c7   :  { %p6046_p6 = scmp.ne.s32.totalorder %s7416_s21, %s6045_s19  ;;  %p6049_p7 = scmp.lt.u32.totalorder %s6045_s19, %s7416_s21 }
 0x1c9   :  { %p6051_p8 = pnand %p6049_p7, %p6046_p6 }
 0x1cb   :  { %6054 = shalt.err (!%p6051_p8)
}
 0x1cc   :  { %s6055_s23 = scalar_lea.vmem %s348_s24, 32  ;;  %p6060_p10 = scmp.lt.s32.totalorder %s348_s24, %s348_s24 }
 0x1cd   :  { %p6056_p9 = scmp.ne.s32.totalorder %s348_s24, %s6055_s23  ;;  %p6061_p11 = scmp.lt.s32.totalorder %s6055_s23, %s6055_s23 }
 0x1cf   :  { %p6062_p12 = por %p6061_p11, %p6060_p10 }
 0x1d1   :  { %p6063_p13 = pnand %p6062_p12, %p6056_p9 }
 0x1d3   :  { %6066 = shalt.err (!%p6063_p13)
}
 0x1d4   :  { %s7417_s8 = sld [smem:[#allocation88_spill]] }
 0x1d5   :  { %350 = dma.hbm_to_vmem [thread:$0]  %s7416_s21, 32, %s348_s24, [#allocation28]  }
 0x1da   :  { %s6067_s26 = scalar_lea.hbm %s7417_s8, 512 }
 0x1db   :  { %p6068_p0 = scmp.ne.s32.totalorder %s7417_s8, %s6067_s26  ;;  %p6071_p1 = scmp.lt.u32.totalorder %s6067_s26, %s7417_s8 }
 0x1dd   :  { %p6073_p2 = pnand %p6071_p1, %p6068_p0 }
 0x1df   :  { %6076 = shalt.err (!%p6073_p2)
}
 0x1e0   :  { %s6077_s13 = scalar_lea.vmem %s6720_s22, 512  ;;  %p6082_p4 = scmp.lt.s32.totalorder %s6720_s22, %s6720_s22 }
 0x1e1   :  { %p6078_p3 = scmp.ne.s32.totalorder %s6720_s22, %s6077_s13  ;;  %p6083_p5 = scmp.lt.s32.totalorder %s6077_s13, %s6077_s13 }
 0x1e3   :  { %p6084_p6 = por %p6083_p5, %p6082_p4 }
 0x1e5   :  { %p6085_p7 = pnand %p6084_p6, %p6078_p3 }
 0x1e7   :  { %6088 = shalt.err (!%p6085_p7)
}
 0x1e8   :  { %s7418_s20 = sld [smem:[#allocation89_spill]]  ;;  %s6302_s1 = smov [#allocation35]  }
 0x1e9   :  { %372 = dma.hbm_to_vmem [thread:$0]  %s7417_s8, 512, %s6720_s22, [#allocation31], %s6280_s16, %s6280_s16, %s6281_s18  }
 0x1ea   :  { %s391_s28 = sshll.u32 %s6302_s1, 4  ;;  %s6303_s12 = smov [#allocation38]   ;;  %s392_s28 = int_to_ptr.vmem [resolvable:$true] %s391_s28 }
 0x1eb   :  { %s412_s2 = sshll.u32 %s6303_s12, 4  ;;  %s6738_s2 = int_to_ptr.vmem [resolvable:$true] %s412_s2 }
 0x1ee   :  { %s6089_s17 = scalar_lea.hbm %s7418_s20, 16 }
 0x1ef   :  { %p6090_p8 = scmp.ne.s32.totalorder %s7418_s20, %s6089_s17  ;;  %p6093_p9 = scmp.lt.u32.totalorder %s6089_s17, %s7418_s20 }
 0x1f1   :  { %p6095_p10 = pnand %p6093_p9, %p6090_p8 }
 0x1f3   :  { %6098 = shalt.err (!%p6095_p10)
}
 0x1f4   :  { %s6099_s0 = scalar_lea.vmem %s392_s28, 16  ;;  %s6103_s30 = scalar_lea.vmem %s392_s28, 32 }
 0x1f5   :  { %p6100_p11 = scmp.ne.s32.totalorder %s392_s28, %s6099_s0  ;;  %p6104_p12 = scmp.lt.s32.totalorder %s392_s28, %s392_s28 }
 0x1f6   :  { %p6105_p13 = scmp.lt.s32.totalorder %s6103_s30, %s6099_s0 }
 0x1f8   :  { %p6106_p0 = por %p6105_p13, %p6104_p12 }
 0x1fa   :  { %p6107_p1 = pnand %p6106_p0, %p6100_p11 }
 0x1fc   :  { %6110 = shalt.err (!%p6107_p1)
}
 0x1fd   :  { %s7419_s14 = sld [smem:[#allocation90_spill]] }
 0x1fe   :  { %394 = dma.hbm_to_vmem [thread:$0]  %s7418_s20, 16, %s392_s28, [#allocation34]  }
 0x203   :  { %s6111_s27 = scalar_lea.hbm %s7419_s14, 512 }
 0x204   :  { %p6112_p2 = scmp.ne.s32.totalorder %s7419_s14, %s6111_s27  ;;  %p6115_p3 = scmp.lt.u32.totalorder %s6111_s27, %s7419_s14 }
 0x206   :  { %p6117_p4 = pnand %p6115_p3, %p6112_p2 }
 0x208   :  { %6120 = shalt.err (!%p6117_p4)
}
 0x209   :  { %s6121_s3 = scalar_lea.vmem %s6738_s2, 512  ;;  %p6126_p6 = scmp.lt.s32.totalorder %s6738_s2, %s6738_s2 }
 0x20a   :  { %p6122_p5 = scmp.ne.s32.totalorder %s6738_s2, %s6121_s3  ;;  %p6127_p7 = scmp.lt.s32.totalorder %s6121_s3, %s6121_s3 }
 0x20c   :  { %p6128_p8 = por %p6127_p7, %p6126_p6 }
 0x20e   :  { %p6129_p9 = pnand %p6128_p8, %p6122_p5 }
 0x210   :  { %6132 = shalt.err (!%p6129_p9)
}
 0x211   :  { %418 = dma.hbm_to_vmem [thread:$0]  %s7419_s14, 512, %s6738_s2, [#allocation37], %s6280_s16, %s6280_s16, %s6281_s18  }
 0x212   :  { %s6304_s25 = smov [#allocation41]   ;;  %s6305_s7 = smov [#allocation42]  }
 0x213   :  { %s437_s6 = sshll.u32 %s6304_s25, 4  ;;  %s447_s10 = sshll.u32 %s6305_s7, 4  ;;  %s438_s6 = int_to_ptr.vmem [resolvable:$true] %s437_s6  ;;  %s448_s10 = int_to_ptr.vmem [resolvable:$true] %s447_s10 }
 0x214   :  { %s6133_s11 = scalar_lea.hbm %s6550_s4, 16 }
 0x215   :  { %p6134_p10 = scmp.ne.s32.totalorder %s6550_s4, %s6133_s11  ;;  %p6137_p11 = scmp.lt.u32.totalorder %s6133_s11, %s6550_s4 }
 0x217   :  { %p6139_p12 = pnand %p6137_p11, %p6134_p10 }
 0x219   :  { %6142 = shalt.err (!%p6139_p12)
}
 0x21a   :  { %s6143_s21 = scalar_lea.vmem %s438_s6, 16  ;;  %s6147_s15 = scalar_lea.vmem %s438_s6, 32 }
 0x21b   :  { %p6144_p13 = scmp.ne.s32.totalorder %s438_s6, %s6143_s21  ;;  %p6148_p0 = scmp.lt.s32.totalorder %s438_s6, %s438_s6 }
 0x21c   :  { %p6149_p1 = scmp.lt.s32.totalorder %s6147_s15, %s6143_s21 }
 0x21e   :  { %p6150_p2 = por %p6149_p1, %p6148_p0 }
 0x220   :  { %p6151_p3 = pnand %p6150_p2, %p6144_p13 }
 0x222   :  { %6154 = shalt.err (!%p6151_p3)
}
 0x223   :  { %440 = dma.hbm_to_vmem [thread:$0]  %s6550_s4, 16, %s438_s6, [#allocation40]  }
 0x224   :  { %s6155_s16 = scalar_lea.hbm %s6555_s9, 16 }
 0x225   :  { %p6156_p4 = scmp.ne.s32.totalorder %s6555_s9, %s6155_s16  ;;  %p6159_p5 = scmp.lt.u32.totalorder %s6155_s16, %s6555_s9 }
 0x227   :  { %p6161_p6 = pnand %p6159_p5, %p6156_p4 }
 0x229   :  { %6164 = shalt.err (!%p6161_p6)
}
 0x22a   :  { %s6165_s18 = scalar_lea.vmem %s448_s10, 16  ;;  %s6169_s24 = scalar_lea.vmem %s448_s10, 32 }
 0x22b   :  { %p6166_p7 = scmp.ne.s32.totalorder %s448_s10, %s6165_s18  ;;  %p6170_p8 = scmp.lt.s32.totalorder %s448_s10, %s448_s10 }
 0x22c   :  { %p6171_p9 = scmp.lt.s32.totalorder %s6169_s24, %s6165_s18 }
 0x22e   :  { %p6172_p10 = por %p6171_p9, %p6170_p8 }
 0x230   :  { %p6173_p11 = pnand %p6172_p10, %p6166_p7 }
 0x232   :  { %6176 = shalt.err (!%p6173_p11)
}
 0x233   :  { %450 = dma.hbm_to_vmem [thread:$0]  %s6555_s9, 16, %s448_s10, [#allocation43]  }
 0x234   :  { %6199 = dma.done.wait [#allocation4], 384  }
 0x235   :  { %6200 = vsyncadd [#allocation4], 4294966912 }
 0x236   :  { %6201 = dma.done.wait [#allocation7], 768  }
 0x237   :  { %6202 = vsyncadd [#allocation7], 4294966528 }
 0x238   :  { %6203 = dma.done.wait [#allocation10], 400  }
 0x239   :  { %6204 = vsyncadd [#allocation10], 4294966896 }
 0x23a   :  { %6205 = dma.done.wait [#allocation13], 512  }
 0x23b   :  { %6206 = vsyncadd [#allocation13], 4294966784 }
 0x23c   :  { %6207 = dma.done.wait [#allocation16], 272  }
 0x23d   :  { %6208 = vsyncadd [#allocation16], 4294967024 }
 0x23e   :  { %6209 = dma.done.wait [#allocation19], 256  }
 0x23f   :  { %6210 = vsyncadd [#allocation19], 4294967040 }
 0x240   :  { %6211 = dma.done.wait [#allocation22], 256  }
 0x241   :  { %6212 = vsyncadd [#allocation22], 4294967040 }
 0x242   :  { %6213 = dma.done.wait [#allocation25], 1024  }
 0x243   :  { %6214 = vsyncadd [#allocation25], 4294966272 }
 0x244   :  { %6215 = dma.done.wait [#allocation28], 48  }
 0x245   :  { %6216 = vsyncadd [#allocation28], 4294967248 }
 0x246   :  { %6217 = dma.done.wait [#allocation31], 544  }
 0x247   :  { %6218 = vsyncadd [#allocation31], 4294966752 }
 0x248   :  { %6219 = dma.done.wait [#allocation34], 528  }
 0x249   :  { %6220 = vsyncadd [#allocation34], 4294966768 }
 0x24a   :  { %6221 = dma.done.wait [#allocation37], 1024  }
 0x24b   :  { %6222 = vsyncadd [#allocation37], 4294966272 }
 0x24c   :  { %6223 = dma.done.wait [#allocation40], 32  }
 0x24d   :  { %6224 = vsyncadd [#allocation40], 4294967264 }
 0x24e   :  { %6225 = dma.done.wait [#allocation43], 16  }
 0x24f   :  { %6226 = vsyncadd [#allocation43], 4294967280  ;;  %s7420_s9 = sld [smem:[#allocation60_spill]]  ;;  %v6306_v1 = vmov 0.0|0.0   ;;  %vm6307_vm0 = vmmov 0   ;;  %v6308_v2 = vmov 0.0  }
 0x250   :  { %5159 = vmatprep.subr.bf16.mxu0 %v6306_v1  ;;  %s7421_s4 = sld [smem:[#allocation64_spill]]  ;;  %4669 = vmatprep.mubr.msk.f32.mxu0 %vm6307_vm0, %v6308_v2  ;;  %s7422_s5 = sld [smem:[#allocation61_spill]]  ;;  %vm557_vm1 = vcmask 1043456   ;;  %vm541_vm2 = vcmask 293888   ;;  %vm804_vm3 = vcmask 1045504   ;;  %vm789_vm4 = vcmask 441344  }
 0x251   :  { %5165 = vmatprep.subr.bf16.mxu1 %v6306_v1  ;;  %4694 = vmatprep.mubr.msk.f32.mxu1 %vm6307_vm0, %v6308_v2  ;;  %s7423_s22 = sld [smem:[#allocation62_spill]]  ;;  %s7424_s19 = sld [smem:[#allocation63_spill]]  ;;  %vm1212_vm5 = vcmask 130048   ;;  %vm1624_vm6 = vcmask 162816   ;;  %vm1829_vm7 = vcmask 654336   ;;  %vm2487_vm8 = vcmask 97280  }
 0x252   :  { %s7425_s23 = sld [smem:[#allocation65_spill]]  ;;  %s7426_s8 = sld [smem:[#allocation67_spill]]  ;;  %vm6309_vm9 = vmmov 1   ;;  %vm2667_vm11 = vcmask 392192   ;;  %vm3252_vm12 = vcmask 64512   ;;  %vm3408_vm13 = vcmask 261120  }
 0x253   :  { %s7427_s26 = sld [smem:[#allocation66_spill]]  ;;  %s7428_s13 = sld [smem:[#allocation68_spill]]  ;;  %vm7209_vm10 = vmpackc.low %vm557_vm1, %vm6309_vm9  ;;  %vm4125_vm14 = vcmask 523264   ;;  %vm4207_vm15 = vcmask 517120  }
 0x254   :  { %s7429_s20 = sld [smem:[#allocation70_spill]]  ;;  %s7430_s1 = sld [smem:[#allocation69_spill]] }
 0x255   :  { %v6771_v3 = vld [vmem:[%s7420_s9] sm:$0xff]  ;;  %v6774_v4 = vld [vmem:[%s7420_s9 + $0x8] sm:$0xff]  ;;  %v6777_v5 = vld [vmem:[%s7420_s9 + $0x10] sm:$0xff]  ;;  %s7431_s28 = sld [smem:[#allocation71_spill]]  ;;  %s7432_s12 = sld [smem:[#allocation74_spill]] }
 0x256   :  { %v5160_v6 = vpack.c.bf16 %v6774_v4, %v6771_v3  ;;  %v6782_v7 = vld [vmem:[%s7420_s9 + $0x18] sm:$0xff]  ;;  %v776_v9 = vld [vmem:[%s7421_s4 + $0x8] sm:$0xff]  ;;  %v6792_v11 = vld [vmem:[%s7420_s9 + $0x20] sm:$0xf]  ;;  %s7433_s2 = sld [smem:[#allocation75_spill]]  ;;  %s7434_s17 = sld [smem:[#allocation73_spill]] }
 0x257   :  { %v5163_v8 = vpack.c.bf16 %v6782_v7, %v6777_v5  ;;  %v778_v10 = vld [vmem:[%s7421_s4 + $0x18] sm:$0xff]  ;;  %v775_v12 = vld [vmem:[%s7421_s4] sm:$0xff]  ;;  %v777_v13 = vld [vmem:[%s7421_s4 + $0x10] sm:$0xff]  ;;  %s7435_s0 = sld [smem:[#allocation78_spill]]  ;;  %s7438_s30 = sld [smem:[#allocation77_spill]] }
 0x258   :  { %5161 = vmatpush3.bf16.msra.mxu0 %v5160_v6  ;;  %5167 = vmatpush3.bf16.msra.mxu1 %v5160_v6  ;;  %v536_v14 = vld [vmem:[%s7422_s5] sm:$0xff]  ;;  %v5171_v16 = vpack.c.bf16 %v778_v10, %v776_v9  ;;  %v5173_v17 = vpack.c.bf16 %v777_v13, %v775_v12  ;;  %v780_v18 = vld [vmem:[%s7421_s4 + $0x28] sm:$0xff]  ;;  %v782_v19 = vld [vmem:[%s7421_s4 + $0x38] sm:$0xff]  ;;  %s7439_s14 = sld [smem:[#allocation79_spill]]  ;;  %s7440_s27 = sld [smem:[#allocation82_spill]] }
 0x259   :  { %5162 = vmatprep.subr.bf16.mxu0 %v6306_v1  ;;  %5168 = vmatprep.subr.bf16.mxu1 %v6306_v1  ;;  %v651_v15 = vld [vmem:[%s7423_s22] sm:$0xff]  ;;  %v781_v21 = vld [vmem:[%s7421_s4 + $0x30] sm:$0xff]  ;;  %v537_v22 = vld [vmem:[%s7422_s5 + $0x8] sm:$0xff]  ;;  %v5175_v24 = vpack.c.bf16 %v782_v19, %v780_v18  ;;  %s7441_s3 = sld [smem:[#allocation83_spill]]  ;;  %s7442_s25 = sld [smem:[#allocation85_spill]] }
 0x25a   :  { %v779_v20 = vld [vmem:[%s7421_s4 + $0x20] sm:$0xff]  ;;  %v652_v23 = vld [vmem:[%s7423_s22 + $0x8] sm:$0xff]  ;;  %v786_v27 = vld [vmem:[%s7421_s4 + $0x58] sm:$0xff]  ;;  %s7443_s6 = sld [smem:[#allocation91_spill]]  ;;  %s6311_s7 = smov [#allocation44]  }
 0x25b   :  { %v5177_v25 = vpack.c.bf16 %v781_v21, %v779_v20  ;;  %v784_v26 = vld [vmem:[%s7421_s4 + $0x48] sm:$0xff]  ;;  %v783_v28 = vld [vmem:[%s7421_s4 + $0x40] sm:$0xff]  ;;  %v785_v29 = vld [vmem:[%s7421_s4 + $0x50] sm:$0xff]  ;;  %s4239_s10 = sshll.u32 %s6311_s7, 4  ;;  %s4240_s10 = int_to_ptr.vmem [resolvable:$true] %s4239_s10 }
 0x25c   :  { %5164 = vmatpush3.bf16.msra.mxu0 %v5163_v8  ;;  %5170 = vmatpush3.bf16.msra.mxu1 %v5163_v8  ;;  %v538_v30 = vld [vmem:[%s7422_s5 + $0x10] sm:$0xff]  ;;  %v5179_v32 = vpack.c.bf16 %v786_v27, %v784_v26  ;;  %v5181_v33 = vpack.c.bf16 %v785_v29, %v783_v28  ;;  %v539_v34 = vld [vmem:[%s7422_s5 + $0x18] sm:$0xff]  ;;  %v762_v36 = vld [vmem:[%s7424_s19 + $0x8] sm:$0xff]  ;;  %s6177_s11 = scalar_lea.vmem %s4240_s10, 32  ;;  %p6182_p13 = scmp.lt.s32.totalorder %s4240_s10, %s4240_s10 }
 0x25d   :  { %4667 = vmatprep.subr.mxu0 %v6308_v2  ;;  %4692 = vmatprep.subr.mxu1 %v6308_v2  ;;  %v653_v31 = vld [vmem:[%s7423_s22 + $0x10] sm:$0xff]  ;;  %v654_v35 = vld [vmem:[%s7423_s22 + $0x18] sm:$0xff]  ;;  %v788_v38 = vld [vmem:[%s7421_s4 + $0x68] sm:$0x3f]  ;;  %p6178_p12 = scmp.ne.s32.totalorder %s4240_s10, %s6177_s11  ;;  %p6183_p0 = scmp.lt.s32.totalorder %s6177_s11, %s6177_s11 }
 0x25e   :  { %v764_v37 = vld [vmem:[%s7424_s19 + $0x18] sm:$0xff]  ;;  %v787_v39 = vld [vmem:[%s7421_s4 + $0x60] sm:$0x3f]  ;;  %v763_v44 = vld [vmem:[%s7424_s19 + $0x10] sm:$0xff] }
 0x25f   :  { %v540_v40 = vld [vmem:[%s7422_s5 + $0x20] sm:$0xf]  ;;  %v5183_v42 = vpack.c.bf16 %v764_v37, %v762_v36  ;;  %v766_v45 = vld [vmem:[%s7424_s19 + $0x28] sm:$0xff]  ;;  %v768_v46 = vld [vmem:[%s7424_s19 + $0x38] sm:$0xff]  ;;  %p6184_p1 = por %p6183_p0, %p6182_p13 }
 0x260   :  { %4668 = vmatpush3.msk.msra.mxu0 %vm557_vm1, %v6792_v11  ;;  %4693 = vmatpush3.msk.msra.mxu1 %vm557_vm1, %v6792_v11  ;;  %v655_v41 = vld [vmem:[%s7423_s22 + $0x20] sm:$0xf]  ;;  %v5187_v48 = vpack.c.bf16 %v768_v46, %v766_v45  ;;  %v767_v50 = vld [vmem:[%s7424_s19 + $0x30] sm:$0xff]  ;;  %v770_v51 = vld [vmem:[%s7424_s19 + $0x48] sm:$0xff] }
 0x261   :  { %4670 = vmatmul.mubr.msk.f32.vlgmr.msra.gmra.mrb[0].mxu0 %vm541_vm2, %v536_v14  ;;  %4695 = vmatmul.mubr.msk.f32.vlgmr.msra.gmra.mrb[0].mxu1 %vm541_vm2, %v651_v15  ;;  %v761_v43 = vld [vmem:[%s7424_s19] sm:$0xff]  ;;  %v772_v52 = vld [vmem:[%s7424_s19 + $0x58] sm:$0xff]  ;;  %v771_v56 = vld [vmem:[%s7424_s19 + $0x50] sm:$0xff]  ;;  %p6185_p2 = pnand %p6184_p1, %p6178_p12 }
 0x262   :  { %4672 = vmatprep.mubr.msk.f32.mxu0 %vm6307_vm0, %v6308_v2  ;;  %4697 = vmatprep.mubr.msk.f32.mxu1 %vm6307_vm0, %v6308_v2  ;;  %v5185_v47 = vpack.c.bf16 %v763_v44, %v761_v43  ;;  %v765_v49 = vld [vmem:[%s7424_s19 + $0x20] sm:$0xff]  ;;  %v5191_v54 = vpack.c.bf16 %v772_v52, %v770_v51  ;;  %v774_v58 = vld [vmem:[%s7424_s19 + $0x68] sm:$0x3f]  ;;  %v1025_v61 = vld [vmem:[%s7425_s23 + $0x18] sm:$0xff] }
 0x263   :  { %5172 = vmatprep.subr.bf16.mxu0 %v5171_v16  ;;  %5207 = vmatprep.subr.bf16.mxu1 %v6306_v1  ;;  %v5189_v53 = vpack.c.bf16 %v767_v50, %v765_v49  ;;  %v769_v55 = vld [vmem:[%s7424_s19 + $0x40] sm:$0xff]  ;;  %v1023_v60 = vld [vmem:[%s7425_s23 + $0x8] sm:$0xff]  ;;  %v1200_v10 = vld [vmem:[%s7426_s8 + $0x30] sm:$0xff] }
 0x264   :  { %5174 = vmatpush1.bf16.msra.mxu0 %v5173_v17  ;;  %v5193_v57 = vpack.c.bf16 %v771_v56, %v769_v55  ;;  %v773_v59 = vld [vmem:[%s7424_s19 + $0x60] sm:$0x3f]  ;;  %v5195_v62 = vpack.c.bf16 %v1025_v61, %v1023_v60  ;;  %v1195_v0 = vld [vmem:[%s7426_s8 + $0x8] sm:$0xff]  ;;  %v1204_v16 = vld [vmem:[%s7426_s8 + $0x50] sm:$0xff] }
 0x265   :  { %4673 = vmatmul.mubr.msk.f32.gmra.mrb[2].mxu0 %vm541_vm2, %v537_v22  ;;  %4698 = vmatmul.mubr.msk.f32.gmra.mrb[2].mxu1 %vm541_vm2, %v652_v23  ;;  %v1194_v63 = vld [vmem:[%s7426_s8] sm:$0xff]  ;;  %v1199_v8 = vld [vmem:[%s7426_s8 + $0x28] sm:$0xff]  ;;  %v1205_v17 = vld [vmem:[%s7426_s8 + $0x58] sm:$0xff] }
 0x266   :  { %4675 = vmatprep.mubr.msk.f32.mxu0 %vm6307_vm0, %v6308_v2  ;;  %4700 = vmatprep.mubr.msk.f32.mxu1 %vm6307_vm0, %v6308_v2  ;;  %v1202_v13 = vld [vmem:[%s7426_s8 + $0x40] sm:$0xff]  ;;  %v1203_v14 = vld [vmem:[%s7426_s8 + $0x48] sm:$0xff]  ;;  %v5223_v18 = vpack.c.bf16 %v1205_v17, %v1204_v16  ;;  %v1208_v22 = vld [vmem:[%s7426_s8 + $0x70] sm:$0xff] }
 0x267   :  { %5176 = vmatprep.subr.bf16.mxu0 %v5175_v24  ;;  %v5220_v15 = vpack.c.bf16 %v1203_v14, %v1202_v13  ;;  %v1206_v19 = vld [vmem:[%s7426_s8 + $0x60] sm:$0xff]  ;;  %v1207_v20 = vld [vmem:[%s7426_s8 + $0x68] sm:$0xff]  ;;  %v1209_v23 = vld [vmem:[%s7426_s8 + $0x78] sm:$0xff] }
 0x268   :  { %5178 = vmatpush1.bf16.msra.mxu0 %v5177_v25  ;;  %v5226_v21 = vpack.c.bf16 %v1207_v20, %v1206_v19  ;;  %v5229_v24 = vpack.c.bf16 %v1209_v23, %v1208_v22  ;;  %v1022_v25 = vld [vmem:[%s7425_s23] sm:$0xff]  ;;  %v1024_v26 = vld [vmem:[%s7425_s23 + $0x10] sm:$0xff]  ;;  %v1027_v27 = vld [vmem:[%s7425_s23 + $0x28] sm:$0xff] }
 0x269   :  { %4676 = vmatmul.mubr.msk.f32.gmra.mrb[4].mxu0 %vm541_vm2, %v538_v30  ;;  %4701 = vmatmul.mubr.msk.f32.gmra.mrb[4].mxu1 %vm541_vm2, %v653_v31  ;;  %v1029_v28 = vld [vmem:[%s7425_s23 + $0x38] sm:$0xff]  ;;  %v5197_v29 = vpack.c.bf16 %v1024_v26, %v1022_v25  ;;  %v1026_v31 = vld [vmem:[%s7425_s23 + $0x20] sm:$0xff]  ;;  %v1035_v49 = vld [vmem:[%s7425_s23 + $0x68] sm:$0x3f] }
 0x26a   :  { %4678 = vmatprep.mubr.msk.f32.mxu0 %vm6307_vm0, %v6308_v2  ;;  %4703 = vmatprep.mubr.msk.f32.mxu1 %vm6307_vm0, %v6308_v2  ;;  %v5199_v30 = vpack.c.bf16 %v1029_v28, %v1027_v27  ;;  %v1318_v13 = vld [vmem:[%s7428_s13] sm:$0xff]  ;;  %v1319_v14 = vld [vmem:[%s7428_s13 + $0x8] sm:$0xff]  ;;  %v1320_v22 = vld [vmem:[%s7428_s13 + $0x10] sm:$0xff] }
 0x26b   :  { %5180 = vmatprep.subr.bf16.mxu0 %v5179_v32  ;;  %v1028_v32 = vld [vmem:[%s7425_s23 + $0x30] sm:$0xff]  ;;  %v1321_v23 = vld [vmem:[%s7428_s13 + $0x18] sm:$0xff] }
 0x26c   :  { %5182 = vmatpush1.bf16.msra.mxu0 %v5181_v33  ;;  %v5238_v27 = vpack.c.bf16 %v1321_v23, %v1320_v22 }
 0x26d   :  { %4679 = vmatmul.mubr.msk.f32.gmra.mrb[6].mxu0 %vm541_vm2, %v539_v34  ;;  %4704 = vmatmul.mubr.msk.f32.gmra.mrb[6].mxu1 %vm541_vm2, %v654_v35  ;;  %v1031_v34 = vld [vmem:[%s7425_s23 + $0x48] sm:$0xff]  ;;  %v1033_v35 = vld [vmem:[%s7425_s23 + $0x58] sm:$0xff] }
 0x26e   :  { %4681 = vmatprep.mubr.msk.f32.mxu0 %vm6307_vm0, %v6308_v2  ;;  %4706 = vmatprep.mubr.msk.f32.mxu1 %vm6307_vm0, %v6308_v2 }
 0x26f   :  { %4322 = vmatprep.subr.msk.mxu0 %vm804_vm3, %v788_v38 }
 0x270   :  { %4323 = vmatpush1.msk.msra.mxu0 %vm804_vm3, %v787_v39  ;;  %v5201_v39 = vpack.c.bf16 %v1028_v32, %v1026_v31  ;;  %v1322_v31 = vld [vmem:[%s7428_s13 + $0x20] sm:$0xff]  ;;  %v1323_v32 = vld [vmem:[%s7428_s13 + $0x28] sm:$0xff] }
 0x271   :  { %4682 = vmatmul.mubr.msk.f32.gmra.mrb[8].mxu0 %vm541_vm2, %v540_v40  ;;  %4707 = vmatmul.mubr.msk.f32.gmra.mrb[8].mxu1 %vm541_vm2, %v655_v41  ;;  %v5203_v40 = vpack.c.bf16 %v1033_v35, %v1031_v34  ;;  %v1030_v41 = vld [vmem:[%s7425_s23 + $0x40] sm:$0xff] }
 0x272   :  { %875 = vmatprep.mubr.f32.mxu0 %v6308_v2  ;;  %5184 = vmatprep.subr.bf16.mxu0 %v5183_v42  ;;  %v1032_v42 = vld [vmem:[%s7425_s23 + $0x50] sm:$0xff] }
 0x275   :  { %4324 = vmatmul.mubr.msk.f32.vlgmr.msra.gmra.mrb[10].mxu0 %vm789_vm4, %v6771_v3  ;;  %v1196_v3 = vld [vmem:[%s7426_s8 + $0x10] sm:$0xff] }
 0x276   :  { %881 = vmatprep.mubr.f32.mxu0 %v6308_v2  ;;  %5186 = vmatpush1.bf16.msra.mxu0 %v5185_v47  ;;  %v5205_v47 = vpack.c.bf16 %v1032_v42, %v1030_v41  ;;  %v1325_v41 = vld [vmem:[%s7428_s13 + $0x38] sm:$0xff] }
 0x277   :  { %5188 = vmatprep.subr.bf16.mxu0 %v5187_v48 }
 0x279   :  { %4325 = vmatmul.mubr.msk.f32.gmra.mrb[12].mxu0 %vm789_vm4, %v6774_v4  ;;  %v5208_v4 = vpack.c.bf16 %v1195_v0, %v1194_v63  ;;  %v1211_v63 = vld [vmem:[%s7426_s8 + $0x88] sm:$0xff] }
 0x27a   :  { %887 = vmatprep.mubr.f32.mxu0 %v6308_v2  ;;  %5190 = vmatpush1.bf16.msra.mxu0 %v5189_v53  ;;  %v1034_v53 = vld [vmem:[%s7425_s23 + $0x60] sm:$0x3f] }
 0x27b   :  { %5192 = vmatprep.subr.bf16.mxu0 %v5191_v54  ;;  %5209 = vmatpush1.bf16.msra.mxu1 %v5208_v4 }
 0x27c   :  { %5210 = vmatprep.subr.bf16.mxu1 %v6306_v1 }
 0x27d   :  { %4326 = vmatmul.mubr.msk.f32.gmra.mrb[14].mxu0 %vm789_vm4, %v6777_v5  ;;  %v1197_v5 = vld [vmem:[%s7426_s8 + $0x18] sm:$0xff] }
 0x27e   :  { %893 = vmatprep.mubr.f32.mxu0 %v6308_v2  ;;  %5194 = vmatpush1.bf16.msra.mxu0 %v5193_v57  ;;  %v5211_v6 = vpack.c.bf16 %v1197_v5, %v1196_v3  ;;  %v1164_v3 = vlaneseq }
 0x27f   :  { %4329 = vmatprep.subr.msk.mxu0 %vm804_vm3, %v774_v58 }
 0x280   :  { %5212 = vmatpush1.bf16.msra.mxu1 %v5211_v6  ;;  %v1165_v4 = vshrl.u32 %v1164_v3, 7  ;;  %v1162_v6 = vld [vmem:[%s7427_s26] sm:$0x3]  ;;  %v1335_v3 = vld [vmem:[%s7428_s13 + $0x88] sm:$0xff] }
 0x281   :  { %4327 = vmatmul.mubr.msk.f32.gmra.mrb[16].mxu0 %vm789_vm4, %v6782_v7  ;;  %v1198_v7 = vld [vmem:[%s7426_s8 + $0x20] sm:$0xff]  ;;  %5213 = vmatprep.subr.bf16.mxu1 %v6306_v1 }
 0x282   :  { %899 = vmatprep.mubr.f32.mxu0 %v6308_v2  ;;  %4330 = vmatpush1.msk.msra.mxu0 %vm804_vm3, %v773_v59  ;;  %v5214_v9 = vpack.c.bf16 %v1199_v8, %v1198_v7  ;;  %v1166_v5 = vsub.s32 0, %v1165_v4  ;;  %v1170_v7 = vsub.s32 1, %v1165_v4 }
 0x283   :  { %5196 = vmatprep.subr.bf16.mxu0 %v5195_v62  ;;  %v1210_v62 = vld [vmem:[%s7426_s8 + $0x80] sm:$0xff] }
 0x284   :  { %5215 = vmatpush1.bf16.msra.mxu1 %v5214_v9  ;;  %v5232_v0 = vpack.c.bf16 %v1211_v63, %v1210_v62  ;;  %v1167_v8 = vrot.slane %v1162_v6, %v1166_v5  ;;  %v1171_v9 = vrot.slane %v1162_v6, %v1170_v7  ;;  %v1333_v62 = vld [vmem:[%s7428_s13 + $0x78] sm:$0xff] }
 0x285   :  { %4328 = vmatmul.mubr.msk.f32.gmra.mrb[18].mxu0 %vm789_vm4, %v6792_v11  ;;  %v1201_v11 = vld [vmem:[%s7426_s8 + $0x38] sm:$0xff]  ;;  %5216 = vmatprep.subr.bf16.mxu1 %v6306_v1 }
 0x286   :  { %991 = vmatprep.mubr.f32.mxu0 %v6308_v2  ;;  %v5217_v12 = vpack.c.bf16 %v1201_v11, %v1200_v10 }
 0x288   :  { %5218 = vmatpush1.bf16.msra.mxu1 %v5217_v12 }
 0x289   :  { %5219 = vmatprep.subr.bf16.mxu1 %v6306_v1 }
 0x28c   :  { %5221 = vmatpush1.bf16.msra.mxu1 %v5220_v15 }
 0x28d   :  { %5222 = vmatprep.subr.bf16.mxu1 %v6306_v1 }
 0x290   :  { %5224 = vmatpush1.bf16.msra.mxu1 %v5223_v18  ;;  %v5235_v18 = vpack.c.bf16 %v1319_v14, %v1318_v13 }
 0x291   :  { %5225 = vmatprep.subr.bf16.mxu1 %v6306_v1 }
 0x294   :  { %5227 = vmatpush1.bf16.msra.mxu1 %v5226_v21 }
 0x295   :  { %5228 = vmatprep.subr.bf16.mxu1 %v6306_v1 }
 0x298   :  { %5230 = vmatpush1.bf16.msra.mxu1 %v5229_v24 }
 0x299   :  { %5231 = vmatprep.subr.bf16.mxu1 %v6306_v1 }
 0x29c   :  { %5233 = vmatpush1.bf16.msra.mxu1 %v5232_v0  ;;  %v1334_v0 = vld [vmem:[%s7428_s13 + $0x80] sm:$0xff] }
 0x29d   :  { %5234 = vmatprep.subr.bf16.mxu1 %v6306_v1  ;;  %v5259_v4 = vpack.c.bf16 %v1335_v3, %v1334_v0  ;;  %v1622_v0 = vld [vmem:[#allocation8 + $0x8] sm:$0xff] }
 0x334   :  { %v627_v33 = vpop.f32.mrb[0].mxu0  ;;  %v737_v36 = vpop.f32.mrb[0].mxu1 }
 0x335   :  { %v4671_v37 = vpop.f32.mrb[1].mxu0  ;;  %4331 = vmatmul.mubr.msk.f32.vlgmr.msra.gmra.mrb[10].mxu0 %vm789_vm4, %v627_v33  ;;  %v4696_v38 = vpop.f32.mrb[1].mxu1 }
 0x336   :  { %997 = vmatprep.mubr.f32.mxu0 %v6308_v2  ;;  %5198 = vmatpush1.bf16.msra.mxu0 %v5197_v29 }
 0x337   :  { %5200 = vmatprep.subr.bf16.mxu0 %v5199_v30 }
 0x338   :  { %v632_v43 = vpop.f32.mrb[2].mxu0  ;;  %v742_v44 = vpop.f32.mrb[2].mxu1 }
 0x339   :  { %v4674_v45 = vpop.f32.mrb[3].mxu0  ;;  %4332 = vmatmul.mubr.msk.f32.gmra.mrb[12].mxu0 %vm789_vm4, %v632_v43  ;;  %v4699_v46 = vpop.f32.mrb[3].mxu1 }
 0x33a   :  { %1003 = vmatprep.mubr.f32.mxu0 %v6308_v2  ;;  %5202 = vmatpush1.bf16.msra.mxu0 %v5201_v39 }
 0x33b   :  { %5204 = vmatprep.subr.bf16.mxu0 %v5203_v40  ;;  %v1324_v40 = vld [vmem:[%s7428_s13 + $0x30] sm:$0xff] }
 0x33c   :  { %v637_v48 = vpop.f32.mrb[4].mxu0  ;;  %v747_v50 = vpop.f32.mrb[4].mxu1  ;;  %v5244_v45 = vpack.c.bf16 %v1325_v41, %v1324_v40 }
 0x33d   :  { %v4677_v51 = vpop.f32.mrb[5].mxu0  ;;  %4333 = vmatmul.mubr.msk.f32.gmra.mrb[14].mxu0 %vm789_vm4, %v637_v48  ;;  %v4702_v52 = vpop.f32.mrb[5].mxu1 }
 0x33e   :  { %1009 = vmatprep.mubr.f32.mxu0 %v6308_v2  ;;  %5206 = vmatpush1.bf16.msra.mxu0 %v5205_v47 }
 0x33f   :  { %4336 = vmatprep.subr.msk.mxu0 %vm804_vm3, %v1035_v49  ;;  %v1326_v49 = vld [vmem:[%s7428_s13 + $0x40] sm:$0xff] }
 0x340   :  { %v642_v54 = vpop.f32.mrb[6].mxu0  ;;  %v752_v55 = vpop.f32.mrb[6].mxu1 }
 0x341   :  { %v4680_v56 = vpop.f32.mrb[7].mxu0  ;;  %4334 = vmatmul.mubr.msk.f32.gmra.mrb[16].mxu0 %vm789_vm4, %v642_v54  ;;  %v4705_v57 = vpop.f32.mrb[7].mxu1 }
 0x342   :  { %1015 = vmatprep.mubr.f32.mxu0 %v6308_v2  ;;  %4337 = vmatpush1.msk.msra.mxu0 %vm804_vm3, %v1034_v53  ;;  %v1329_v56 = vld [vmem:[%s7428_s13 + $0x58] sm:$0xff] }
 0x343   :  { %5261 = vmatprep.subr.bf16.mxu0 %v6306_v1 }
 0x344   :  { %v647_v58 = vpop.f32.mrb[8].mxu0  ;;  %v757_v59 = vpop.f32.mrb[8].mxu1 }
 0x345   :  { %v4683_v60 = vpop.f32.mrb[9].mxu0  ;;  %4335 = vmatmul.mubr.msk.f32.gmra.mrb[18].mxu0 %vm789_vm4, %v647_v58  ;;  %v4708_v61 = vpop.f32.mrb[9].mxu1  ;;  %v1330_v58 = vld [vmem:[%s7428_s13 + $0x60] sm:$0xff] }
 0x346   :  { %1121 = vmatprep.mubr.f32.mxu0 %v6308_v2  ;;  %v1332_v61 = vld [vmem:[%s7428_s13 + $0x70] sm:$0xff] }
 0x347   :  { %v5256_v63 = vpack.c.bf16 %v1333_v62, %v1332_v61  ;;  %v1821_v61 = vld [vmem:[%s7429_s20 + $0x10] sm:$0xff]  ;;  %v1822_v62 = vld [vmem:[%s7429_s20 + $0x18] sm:$0xff] }
 0x348   :  { %v5283_v3 = vpack.c.bf16 %v1822_v62, %v1821_v61  ;;  %v2127_v61 = vld [vmem:[%s7432_s12 + $0x28] sm:$0xff] }
 0x349   :  { %4338 = vmatmul.mubr.msk.f32.vlgmr.msra.gmra.mrb[10].mxu0 %vm789_vm4, %v737_v36  ;;  %v5241_v36 = vpack.c.bf16 %v1323_v32, %v1322_v31  ;;  %v1431_v32 = vld [vmem:[#allocation3] sm:$0xff] }
 0x34a   :  { %1127 = vmatprep.mubr.f32.mxu0 %v6308_v2 }
 0x34d   :  { %4339 = vmatmul.mubr.msk.f32.gmra.mrb[12].mxu0 %vm789_vm4, %v742_v44 }
 0x34e   :  { %1133 = vmatprep.mubr.f32.mxu0 %v6308_v2 }
 0x351   :  { %4340 = vmatmul.mubr.msk.f32.gmra.mrb[14].mxu0 %vm789_vm4, %v747_v50  ;;  %v1327_v50 = vld [vmem:[%s7428_s13 + $0x48] sm:$0xff] }
 0x352   :  { %1139 = vmatprep.mubr.f32.mxu0 %v6308_v2  ;;  %v5247_v53 = vpack.c.bf16 %v1327_v50, %v1326_v49 }
 0x355   :  { %4341 = vmatmul.mubr.msk.f32.gmra.mrb[16].mxu0 %vm789_vm4, %v752_v55  ;;  %v1328_v55 = vld [vmem:[%s7428_s13 + $0x50] sm:$0xff] }
 0x356   :  { %1145 = vmatprep.mubr.f32.mxu0 %v6308_v2  ;;  %v5250_v57 = vpack.c.bf16 %v1329_v56, %v1328_v55  ;;  %v1621_v56 = vld [vmem:[#allocation8] sm:$0xff] }
 0x359   :  { %4342 = vmatmul.mubr.msk.f32.gmra.mrb[18].mxu0 %vm789_vm4, %v757_v59  ;;  %v1331_v59 = vld [vmem:[%s7428_s13 + $0x68] sm:$0xff] }
 0x35a   :  { %4719 = vmatprep.mubr.msk.f32.mxu0 %vm6307_vm0, %v6308_v2  ;;  %v5253_v60 = vpack.c.bf16 %v1331_v59, %v1330_v58  ;;  %v1809_v58 = vld [vmem:[%s7430_s1] sm:$0xff]  ;;  %v1810_v59 = vld [vmem:[%s7430_s1 + $0x8] sm:$0xff] }
 0x41c   :  { %v1123_v10 = vpop.f32.mrb[10].mxu0 }
 0x41d   :  { %v6948_v11 = vadd.f32 %v1167_v8, %v1123_v10  ;;  %v1125_v12 = vpop.f32.mrb[11].mxu0 }
 0x41e   :  { %v6952_v15 = vadd.f32 %v1171_v9, %v1125_v12 }
 0x41f   :  { %v1184_v19 = vmax.f32 %v6948_v11, 0.0 }
 0x420   :  { %v1185_v16 = vmax.f32 %v6952_v15, 0.0  ;;  %v1129_v17 = vpop.f32.mrb[12].mxu0 }
 0x421   :  { %v6956_v20 = vadd.f32 %v1167_v8, %v1129_v17  ;;  %v1131_v21 = vpop.f32.mrb[13].mxu0 }
 0x422   :  { %v6960_v24 = vadd.f32 %v1171_v9, %v1131_v21  ;;  %4343 = vmatprep.mubr.msk.f32.mxu1 %vm1212_vm5, %v1185_v16 }
 0x423   :  { %1293 = vmatmul.mubr.f32.vlgmr.msra.gmra.mrb[10].mxu1 %v1184_v19  ;;  %v1186_v28 = vmax.f32 %v6956_v20, 0.0 }
 0x424   :  { %v1187_v25 = vmax.f32 %v6960_v24, 0.0  ;;  %5236 = vmatpush1.bf16.msra.mxu1 %v5235_v18  ;;  %v1135_v26 = vpop.f32.mrb[14].mxu0 }
 0x425   :  { %v6967_v29 = vadd.f32 %v1167_v8, %v1135_v26  ;;  %v1137_v30 = vpop.f32.mrb[15].mxu0  ;;  %5237 = vmatprep.subr.bf16.mxu1 %v6306_v1 }
 0x426   :  { %v6972_v33 = vadd.f32 %v1171_v9, %v1137_v30  ;;  %4344 = vmatprep.mubr.msk.f32.mxu1 %vm1212_vm5, %v1187_v25 }
 0x427   :  { %1298 = vmatmul.mubr.f32.gmra.mrb[12].mxu1 %v1186_v28  ;;  %v1188_v37 = vmax.f32 %v6967_v29, 0.0 }
 0x428   :  { %v1189_v34 = vmax.f32 %v6972_v33, 0.0  ;;  %5239 = vmatpush1.bf16.msra.mxu1 %v5238_v27  ;;  %v1141_v35 = vpop.f32.mrb[16].mxu0  ;;  %v1432_v33 = vld [vmem:[#allocation3 + $0x8] sm:$0xff] }
 0x429   :  { %v1180_v38 = vadd.f32 %v1167_v8, %v1141_v35  ;;  %v1143_v39 = vpop.f32.mrb[17].mxu0  ;;  %5240 = vmatprep.subr.bf16.mxu1 %v6306_v1  ;;  %v1526_v35 = vld [vmem:[#allocation6] sm:$0xff] }
 0x42a   :  { %v1181_v42 = vadd.f32 %v1171_v9, %v1143_v39  ;;  %4345 = vmatprep.mubr.msk.f32.mxu1 %vm1212_vm5, %v1189_v34 }
 0x42b   :  { %1303 = vmatmul.mubr.f32.gmra.mrb[14].mxu1 %v1188_v37  ;;  %v1190_v46 = vmax.f32 %v1180_v38, 0.0 }
 0x42c   :  { %v1191_v43 = vmax.f32 %v1181_v42, 0.0  ;;  %5242 = vmatpush1.bf16.msra.mxu1 %v5241_v36  ;;  %v1147_v44 = vpop.f32.mrb[18].mxu0  ;;  %v1527_v36 = vld [vmem:[#allocation6 + $0x8] sm:$0xff] }
 0x42d   :  { %v1182_v47 = vadd.f32 %v1167_v8, %v1147_v44  ;;  %v1149_v48 = vpop.f32.mrb[19].mxu0  ;;  %5243 = vmatprep.subr.bf16.mxu1 %v6306_v1 }
 0x42e   :  { %v1183_v51 = vadd.f32 %v1171_v9, %v1149_v48  ;;  %4346 = vmatprep.mubr.msk.f32.mxu1 %vm1212_vm5, %v1191_v43 }
 0x42f   :  { %1308 = vmatmul.mubr.f32.gmra.mrb[16].mxu1 %v1190_v46  ;;  %v1192_v54 = vmax.f32 %v1182_v47, 0.0 }
 0x430   :  { %v1193_v52 = vmax.f32 %v1183_v51, 0.0  ;;  %5245 = vmatpush1.bf16.msra.mxu1 %v5244_v45 }
 0x431   :  { %5246 = vmatprep.subr.bf16.mxu1 %v6306_v1 }
 0x432   :  { %4347 = vmatprep.mubr.msk.f32.mxu1 %vm1212_vm5, %v1193_v52 }
 0x433   :  { %1313 = vmatmul.mubr.f32.gmra.mrb[18].mxu1 %v1192_v54 }
 0x434   :  { %5248 = vmatpush1.bf16.msra.mxu1 %v5247_v53  ;;  %4348 = vmatprep.mubr.msk.f32.mxu1 %vm1212_vm5, %v1185_v16  ;;  %v1820_v53 = vld [vmem:[%s7429_s20 + $0x8] sm:$0xff] }
 0x435   :  { %5249 = vmatprep.subr.bf16.mxu1 %v6306_v1 }
 0x438   :  { %5251 = vmatpush1.bf16.msra.mxu1 %v5250_v57 }
 0x439   :  { %5252 = vmatprep.subr.bf16.mxu1 %v6306_v1 }
 0x43c   :  { %5254 = vmatpush1.bf16.msra.mxu1 %v5253_v60  ;;  %v1717_v60 = vld [vmem:[#allocation9] sm:$0xff] }
 0x43d   :  { %5255 = vmatprep.subr.bf16.mxu1 %v6306_v1 }
 0x440   :  { %5257 = vmatpush1.bf16.msra.mxu1 %v5256_v63  ;;  %v5295_v63 = vpack.c.bf16 %v1810_v59, %v1809_v58 }
 0x441   :  { %5258 = vmatprep.subr.bf16.mxu1 %v6306_v1 }
 0x444   :  { %5260 = vmatpush1.bf16.msra.mxu1 %v5259_v4  ;;  %v1811_v4 = vld [vmem:[%s7430_s1 + $0x10] sm:$0xff] }
 0x445   :  { %5273 = vmatprep.subr.bf16.mxu1 %v6306_v1 }
 0x447   :  { %1401 = vmatmul.mubr.f32.vlgmr.msra.gmra.mrb[20].mxu1 %v1184_v19 }
 0x448   :  { %4349 = vmatprep.mubr.msk.f32.mxu1 %vm1212_vm5, %v1187_v25 }
 0x44b   :  { %1406 = vmatmul.mubr.f32.gmra.mrb[22].mxu1 %v1186_v28 }
 0x44c   :  { %4350 = vmatprep.mubr.msk.f32.mxu1 %vm1212_vm5, %v1189_v34  ;;  %v1433_v34 = vld [vmem:[#allocation3 + $0x10] sm:$0xf] }
 0x44f   :  { %1411 = vmatmul.mubr.f32.gmra.mrb[24].mxu1 %v1188_v37  ;;  %v1528_v37 = vld [vmem:[#allocation6 + $0x10] sm:$0xf] }
 0x450   :  { %4351 = vmatprep.mubr.msk.f32.mxu1 %vm1212_vm5, %v1191_v43 }
 0x453   :  { %1416 = vmatmul.mubr.f32.gmra.mrb[26].mxu1 %v1190_v46 }
 0x454   :  { %4352 = vmatprep.mubr.msk.f32.mxu1 %vm1212_vm5, %v1193_v52  ;;  %v1819_v52 = vld [vmem:[%s7429_s20] sm:$0xff] }
 0x455   :  { %v5280_v57 = vpack.c.bf16 %v1820_v53, %v1819_v52 }
 0x457   :  { %1421 = vmatmul.mubr.f32.gmra.mrb[28].mxu1 %v1192_v54 }
 0x458   :  { %4753 = vmatprep.mubr.msk.f32.mxu1 %vm6307_vm0, %v6308_v2 }
 0x4f6   :  { %v1294_v5 = vpop.f32.mrb[10].mxu1 }
 0x4f7   :  { %v1296_v6 = vpop.f32.mrb[11].mxu1 }
 0x4f8   :  { %v1718_v6 = vld [vmem:[#allocation9 + $0x8] sm:$0xff] }
 0x4fa   :  { %v1299_v7 = vpop.f32.mrb[12].mxu1 }
 0x4fb   :  { %v1301_v8 = vpop.f32.mrb[13].mxu1 }
 0x4fc   :  { %v1824_v8 = vld [vmem:[%s7429_s20 + $0x28] sm:$0xff] }
 0x4fe   :  { %v1304_v9 = vpop.f32.mrb[14].mxu1 }
 0x4ff   :  { %v1306_v10 = vpop.f32.mrb[15].mxu1 }
 0x500   :  { %v1623_v10 = vld [vmem:[#allocation8 + $0x10] sm:$0xf] }
 0x502   :  { %v1309_v11 = vpop.f32.mrb[16].mxu1 }
 0x503   :  { %v1311_v12 = vpop.f32.mrb[17].mxu1 }
 0x504   :  { %v1813_v12 = vld [vmem:[%s7430_s1 + $0x20] sm:$0xff] }
 0x506   :  { %v1314_v13 = vpop.f32.mrb[18].mxu1 }
 0x507   :  { %v1316_v14 = vpop.f32.mrb[19].mxu1 }
 0x508   :  { %v1719_v14 = vld [vmem:[#allocation9 + $0x10] sm:$0xf] }
 0x51a   :  { %v1402_v15 = vpop.f32.mrb[20].mxu1 }
 0x51b   :  { %v1426_v16 = vmax.f32 %v1294_v5, %v1402_v15  ;;  %v1404_v17 = vpop.f32.mrb[21].mxu1  ;;  %v1812_v5 = vld [vmem:[%s7430_s1 + $0x18] sm:$0xff]  ;;  %v1825_v15 = vld [vmem:[%s7429_s20 + $0x30] sm:$0xff] }
 0x51e   :  { %v1407_v18 = vpop.f32.mrb[22].mxu1 }
 0x51f   :  { %v1427_v19 = vmax.f32 %v1299_v7, %v1407_v18  ;;  %v1409_v20 = vpop.f32.mrb[23].mxu1  ;;  %v1823_v7 = vld [vmem:[%s7429_s20 + $0x20] sm:$0xff] }
 0x520   :  { %v1816_v20 = vld [vmem:[%s7430_s1 + $0x38] sm:$0xff] }
 0x521   :  { %v5262_v21 = vpack.c.bf16 %v1427_v19, %v1426_v16  ;;  %v1826_v16 = vld [vmem:[%s7429_s20 + $0x38] sm:$0xff]  ;;  %v1815_v19 = vld [vmem:[%s7430_s1 + $0x30] sm:$0xff] }
 0x522   :  { %v1412_v22 = vpop.f32.mrb[24].mxu1  ;;  %v5289_v18 = vpack.c.bf16 %v1826_v16, %v1825_v15 }
 0x523   :  { %v1428_v23 = vmax.f32 %v1304_v9, %v1412_v22  ;;  %v1414_v24 = vpop.f32.mrb[25].mxu1  ;;  %5263 = vmatpush3.bf16.msra.mxu0 %v5262_v21  ;;  %v5298_v9 = vpack.c.bf16 %v1812_v5, %v1811_v4  ;;  %v1828_v22 = vld [vmem:[%s7429_s20 + $0x48] sm:$0xff] }
 0x524   :  { %5264 = vmatprep.subr.bf16.mxu0 %v6306_v1 }
 0x526   :  { %v1417_v25 = vpop.f32.mrb[26].mxu1 }
 0x527   :  { %v1429_v26 = vmax.f32 %v1309_v11, %v1417_v25  ;;  %v1419_v27 = vpop.f32.mrb[27].mxu1  ;;  %v5286_v11 = vpack.c.bf16 %v1824_v8, %v1823_v7  ;;  %v1817_v25 = vld [vmem:[%s7430_s1 + $0x40] sm:$0xff] }
 0x528   :  { %v2007_v27 = vld [vmem:[%s7431_s28] sm:$0xff] }
 0x529   :  { %v5265_v28 = vpack.c.bf16 %v1429_v26, %v1428_v23  ;;  %v5304_v23 = vpack.c.bf16 %v1816_v20, %v1815_v19  ;;  %v1818_v26 = vld [vmem:[%s7430_s1 + $0x48] sm:$0xff]  ;;  %v2227_v19 = vld [vmem:[%s7433_s2 + $0x30] sm:$0xff] }
 0x52a   :  { %v1422_v29 = vpop.f32.mrb[28].mxu1 }
 0x52b   :  { %v1430_v30 = vmax.f32 %v1314_v13, %v1422_v29  ;;  %v1424_v31 = vpop.f32.mrb[29].mxu1  ;;  %5266 = vmatpush3.bf16.msra.mxu0 %v5265_v28  ;;  %v1814_v13 = vld [vmem:[%s7430_s1 + $0x28] sm:$0xff]  ;;  %v5307_v29 = vpack.c.bf16 %v1818_v26, %v1817_v25  ;;  %v2229_v26 = vld [vmem:[%s7433_s2 + $0x40] sm:$0xff] }
 0x52c   :  { %4717 = vmatprep.subr.mxu0 %v6308_v2  ;;  %v5301_v17 = vpack.c.bf16 %v1814_v13, %v1813_v12  ;;  %v2009_v31 = vld [vmem:[%s7431_s28 + $0x10] sm:$0xff] }
 0x52f   :  { %4718 = vmatpush3.msk.msra.mxu0 %vm557_vm1, %v1430_v30 }
 0x530   :  { %4720 = vmatmul.mubr.msk.f32.vlgmr.msra.gmra.mrb[20].mxu0 %vm541_vm2, %v1431_v32  ;;  %5267 = vmatprep.subr.bf16.mxu0 %v6306_v1  ;;  %v2010_v32 = vld [vmem:[%s7431_s28 + $0x18] sm:$0xff] }
 0x531   :  { %5269 = vmatpush3.bf16.msra.mxu0 %v5262_v21  ;;  %4722 = vmatprep.mubr.msk.f32.mxu0 %vm6307_vm0, %v6308_v2  ;;  %v1827_v21 = vld [vmem:[%s7429_s20 + $0x40] sm:$0xff] }
 0x532   :  { %5270 = vmatprep.subr.bf16.mxu0 %v6306_v1  ;;  %v5292_v24 = vpack.c.bf16 %v1828_v22, %v1827_v21  ;;  %v2228_v21 = vld [vmem:[%s7433_s2 + $0x38] sm:$0xff] }
 0x533   :  { %v5349_v22 = vpack.c.bf16 %v2228_v21, %v2227_v19  ;;  %v2661_v19 = vld [vmem:[%s7435_s0] sm:$0xff] }
 0x534   :  { %4723 = vmatmul.mubr.msk.f32.gmra.mrb[22].mxu0 %vm541_vm2, %v1432_v33  ;;  %v5313_v33 = vpack.c.bf16 %v2010_v32, %v2009_v31 }
 0x535   :  { %5272 = vmatpush3.bf16.msra.mxu0 %v5265_v28  ;;  %4725 = vmatprep.mubr.msk.f32.mxu0 %vm6307_vm0, %v6308_v2  ;;  %v2008_v28 = vld [vmem:[%s7431_s28 + $0x8] sm:$0xff] }
 0x536   :  { %4736 = vmatprep.subr.mxu0 %v6308_v2 }
 0x538   :  { %4726 = vmatmul.mubr.msk.f32.gmra.mrb[24].mxu0 %vm541_vm2, %v1433_v34  ;;  %v2011_v34 = vld [vmem:[%s7431_s28 + $0x20] sm:$0xff] }
 0x539   :  { %4737 = vmatpush3.msk.msra.mxu0 %vm557_vm1, %v1430_v30  ;;  %4738 = vmatprep.mubr.msk.f32.mxu0 %vm6307_vm0, %v6308_v2  ;;  %v5310_v30 = vpack.c.bf16 %v2008_v28, %v2007_v27  ;;  %v2230_v27 = vld [vmem:[%s7433_s2 + $0x48] sm:$0xff] }
 0x53a   :  { %5276 = vmatprep.subr.bf16.mxu0 %v6306_v1  ;;  %v5352_v28 = vpack.c.bf16 %v2230_v27, %v2229_v26  ;;  %v2664_v26 = vld [vmem:[%s7435_s0 + $0x18] sm:$0xff] }
 0x53b   :  { %v2486_v27 = vld [vmem:[#allocation14 + $0x8] sm:$0xf] }
 0x53c   :  { %4739 = vmatmul.mubr.msk.f32.vlgmr.msra.gmra.mrb[26].mxu0 %vm541_vm2, %v1526_v35  ;;  %v2012_v35 = vld [vmem:[%s7431_s28 + $0x28] sm:$0xff] }
 0x53d   :  { %4741 = vmatprep.mubr.msk.f32.mxu0 %vm6307_vm0, %v6308_v2 }
 0x540   :  { %4742 = vmatmul.mubr.msk.f32.gmra.mrb[28].mxu0 %vm541_vm2, %v1527_v36  ;;  %v5316_v36 = vpack.c.bf16 %v2012_v35, %v2011_v34 }
 0x541   :  { %4744 = vmatprep.mubr.msk.f32.mxu0 %vm6307_vm0, %v6308_v2 }
 0x544   :  { %4745 = vmatmul.mubr.msk.f32.gmra.mrb[30].mxu0 %vm541_vm2, %v1528_v37  ;;  %v2013_v37 = vld [vmem:[%s7431_s28 + $0x30] sm:$0xff] }
 0x545   :  { %4768 = vmatprep.mubr.msk.f32.mxu0 %vm6307_vm0, %v6308_v2 }
 0x603   :  { %v1512_v38 = vpop.f32.mrb[20].mxu0 }
 0x604   :  { %v4721_v39 = vpop.f32.mrb[21].mxu0 }
 0x607   :  { %v1517_v40 = vpop.f32.mrb[22].mxu0 }
 0x608   :  { %v4724_v41 = vpop.f32.mrb[23].mxu0 }
 0x609   :  { %v2016_v41 = vld [vmem:[%s7431_s28 + $0x48] sm:$0xff] }
 0x60b   :  { %v1522_v42 = vpop.f32.mrb[24].mxu0 }
 0x60c   :  { %v4727_v43 = vpop.f32.mrb[25].mxu0 }
 0x60d   :  { %v2122_v43 = vld [vmem:[%s7432_s12] sm:$0xff] }
 0x60f   :  { %v1604_v44 = vpop.f32.mrb[26].mxu0 }
 0x610   :  { %v7043_v45 = vmax.f32 %v1512_v38, %v1604_v44  ;;  %v4740_v46 = vpop.f32.mrb[27].mxu0  ;;  %v2014_v38 = vld [vmem:[%s7431_s28 + $0x38] sm:$0xff]  ;;  %v2123_v44 = vld [vmem:[%s7432_s12 + $0x8] sm:$0xff] }
 0x611   :  { %v5319_v39 = vpack.c.bf16 %v2014_v38, %v2013_v37  ;;  %v2222_v46 = vld [vmem:[%s7433_s2 + $0x8] sm:$0xff] }
 0x613   :  { %v1609_v47 = vpop.f32.mrb[28].mxu0 }
 0x614   :  { %v7045_v48 = vmax.f32 %v1517_v40, %v1609_v47  ;;  %v4743_v49 = vpop.f32.mrb[29].mxu0  ;;  %v2015_v40 = vld [vmem:[%s7431_s28 + $0x40] sm:$0xff]  ;;  %v5325_v47 = vpack.c.bf16 %v2123_v44, %v2122_v43 }
 0x616   :  { %v5274_v50 = vpack.c.bf16 %v7045_v48, %v7043_v45 }
 0x617   :  { %v1614_v51 = vpop.f32.mrb[30].mxu0 }
 0x618   :  { %v7051_v54 = vmax.f32 %v1522_v42, %v1614_v51  ;;  %5275 = vmatpush3.bf16.msra.mxu1 %v5274_v50  ;;  %5278 = vmatpush3.bf16.msra.mxu0 %v5274_v50  ;;  %v4746_v55 = vpop.f32.mrb[31].mxu0  ;;  %v5322_v42 = vpack.c.bf16 %v2016_v41, %v2015_v40  ;;  %v2124_v50 = vld [vmem:[%s7432_s12 + $0x10] sm:$0xff]  ;;  %v2125_v51 = vld [vmem:[%s7432_s12 + $0x18] sm:$0xff] }
 0x619   :  { %4751 = vmatprep.subr.mxu1 %v6308_v2  ;;  %4766 = vmatprep.subr.mxu0 %v6308_v2  ;;  %v2224_v55 = vld [vmem:[%s7433_s2 + $0x18] sm:$0xff] }
 0x61c   :  { %4752 = vmatpush3.msk.msra.mxu1 %vm557_vm1, %v7051_v54  ;;  %4767 = vmatpush3.msk.msra.mxu0 %vm557_vm1, %v7051_v54 }
 0x61d   :  { %4754 = vmatmul.mubr.msk.f32.vlgmr.msra.gmra.mrb[30].mxu1 %vm1624_vm6, %v1621_v56  ;;  %5279 = vmatprep.subr.bf16.mxu1 %v6306_v1 }
 0x61e   :  { %5281 = vmatpush3.bf16.msra.mxu1 %v5280_v57  ;;  %4769 = vmatmul.mubr.msk.f32.vlgmr.msra.gmra.mrb[32].mxu0 %vm1624_vm6, %v1717_v60  ;;  %v5328_v57 = vpack.c.bf16 %v2125_v51, %v2124_v50  ;;  %v2126_v60 = vld [vmem:[%s7432_s12 + $0x20] sm:$0xff] }
 0x61f   :  { %4756 = vmatprep.mubr.msk.f32.mxu1 %vm6307_vm0, %v6308_v2  ;;  %5282 = vmatprep.subr.bf16.mxu1 %v6306_v1  ;;  %v5331_v5 = vpack.c.bf16 %v2127_v61, %v2126_v60 }
 0x620   :  { %4771 = vmatprep.mubr.msk.f32.mxu0 %vm6307_vm0, %v6308_v2  ;;  %5294 = vmatprep.subr.bf16.mxu0 %v6306_v1 }
 0x621   :  { %4757 = vmatmul.mubr.msk.f32.gmra.mrb[32].mxu1 %vm1624_vm6, %v1622_v0  ;;  %5296 = vmatpush3.bf16.msra.mxu0 %v5295_v63  ;;  %v2225_v0 = vld [vmem:[%s7433_s2 + $0x20] sm:$0xff] }
 0x622   :  { %5284 = vmatpush3.bf16.msra.mxu1 %v5283_v3  ;;  %4772 = vmatmul.mubr.msk.f32.gmra.mrb[34].mxu0 %vm1624_vm6, %v1718_v6  ;;  %v2226_v3 = vld [vmem:[%s7433_s2 + $0x28] sm:$0xff] }
 0x623   :  { %4759 = vmatprep.mubr.msk.f32.mxu1 %vm6307_vm0, %v6308_v2  ;;  %5285 = vmatprep.subr.bf16.mxu1 %v6306_v1  ;;  %v5346_v7 = vpack.c.bf16 %v2226_v3, %v2225_v0 }
 0x624   :  { %4774 = vmatprep.mubr.msk.f32.mxu0 %vm6307_vm0, %v6308_v2  ;;  %5297 = vmatprep.subr.bf16.mxu0 %v6306_v1 }
 0x625   :  { %4760 = vmatmul.mubr.msk.f32.gmra.mrb[34].mxu1 %vm1624_vm6, %v1623_v10  ;;  %5299 = vmatpush3.bf16.msra.mxu0 %v5298_v9 }
 0x626   :  { %5287 = vmatpush3.bf16.msra.mxu1 %v5286_v11  ;;  %4775 = vmatmul.mubr.msk.f32.gmra.mrb[36].mxu0 %vm1624_vm6, %v1719_v14 }
 0x627   :  { %5288 = vmatprep.subr.bf16.mxu1 %v6306_v1  ;;  %4797 = vmatprep.mubr.msk.f32.mxu1 %vm6307_vm0, %v6308_v2 }
 0x628   :  { %5300 = vmatprep.subr.bf16.mxu0 %v6306_v1  ;;  %4826 = vmatprep.mubr.msk.f32.mxu0 %vm6307_vm0, %v6308_v2 }
 0x629   :  { %5302 = vmatpush3.bf16.msra.mxu0 %v5301_v17  ;;  %v2128_v17 = vld [vmem:[%s7432_s12 + $0x30] sm:$0xff] }
 0x62a   :  { %5290 = vmatpush3.bf16.msra.mxu1 %v5289_v18  ;;  %5303 = vmatprep.subr.bf16.mxu0 %v6306_v1  ;;  %v2129_v18 = vld [vmem:[%s7432_s12 + $0x38] sm:$0xff] }
 0x62b   :  { %5291 = vmatprep.subr.bf16.mxu1 %v6306_v1  ;;  %v5334_v20 = vpack.c.bf16 %v2129_v18, %v2128_v17 }
 0x62d   :  { %5305 = vmatpush3.bf16.msra.mxu0 %v5304_v23  ;;  %v2130_v23 = vld [vmem:[%s7432_s12 + $0x40] sm:$0xff] }
 0x62e   :  { %5293 = vmatpush3.bf16.msra.mxu1 %v5292_v24  ;;  %5306 = vmatprep.subr.bf16.mxu0 %v6306_v1  ;;  %v2131_v24 = vld [vmem:[%s7432_s12 + $0x48] sm:$0xff] }
 0x62f   :  { %5309 = vmatprep.subr.bf16.mxu1 %v6306_v1  ;;  %v5337_v25 = vpack.c.bf16 %v2131_v24, %v2130_v23 }
 0x631   :  { %4798 = vmatmul.mubr.msk.f32.vlgmr.msra.gmra.mrb[36].mxu1 %vm1829_vm7, %v7043_v45  ;;  %5308 = vmatpush3.bf16.msra.mxu0 %v5307_v29  ;;  %v2221_v45 = vld [vmem:[%s7433_s2] sm:$0xff] }
 0x632   :  { %4800 = vmatprep.mubr.msk.f32.mxu1 %vm6307_vm0, %v6308_v2  ;;  %5311 = vmatpush3.bf16.msra.mxu1 %v5310_v30  ;;  %v5340_v49 = vpack.c.bf16 %v2222_v46, %v2221_v45 }
 0x633   :  { %5312 = vmatprep.subr.bf16.mxu1 %v6306_v1  ;;  %5324 = vmatprep.subr.bf16.mxu0 %v6306_v1 }
 0x635   :  { %4801 = vmatmul.mubr.msk.f32.gmra.mrb[38].mxu1 %vm1829_vm7, %v7045_v48 }
 0x636   :  { %4803 = vmatprep.mubr.msk.f32.mxu1 %vm6307_vm0, %v6308_v2  ;;  %5314 = vmatpush3.bf16.msra.mxu1 %v5313_v33  ;;  %v4378_v33 = vld [vmem:[#allocation11] ss:$0 sm:$0xff] }
 0x637   :  { %5315 = vmatprep.subr.bf16.mxu1 %v6306_v1 }
 0x639   :  { %4804 = vmatmul.mubr.msk.f32.gmra.mrb[40].mxu1 %vm1829_vm7, %v7051_v54  ;;  %v2223_v54 = vld [vmem:[%s7433_s2 + $0x10] sm:$0xff] }
 0x63a   :  { %5317 = vmatpush3.bf16.msra.mxu1 %v5316_v36  ;;  %4855 = vmatprep.mubr.msk.f32.mxu1 %vm6307_vm0, %v6308_v2  ;;  %v5343_v59 = vpack.c.bf16 %v2224_v55, %v2223_v54  ;;  %v2314_v54 = vld [vmem:[%s7434_s17] sm:$0xff] }
 0x63b   :  { %5318 = vmatprep.subr.bf16.mxu1 %v6306_v1  ;;  %v2400_v55 = vld [vmem:[#allocation12] sm:$0xff] }
 0x63e   :  { %5320 = vmatpush3.bf16.msra.mxu1 %v5319_v39 }
 0x63f   :  { %5321 = vmatprep.subr.bf16.mxu1 %v6306_v1 }
 0x642   :  { %5323 = vmatpush3.bf16.msra.mxu1 %v5322_v42 }
 0x643   :  { %5339 = vmatprep.subr.bf16.mxu1 %v6306_v1 }
 0x6f0   :  { %v1703_v48 = vpop.f32.mrb[30].mxu1 }
 0x6f1   :  { %4827 = vmatmul.mubr.msk.f32.vlgmr.msra.gmra.mrb[38].mxu0 %vm1829_vm7, %v1703_v48  ;;  %v1795_v52 = vpop.f32.mrb[32].mxu0  ;;  %v4755_v53 = vpop.f32.mrb[31].mxu1 }
 0x6f2   :  { %4856 = vmatmul.mubr.msk.f32.vlgmr.msra.gmra.mrb[42].mxu1 %vm1829_vm7, %v1795_v52  ;;  %4829 = vmatprep.mubr.msk.f32.mxu0 %vm6307_vm0, %v6308_v2  ;;  %v4770_v56 = vpop.f32.mrb[33].mxu0 }
 0x6f3   :  { %4858 = vmatprep.mubr.msk.f32.mxu1 %vm6307_vm0, %v6308_v2  ;;  %5326 = vmatpush3.bf16.msra.mxu0 %v5325_v47 }
 0x6f4   :  { %v1708_v58 = vpop.f32.mrb[32].mxu1  ;;  %5341 = vmatpush3.bf16.msra.mxu1 %v5340_v49  ;;  %5327 = vmatprep.subr.bf16.mxu0 %v6306_v1 }
 0x6f5   :  { %4830 = vmatmul.mubr.msk.f32.gmra.mrb[40].mxu0 %vm1829_vm7, %v1708_v58  ;;  %v1800_v62 = vpop.f32.mrb[34].mxu0  ;;  %v4758_v63 = vpop.f32.mrb[33].mxu1  ;;  %5342 = vmatprep.subr.bf16.mxu1 %v6306_v1 }
 0x6f6   :  { %4859 = vmatmul.mubr.msk.f32.gmra.mrb[44].mxu1 %vm1829_vm7, %v1800_v62  ;;  %4832 = vmatprep.mubr.msk.f32.mxu0 %vm6307_vm0, %v6308_v2  ;;  %v4773_v4 = vpop.f32.mrb[35].mxu0 }
 0x6f7   :  { %4861 = vmatprep.mubr.msk.f32.mxu1 %vm6307_vm0, %v6308_v2  ;;  %5329 = vmatpush3.bf16.msra.mxu0 %v5328_v57 }
 0x6f8   :  { %v1713_v6 = vpop.f32.mrb[34].mxu1  ;;  %5344 = vmatpush3.bf16.msra.mxu1 %v5343_v59  ;;  %5330 = vmatprep.subr.bf16.mxu0 %v6306_v1 }
 0x6f9   :  { %4833 = vmatmul.mubr.msk.f32.gmra.mrb[42].mxu0 %vm1829_vm7, %v1713_v6  ;;  %v1805_v8 = vpop.f32.mrb[36].mxu0  ;;  %v4761_v9 = vpop.f32.mrb[35].mxu1  ;;  %5345 = vmatprep.subr.bf16.mxu1 %v6306_v1 }
 0x6fa   :  { %4862 = vmatmul.mubr.msk.f32.gmra.mrb[46].mxu1 %vm1829_vm7, %v1805_v8  ;;  %v4776_v10 = vpop.f32.mrb[37].mxu0  ;;  %4884 = vmatprep.mubr.msk.f32.mxu0 %vm6307_vm0, %v6308_v2 }
 0x6fb   :  { %5332 = vmatpush3.bf16.msra.mxu0 %v5331_v5  ;;  %4913 = vmatprep.mubr.msk.f32.mxu1 %vm6307_vm0, %v6308_v2  ;;  %v2315_v10 = vld [vmem:[%s7434_s17 + $0x8] sm:$0xf] }
 0x6fc   :  { %5347 = vmatpush3.bf16.msra.mxu1 %v5346_v7  ;;  %5333 = vmatprep.subr.bf16.mxu0 %v6306_v1 }
 0x6fd   :  { %5348 = vmatprep.subr.bf16.mxu1 %v6306_v1 }
 0x6ff   :  { %5335 = vmatpush3.bf16.msra.mxu0 %v5334_v20  ;;  %v2662_v20 = vld [vmem:[%s7435_s0 + $0x8] sm:$0xff] }
 0x700   :  { %5350 = vmatpush3.bf16.msra.mxu1 %v5349_v22  ;;  %5336 = vmatprep.subr.bf16.mxu0 %v6306_v1  ;;  %v5374_v24 = vpack.c.bf16 %v2662_v20, %v2661_v19 }
 0x701   :  { %5351 = vmatprep.subr.bf16.mxu1 %v6306_v1 }
 0x703   :  { %5338 = vmatpush3.bf16.msra.mxu0 %v5337_v25  ;;  %v2663_v25 = vld [vmem:[%s7435_s0 + $0x10] sm:$0xff] }
 0x704   :  { %v1904_v11 = vpop.f32.mrb[36].mxu1  ;;  %5353 = vmatpush3.bf16.msra.mxu1 %v5352_v28  ;;  %v2573_v28 = vld [vmem:[#allocation15 + $0x8] sm:$0xf] }
 0x705   :  { %v4799_v12 = vpop.f32.mrb[37].mxu1 }
 0x706   :  { %v2485_v12 = vld [vmem:[#allocation14] sm:$0xff] }
 0x708   :  { %v1909_v13 = vpop.f32.mrb[38].mxu1 }
 0x709   :  { %v4802_v14 = vpop.f32.mrb[39].mxu1 }
 0x70c   :  { %v1914_v15 = vpop.f32.mrb[40].mxu1 }
 0x70d   :  { %v4805_v16 = vpop.f32.mrb[41].mxu1 }
 0x7c4   :  { %v1993_v29 = vpop.f32.mrb[38].mxu0 }
 0x7c5   :  { %v1994_v30 = vadd.f32 %v1993_v29, %v1904_v11  ;;  %v2092_v31 = vpop.f32.mrb[42].mxu1  ;;  %v4828_v32 = vpop.f32.mrb[39].mxu0  ;;  %v2401_v11 = vld [vmem:[#allocation12 + $0x8] sm:$0xf]  ;;  %v5378_v29 = vpack.c.bf16 %v2664_v26, %v2663_v25  ;;  %v3099_v26 = vld [vmem:[#allocation18] sm:$0xff] }
 0x7c6   :  { %v4857_v34 = vpop.f32.mrb[43].mxu1 }
 0x7c7   :  { %v2106_v35 = vadd.f32 %v2092_v31, %v1994_v30  ;;  %v2665_v30 = vld [vmem:[%s7435_s0 + $0x20] sm:$0xff]  ;;  %v2666_v31 = vld [vmem:[%s7435_s0 + $0x28] sm:$0xff] }
 0x7c8   :  { %v1998_v36 = vpop.f32.mrb[40].mxu0  ;;  %v5382_v32 = vpack.c.bf16 %v2666_v31, %v2665_v30  ;;  %v2656_v34 = vld [vmem:[%s7438_s30 + $0x8] sm:$0xff]  ;;  %v3404_v30 = vld [vmem:[#allocation24] sm:$0xff]  ;;  %v3405_v31 = vld [vmem:[#allocation24 + $0x8] sm:$0xff] }
 0x7c9   :  { %v2116_v37 = vadd.f32 %v4378_v33, %v2106_v35  ;;  %v1999_v38 = vadd.f32 %v1998_v36, %v1909_v13  ;;  %v2097_v39 = vpop.f32.mrb[44].mxu1  ;;  %v4831_v40 = vpop.f32.mrb[41].mxu0  ;;  %v2572_v13 = vld [vmem:[#allocation15] sm:$0xff]  ;;  %v2657_v36 = vld [vmem:[%s7438_s30 + $0x10] sm:$0xff] }
 0x7ca   :  { %v4860_v41 = vpop.f32.mrb[45].mxu1  ;;  %v2660_v40 = vld [vmem:[%s7438_s30 + $0x28] sm:$0xff] }
 0x7cb   :  { %v2119_v42 = vmax.f32 %v2116_v37, 0.0  ;;  %v2107_v43 = vadd.f32 %v2097_v39, %v1999_v38  ;;  %v2658_v37 = vld [vmem:[%s7438_s30 + $0x18] sm:$0xff]  ;;  %v2659_v39 = vld [vmem:[%s7438_s30 + $0x20] sm:$0xff] }
 0x7cc   :  { %v2003_v44 = vpop.f32.mrb[42].mxu0  ;;  %v5390_v38 = vpack.c.bf16 %v2658_v37, %v2657_v36  ;;  %v5394_v41 = vpack.c.bf16 %v2660_v40, %v2659_v39  ;;  %v3400_v36 = vld [vmem:[%s7442_s25] sm:$0xff]  ;;  %v3401_v37 = vld [vmem:[%s7442_s25 + $0x8] sm:$0xff] }
 0x7cd   :  { %v2117_v45 = vadd.f32 %v4378_v33, %v2107_v43  ;;  %v2004_v46 = vadd.f32 %v2003_v44, %v1914_v15  ;;  %4885 = vmatmul.mubr.msk.f32.vlgmr.msra.gmra.mrb[44].mxu0 %vm1829_vm7, %v2119_v42  ;;  %4914 = vmatmul.mubr.msk.f32.vlgmr.msra.gmra.mrb[48].mxu1 %vm1829_vm7, %v2119_v42  ;;  %v2102_v47 = vpop.f32.mrb[46].mxu1  ;;  %v4834_v48 = vpop.f32.mrb[43].mxu0  ;;  %v2829_v42 = vld [vmem:[%s7439_s14] sm:$0xff]  ;;  %v2830_v43 = vld [vmem:[%s7439_s14 + $0x8] sm:$0xff] }
 0x7ce   :  { %4887 = vmatprep.mubr.msk.f32.mxu0 %vm6307_vm0, %v6308_v2  ;;  %4916 = vmatprep.mubr.msk.f32.mxu1 %vm6307_vm0, %v6308_v2  ;;  %v4863_v49 = vpop.f32.mrb[47].mxu1  ;;  %v5398_v44 = vpack.c.bf16 %v2830_v43, %v2829_v42  ;;  %v3406_v39 = vld [vmem:[#allocation24 + $0x10] sm:$0xff]  ;;  %v3407_v40 = vld [vmem:[#allocation24 + $0x18] sm:$0xff] }
 0x7cf   :  { %v2120_v50 = vmax.f32 %v2117_v45, 0.0  ;;  %v2108_v51 = vadd.f32 %v2102_v47, %v2004_v46  ;;  %v2929_v45 = vld [vmem:[%s7440_s27] sm:$0xff]  ;;  %v2930_v46 = vld [vmem:[%s7440_s27 + $0x8] sm:$0xff]  ;;  %v2931_v47 = vld [vmem:[%s7440_s27 + $0x10] sm:$0xff]  ;;  %v5446_v42 = vpack.c.bf16 %v3407_v40, %v3406_v39 }
 0x7d0   :  { %v5410_v48 = vpack.c.bf16 %v2930_v46, %v2929_v45  ;;  %v2932_v49 = vld [vmem:[%s7440_s27 + $0x18] sm:$0xff]  ;;  %v3402_v43 = vld [vmem:[%s7442_s25 + $0x10] sm:$0xff] }
 0x7d1   :  { %v2118_v52 = vadd.f32 %v4378_v33, %v2108_v51  ;;  %4888 = vmatmul.mubr.msk.f32.gmra.mrb[46].mxu0 %vm1829_vm7, %v2120_v50  ;;  %4917 = vmatmul.mubr.msk.f32.gmra.mrb[50].mxu1 %vm1829_vm7, %v2120_v50  ;;  %v2655_v33 = vld [vmem:[%s7438_s30] sm:$0xff]  ;;  %v5414_v50 = vpack.c.bf16 %v2932_v49, %v2931_v47  ;;  %v2831_v51 = vld [vmem:[%s7439_s14 + $0x10] sm:$0xff]  ;;  %v4113_v39 = vld [vmem:[%s7443_s6 + $0x18] sm:$0xff] }
 0x7d2   :  { %4890 = vmatprep.mubr.msk.f32.mxu0 %vm6307_vm0, %v6308_v2  ;;  %4919 = vmatprep.mubr.msk.f32.mxu1 %vm6307_vm0, %v6308_v2  ;;  %v5386_v35 = vpack.c.bf16 %v2656_v34, %v2655_v33  ;;  %v3251_v33 = vld [vmem:[#allocation21] sm:$0xff]  ;;  %v5443_v34 = vpack.c.bf16 %v3405_v31, %v3404_v30  ;;  %v3555_v45 = vld [vmem:[#allocation26] sm:$0xff]  ;;  %v3556_v46 = vld [vmem:[#allocation26 + $0x8] sm:$0xff] }
 0x7d3   :  { %v2121_v53 = vmax.f32 %v2118_v52, 0.0  ;;  %v2832_v52 = vld [vmem:[%s7439_s14 + $0x18] sm:$0xff]  ;;  %v3557_v49 = vld [vmem:[#allocation26 + $0x10] sm:$0xff]  ;;  %v3959_v31 = vld [vmem:[#allocation38 + $0x10] sm:$0xff] }
 0x7d5   :  { %4891 = vmatmul.mubr.msk.f32.gmra.mrb[48].mxu0 %vm1829_vm7, %v2121_v53  ;;  %4920 = vmatmul.mubr.msk.f32.gmra.mrb[52].mxu1 %vm1829_vm7, %v2121_v53 }
 0x7d6   :  { %4928 = vmatprep.mubr.msk.f32.mxu1 %vm1624_vm6, %v2314_v54  ;;  %4937 = vmatprep.mubr.msk.f32.mxu0 %vm1624_vm6, %v2400_v55 }
 0x8a0   :  { %v2207_v56 = vpop.f32.mrb[44].mxu0  ;;  %v2297_v57 = vpop.f32.mrb[48].mxu1 }
 0x8a1   :  { %v2311_v58 = vmax.f32 %v2207_v56, %v2297_v57  ;;  %v4886_v59 = vpop.f32.mrb[45].mxu0  ;;  %v4915_v60 = vpop.f32.mrb[49].mxu1  ;;  %v5402_v56 = vpack.c.bf16 %v2832_v52, %v2831_v51 }
 0x8a2   :  { %v2834_v59 = vld [vmem:[%s7439_s14 + $0x28] sm:$0xff] }
 0x8a4   :  { %v2212_v61 = vpop.f32.mrb[46].mxu0  ;;  %v2302_v62 = vpop.f32.mrb[50].mxu1 }
 0x8a5   :  { %v2312_v63 = vmax.f32 %v2212_v61, %v2302_v62  ;;  %v4889_v0 = vpop.f32.mrb[47].mxu0  ;;  %v4918_v3 = vpop.f32.mrb[51].mxu1  ;;  %v2933_v61 = vld [vmem:[%s7440_s27 + $0x20] sm:$0xff]  ;;  %v2934_v62 = vld [vmem:[%s7440_s27 + $0x28] sm:$0xff] }
 0x8a6   :  { %v3016_v0 = vld [vmem:[%s7441_s3] sm:$0xff]  ;;  %v3017_v3 = vld [vmem:[%s7441_s3 + $0x8] sm:$0xff] }
 0x8a7   :  { %v5354_v4 = vpack.c.bf16 %v2312_v63, %v2311_v58  ;;  %v2833_v58 = vld [vmem:[%s7439_s14 + $0x20] sm:$0xff]  ;;  %v5418_v63 = vpack.c.bf16 %v2934_v62, %v2933_v61  ;;  %v3796_v61 = vld [vmem:[#allocation33 + $0x10] sm:$0xff]  ;;  %v3797_v62 = vld [vmem:[#allocation33 + $0x18] sm:$0xff] }
 0x8a8   :  { %v2217_v5 = vpop.f32.mrb[48].mxu0  ;;  %v2307_v6 = vpop.f32.mrb[52].mxu1  ;;  %v5406_v60 = vpack.c.bf16 %v2834_v59, %v2833_v58  ;;  %v3794_v58 = vld [vmem:[#allocation33] sm:$0xff]  ;;  %v3795_v59 = vld [vmem:[#allocation33 + $0x8] sm:$0xff] }
 0x8a9   :  { %v2313_v7 = vmax.f32 %v2217_v5, %v2307_v6  ;;  %v4892_v8 = vpop.f32.mrb[49].mxu0  ;;  %v4921_v9 = vpop.f32.mrb[53].mxu1  ;;  %5355 = vmatprep.subr.bf16.mxu1 %v5354_v4  ;;  %5359 = vmatprep.subr.bf16.mxu0 %v5354_v4  ;;  %v4403_v5 = vld [vmem:[#allocation17] ss:$0 sm:$0xff] }
 0x8aa   :  { %5357 = vmatpush3.bf16.msra.mxu1 %v5354_v4  ;;  %5361 = vmatpush3.bf16.msra.mxu0 %v5354_v4  ;;  %v5422_v4 = vpack.c.bf16 %v3017_v3, %v3016_v0 }
 0x8ab   :  { %4926 = vmatprep.subr.msk.mxu1 %vm557_vm1, %v2313_v7  ;;  %4935 = vmatprep.subr.msk.mxu0 %vm557_vm1, %v2313_v7 }
 0x8ae   :  { %4927 = vmatpush3.msk.msra.mxu1 %vm557_vm1, %v2313_v7  ;;  %4936 = vmatpush3.msk.msra.mxu0 %vm557_vm1, %v2313_v7 }
 0x8af   :  { %4929 = vmatmul.mubr.msk.f32.vlgmr.msra.gmra.mrb[54].mxu1 %vm1624_vm6, %v2315_v10  ;;  %4938 = vmatmul.mubr.msk.f32.vlgmr.msra.gmra.mrb[50].mxu0 %vm1624_vm6, %v2401_v11  ;;  %v3018_v10 = vld [vmem:[%s7441_s3 + $0x10] sm:$0xff]  ;;  %v3019_v11 = vld [vmem:[%s7441_s3 + $0x18] sm:$0xff] }
 0x8b0   :  { %4944 = vmatprep.mubr.msk.f32.mxu1 %vm2487_vm8, %v2485_v12  ;;  %4951 = vmatprep.mubr.msk.f32.mxu0 %vm2487_vm8, %v2572_v13 }
 0x982   :  { %v4930_v14 = vpop.f32.mrb[54].mxu1  ;;  %v4939_v15 = vpop.f32.mrb[50].mxu0 }
 0x983   :  { %v2484_v16 = vmax.f32 %v4930_v14, %v4939_v15  ;;  %v2391_v17 = vpop.f32.mrb[55].mxu1  ;;  %v2474_v18 = vpop.f32.mrb[51].mxu0  ;;  %v5426_v14 = vpack.c.bf16 %v3019_v11, %v3018_v10  ;;  %v3020_v15 = vld [vmem:[%s7441_s3 + $0x20] sm:$0xff]  ;;  %v3642_v11 = vld [vmem:[#allocation29] sm:$0x3] }
 0x984   :  { %v2483_v21 = vmax.f32 %v2391_v17, %v2474_v18 }
 0x986   :  { %v5362_v23 = vpack.c.bf16 %v2484_v16, %v2483_v21 }
 0x988   :  { %5364 = vmatprep.subr.msk.bf16.mxu1 %vm7209_vm10, %v5362_v23  ;;  %5370 = vmatprep.subr.msk.bf16.mxu0 %vm7209_vm10, %v5362_v23 }
 0x989   :  { %5367 = vmatpush3.bf16.msk.msra.mxu1 %vm7209_vm10, %v5362_v23  ;;  %5373 = vmatpush3.bf16.msk.msra.mxu0 %vm7209_vm10, %v5362_v23 }
 0x98a   :  { %5375 = vmatprep.subr.bf16.mxu1 %v5374_v24  ;;  %5411 = vmatprep.subr.bf16.mxu0 %v5410_v48 }
 0x98c   :  { %4945 = vmatmul.mubr.msk.f32.vlgmr.msra.gmra.mrb[56].mxu1 %vm2487_vm8, %v2486_v27  ;;  %4952 = vmatmul.mubr.msk.f32.vlgmr.msra.gmra.mrb[52].mxu0 %vm2487_vm8, %v2573_v28  ;;  %v3176_v27 = vld [vmem:[#allocation20] sm:$0xff] }
 0x98d   :  { %5377 = vmatpush3.bf16.msra.mxu1 %v5374_v24  ;;  %4966 = vmatprep.mubr.msk.f32.mxu1 %vm2667_vm11, %v2483_v21 }
 0x98e   :  { %5379 = vmatprep.subr.bf16.mxu1 %v5378_v29  ;;  %5413 = vmatpush3.bf16.msra.mxu0 %v5410_v48  ;;  %v5455_v48 = vpack.c.bf16 %v3556_v46, %v3555_v45  ;;  %v4117_v45 = vld [vmem:[%s7443_s6 + $0x38] sm:$0xff] }
 0x98f   :  { %5415 = vmatprep.subr.bf16.mxu0 %v5414_v50 }
 0x991   :  { %5381 = vmatpush3.bf16.msra.mxu1 %v5378_v29 }
 0x992   :  { %5383 = vmatprep.subr.bf16.mxu1 %v5382_v32  ;;  %5417 = vmatpush3.bf16.msra.mxu0 %v5414_v50  ;;  %v3558_v50 = vld [vmem:[#allocation26 + $0x18] sm:$0xff] }
 0x993   :  { %5419 = vmatprep.subr.bf16.mxu0 %v5418_v63  ;;  %v5458_v51 = vpack.c.bf16 %v3558_v50, %v3557_v49  ;;  %v4422_v50 = vld [vmem:[#allocation35] ss:$0 sm:$0xff] }
 0x995   :  { %5385 = vmatpush3.bf16.msra.mxu1 %v5382_v32 }
 0x996   :  { %5387 = vmatprep.subr.bf16.mxu1 %v5386_v35  ;;  %5421 = vmatpush3.bf16.msra.mxu0 %v5418_v63  ;;  %v5464_v63 = vpack.c.bf16 %v3797_v62, %v3796_v61 }
 0x997   :  { %5423 = vmatprep.subr.bf16.mxu0 %v5422_v4 }
 0x998   :  { %4967 = vmatmul.mubr.msk.f32.vlgmr.msra.gmra.mrb[58].mxu1 %vm2667_vm11, %v2484_v16  ;;  %v3021_v16 = vld [vmem:[%s7441_s3 + $0x28] sm:$0xff] }
 0x999   :  { %5389 = vmatpush3.bf16.msra.mxu1 %v5386_v35  ;;  %v5430_v17 = vpack.c.bf16 %v3021_v16, %v3020_v15  ;;  %v3792_v16 = vld [vmem:[#allocation32 + $0x10] sm:$0xff] }
 0x99a   :  { %5391 = vmatprep.subr.bf16.mxu1 %v5390_v38 }
 0x99d   :  { %5393 = vmatpush3.bf16.msra.mxu1 %v5390_v38  ;;  %v3326_v38 = vld [vmem:[#allocation23] sm:$0xff] }
 0x99e   :  { %5395 = vmatprep.subr.bf16.mxu1 %v5394_v41 }
 0x9a1   :  { %5397 = vmatpush3.bf16.msra.mxu1 %v5394_v41  ;;  %v5449_v41 = vpack.c.bf16 %v3401_v37, %v3400_v36  ;;  %v4111_v36 = vld [vmem:[%s7443_s6 + $0x8] sm:$0xff] }
 0x9a2   :  { %5399 = vmatprep.subr.bf16.mxu1 %v5398_v44 }
 0xa5f   :  { %v4946_v53 = vpop.f32.mrb[56].mxu1  ;;  %v4953_v54 = vpop.f32.mrb[52].mxu0 }
 0xa60   :  { %v2563_v55 = vpop.f32.mrb[57].mxu1  ;;  %v2646_v57 = vpop.f32.mrb[53].mxu0 }
 0xa61   :  { %4981 = vmatprep.mubr.msk.f32.mxu1 %vm2667_vm11, %v2563_v55 }
 0xa62   :  { %4982 = vmatmul.mubr.msk.f32.vlgmr.msra.gmra.mrb[58].mxu1 %vm2667_vm11, %v4946_v53 }
 0xa63   :  { %5401 = vmatpush3.bf16.msra.mxu1 %v5398_v44  ;;  %4996 = vmatprep.mubr.msk.f32.mxu1 %vm2667_vm11, %v2646_v57  ;;  %v3403_v44 = vld [vmem:[%s7442_s25 + $0x18] sm:$0xff] }
 0xa64   :  { %5403 = vmatprep.subr.bf16.mxu1 %v5402_v56  ;;  %v5452_v47 = vpack.c.bf16 %v3403_v44, %v3402_v43  ;;  %v4116_v44 = vld [vmem:[%s7443_s6 + $0x30] sm:$0xff] }
 0xa65   :  { %v5494_v46 = vpack.c.bf16 %v4117_v45, %v4116_v44 }
 0xa67   :  { %5405 = vmatpush3.bf16.msra.mxu1 %v5402_v56 }
 0xa68   :  { %5407 = vmatprep.subr.bf16.mxu1 %v5406_v60 }
 0xa6b   :  { %5409 = vmatpush3.bf16.msra.mxu1 %v5406_v60  ;;  %v5461_v60 = vpack.c.bf16 %v3795_v59, %v3794_v58 }
 0xa6c   :  { %5048 = vmatprep.subr.mxu1 %v6308_v2 }
 0xa6e   :  { %4997 = vmatmul.mubr.msk.f32.vlgmr.msra.gmra.mrb[58].mxu1 %vm2667_vm11, %v4953_v54 }
 0xa6f   :  { %5050 = vmatprep.mubr.msk.f32.mxu1 %vm6307_vm0, %v6308_v2 }
 0xb41   :  { %v4998_v6 = vpop.f32.mrb[58].mxu1 }
 0xb42   :  { %v2926_v7 = vadd.f32 %v4998_v6, %v4403_v5  ;;  %v2907_v8 = vpop.f32.mrb[59].mxu1  ;;  %v4417_v6 = vld [vmem:[#allocation27] ss:$0 sm:$0xff] }
 0xb43   :  { %v2925_v9 = vadd.f32 %v4403_v5, %v2907_v8 }
 0xb44   :  { %v2928_v13 = vmax.f32 %v2926_v7, 0.0 }
 0xb45   :  { %v2927_v12 = vmax.f32 %v2925_v9, 0.0 }
 0xb47   :  { %5011 = vmatprep.mubr.msk.f32.mxu0 %vm2667_vm11, %v2927_v12 }
 0xb48   :  { %5012 = vmatmul.mubr.msk.f32.vlgmr.msra.gmra.mrb[54].mxu0 %vm2667_vm11, %v2928_v13 }
 0xb49   :  { %5425 = vmatpush3.bf16.msra.mxu0 %v5422_v4  ;;  %5026 = vmatprep.mubr.msk.f32.mxu0 %vm2667_vm11, %v2927_v12  ;;  %v3790_v12 = vld [vmem:[#allocation32] sm:$0xff] }
 0xb4a   :  { %5427 = vmatprep.subr.bf16.mxu0 %v5426_v14 }
 0xb4d   :  { %5429 = vmatpush3.bf16.msra.mxu0 %v5426_v14  ;;  %v3716_v14 = vld [vmem:[#allocation30] sm:$0x3] }
 0xb4e   :  { %5431 = vmatprep.subr.bf16.mxu0 %v5430_v17 }
 0xb51   :  { %5433 = vmatpush3.bf16.msra.mxu0 %v5430_v17  ;;  %v3793_v17 = vld [vmem:[#allocation32 + $0x18] sm:$0xff] }
 0xb52   :  { %5434 = vmatprep.subr.bf16.mxu0 %v6306_v1 }
 0xb54   :  { %5027 = vmatmul.mubr.msk.f32.vlgmr.msra.gmra.mrb[56].mxu0 %vm2667_vm11, %v2928_v13  ;;  %v3791_v13 = vld [vmem:[#allocation32 + $0x8] sm:$0xff] }
 0xb55   :  { %5033 = vmatprep.mubr.msk.f32.mxu0 %vm6307_vm0, %v6308_v2  ;;  %v5467_v15 = vpack.c.bf16 %v3791_v13, %v3790_v12 }
 0xc1b   :  { %v5013_v18 = vpop.f32.mrb[54].mxu0 }
 0xc1c   :  { %v3007_v19 = vpop.f32.mrb[55].mxu0 }
 0xc27   :  { %v5028_v20 = vpop.f32.mrb[56].mxu0 }
 0xc28   :  { %v3098_v21 = vmax.f32 %v5013_v18, %v5028_v20  ;;  %v3088_v23 = vpop.f32.mrb[57].mxu0  ;;  %v5470_v18 = vpack.c.bf16 %v3793_v17, %v3792_v16  ;;  %v3954_v20 = vld [vmem:[#allocation36 + $0x8] sm:$0xff] }
 0xc29   :  { %v3097_v24 = vmax.f32 %v3007_v19, %v3088_v23  ;;  %v3953_v19 = vld [vmem:[#allocation36] sm:$0xff] }
 0xc2a   :  { %v5479_v23 = vpack.c.bf16 %v3954_v20, %v3953_v19 }
 0xc2b   :  { %v5435_v25 = vpack.c.bf16 %v3098_v21, %v3097_v24  ;;  %v3957_v21 = vld [vmem:[#allocation38] sm:$0xff]  ;;  %v3958_v24 = vld [vmem:[#allocation38 + $0x8] sm:$0xff] }
 0xc2d   :  { %5437 = vmatpush3.bf16.msk.msra.mxu0 %vm7209_vm10, %v5435_v25 }
 0xc2e   :  { %5438 = vmatprep.subr.bf16.mxu0 %v6306_v1 }
 0xc30   :  { %5034 = vmatmul.mubr.msk.f32.vlgmr.msra.gmra.mrb[58].mxu0 %vm2487_vm8, %v3099_v26  ;;  %v3956_v26 = vld [vmem:[#allocation36 + $0x18] sm:$0xff] }
 0xc31   :  { %5441 = vmatpush3.bf16.msk.msra.mxu0 %vm7209_vm10, %v5435_v25  ;;  %5040 = vmatprep.mubr.msk.f32.mxu0 %vm6307_vm0, %v6308_v2  ;;  %v3955_v25 = vld [vmem:[#allocation36 + $0x10] sm:$0xff] }
 0xc32   :  { %5043 = vmatprep.subr.mxu0 %v6308_v2  ;;  %v5482_v30 = vpack.c.bf16 %v3956_v26, %v3955_v25 }
 0xc34   :  { %5041 = vmatmul.mubr.msk.f32.vlgmr.msra.gmra.mrb[60].mxu0 %vm2487_vm8, %v3176_v27 }
 0xc35   :  { %5045 = vmatprep.mubr.msk.f32.mxu0 %vm6307_vm0, %v6308_v2 }
 0xd03   :  { %v3172_v28 = vpop.f32.mrb[58].mxu0 }
 0xd04   :  { %v5035_v29 = vpop.f32.mrb[59].mxu0 }
 0xd05   :  { %v5473_v29 = vpack.c.bf16 %v3958_v24, %v3957_v21 }
 0xd07   :  { %v3246_v32 = vpop.f32.mrb[60].mxu0 }
 0xd08   :  { %v3250_v22 = vmax.f32 %v3172_v28, %v3246_v32  ;;  %v5042_v35 = vpop.f32.mrb[61].mxu0  ;;  %v3960_v32 = vld [vmem:[#allocation38 + $0x18] sm:$0xff] }
 0xd09   :  { %v4110_v35 = vld [vmem:[%s7443_s6] sm:$0xff] }
 0xd0a   :  { %5044 = vmatpush3.msra.mxu0 %v3250_v22  ;;  %5049 = vmatpush3.msra.mxu1 %v3250_v22  ;;  %v5485_v37 = vpack.c.bf16 %v4111_v36, %v4110_v35 }
 0xd0b   :  { %5046 = vmatmul.mubr.msk.f32.vlgmr.msra.gmra.mrb[62].mxu0 %vm3252_vm12, %v3251_v33  ;;  %5442 = vmatprep.subr.bf16.mxu0 %v6306_v1 }
 0xd0c   :  { %5444 = vmatpush3.bf16.msra.mxu0 %v5443_v34  ;;  %5051 = vmatmul.mubr.msk.f32.vlgmr.msra.gmra.mrb[60].mxu1 %vm3252_vm12, %v3326_v38  ;;  %v5476_v34 = vpack.c.bf16 %v3960_v32, %v3959_v31  ;;  %v4112_v38 = vld [vmem:[%s7443_s6 + $0x10] sm:$0xff] }
 0xd0d   :  { %5445 = vmatprep.subr.bf16.mxu0 %v6306_v1  ;;  %5061 = vmatprep.mubr.msk.f32.mxu0 %vm6307_vm0, %v6308_v2  ;;  %v5488_v40 = vpack.c.bf16 %v4113_v39, %v4112_v38 }
 0xd0e   :  { %5448 = vmatprep.subr.bf16.mxu1 %v6306_v1  ;;  %5072 = vmatprep.mubr.msk.f32.mxu1 %vm6307_vm0, %v6308_v2 }
 0xd0f   :  { %5450 = vmatpush3.bf16.msra.mxu1 %v5449_v41  ;;  %v4114_v41 = vld [vmem:[%s7443_s6 + $0x20] sm:$0xff] }
 0xd10   :  { %5447 = vmatpush3.bf16.msra.mxu0 %v5446_v42  ;;  %5451 = vmatprep.subr.bf16.mxu1 %v6306_v1  ;;  %v4115_v42 = vld [vmem:[%s7443_s6 + $0x28] sm:$0xff] }
 0xd11   :  { %5454 = vmatprep.subr.bf16.mxu0 %v6306_v1  ;;  %v5491_v43 = vpack.c.bf16 %v4115_v42, %v4114_v41 }
 0xd13   :  { %5062 = vmatmul.mubr.msk.f32.vlgmr.msra.gmra.mrb[64].mxu0 %vm3408_vm13, %v3250_v22  ;;  %5453 = vmatpush3.bf16.msra.mxu1 %v5452_v47 }
 0xd14   :  { %5456 = vmatpush3.bf16.msra.mxu0 %v5455_v48  ;;  %5083 = vmatprep.mubr.msk.f32.mxu0 %vm6307_vm0, %v6308_v2 }
 0xd15   :  { %5457 = vmatprep.subr.bf16.mxu0 %v6306_v1  ;;  %5086 = vmatprep.subr.mxu1 %v6308_v2 }
 0xd18   :  { %5459 = vmatpush3.bf16.msra.mxu0 %v5458_v51 }
 0xd19   :  { %5460 = vmatprep.subr.bf16.mxu0 %v6306_v1 }
 0xdde   :  { %v3322_v52 = vpop.f32.mrb[62].mxu0 }
 0xddf   :  { %5073 = vmatmul.mubr.msk.f32.vlgmr.msra.gmra.mrb[62].mxu1 %vm3408_vm13, %v3322_v52  ;;  %v3396_v53 = vpop.f32.mrb[60].mxu1  ;;  %v5047_v54 = vpop.f32.mrb[63].mxu0 }
 0xde0   :  { %5084 = vmatmul.mubr.msk.f32.vlgmr.msra.gmra.mrb[66].mxu0 %vm3408_vm13, %v3396_v53  ;;  %v5052_v55 = vpop.f32.mrb[61].mxu1  ;;  %5088 = vmatprep.mubr.msk.f32.mxu1 %vm6307_vm0, %v6308_v2 }
 0xde1   :  { %5104 = vmatprep.mubr.msk.f32.mxu0 %vm6307_vm0, %v6308_v2  ;;  %5462 = vmatpush3.bf16.msra.mxu0 %v5461_v60  ;;  %v4428_v60 = vld [vmem:[#allocation42] ss:$0 sm:$0xff] }
 0xde2   :  { %5463 = vmatprep.subr.bf16.mxu0 %v6306_v1 }
 0xde5   :  { %5465 = vmatpush3.bf16.msra.mxu0 %v5464_v63 }
 0xde6   :  { %v3478_v56 = vpop.f32.mrb[64].mxu0  ;;  %5472 = vmatprep.subr.bf16.mxu0 %v6306_v1 }
 0xde7   :  { %v5063_v57 = vpop.f32.mrb[65].mxu0 }
 0xde8   :  { %v4425_v57 = vld [vmem:[#allocation39] ss:$0 sm:$0xff] }
 0xeb2   :  { %v3551_v0 = vpop.f32.mrb[62].mxu1 }
 0xeb3   :  { %v3552_v3 = vadd.f32 %v3551_v0, %v3478_v56  ;;  %v3628_v4 = vpop.f32.mrb[66].mxu0  ;;  %v5074_v5 = vpop.f32.mrb[63].mxu1  ;;  %v6310_v0 = vmov 0  }
 0xeb4   :  { %v5085_v7 = vpop.f32.mrb[67].mxu0  ;;  %5603 = vset.pattern.permute.xlu1 %v6310_v0  ;;  %5604 = vset.pattern.permute.xlu0 %v6310_v0 }
 0xeb5   :  { %v3632_v8 = vadd.f32 %v3628_v4, %v3552_v3  ;;  %v4429_v3 = vld [vmem:[#allocation2] ss:$0 sm:$0xff] }
 0xeb7   :  { %v3640_v9 = vadd.f32 %v4417_v6, %v3632_v8  ;;  %v4426_v6 = vld [vmem:[#allocation41] ss:$0 sm:$0xff] }
 0xeb9   :  { %v3641_v10 = vmax.f32 %v3640_v9, 0.0 }
 0xebb   :  { %5087 = vmatpush3.msra.mxu1 %v3641_v10 }
 0xebc   :  { %5089 = vmatmul.mubr.msk.f32.vlgmr.msra.gmra.mrb[64].mxu1 %vm3252_vm12, %v3642_v11  ;;  %5091 = vmatprep.subr.mxu1 %v6308_v2 }
 0xebd   :  { %5092 = vmatpush3.msra.mxu1 %v3641_v10  ;;  %5093 = vmatprep.mubr.msk.f32.mxu1 %vm6307_vm0, %v6308_v2 }
 0xebe   :  { %5466 = vmatprep.subr.bf16.mxu1 %v6306_v1 }
 0xec0   :  { %5094 = vmatmul.mubr.msk.f32.vlgmr.msra.gmra.mrb[66].mxu1 %vm3252_vm12, %v3716_v14 }
 0xec1   :  { %5468 = vmatpush3.bf16.msra.mxu1 %v5467_v15  ;;  %5115 = vmatprep.mubr.msk.f32.mxu1 %vm6307_vm0, %v6308_v2 }
 0xec2   :  { %5469 = vmatprep.subr.bf16.mxu1 %v6306_v1 }
 0xec5   :  { %5471 = vmatpush3.bf16.msra.mxu1 %v5470_v18 }
 0xec6   :  { %5478 = vmatprep.subr.bf16.mxu1 %v6306_v1 }
 0xf8f   :  { %v3712_v27 = vpop.f32.mrb[64].mxu1 }
 0xf90   :  { %v5090_v28 = vpop.f32.mrb[65].mxu1  ;;  %5116 = vmatmul.mubr.msk.f32.vlgmr.msra.gmra.mrb[68].mxu1 %vm3408_vm13, %v3712_v27 }
 0xf91   :  { %5480 = vmatpush3.bf16.msra.mxu1 %v5479_v23  ;;  %5137 = vmatprep.mubr.msk.f32.mxu1 %vm6307_vm0, %v6308_v2 }
 0xf92   :  { %5481 = vmatprep.subr.bf16.mxu1 %v6306_v1 }
 0xf93   :  { %v3786_v22 = vpop.f32.mrb[66].mxu1 }
 0xf94   :  { %5105 = vmatmul.mubr.msk.f32.vlgmr.msra.gmra.mrb[68].mxu0 %vm3408_vm13, %v3786_v22  ;;  %v5095_v33 = vpop.f32.mrb[67].mxu1 }
 0xf95   :  { %5474 = vmatpush3.bf16.msra.mxu0 %v5473_v29  ;;  %5483 = vmatpush3.bf16.msra.mxu1 %v5482_v30 }
 0xf96   :  { %5475 = vmatprep.subr.bf16.mxu0 %v6306_v1  ;;  %5126 = vmatprep.mubr.msk.f32.mxu0 %vm6307_vm0, %v6308_v2 }
 0xf98   :  { %5138 = vmatmul.mubr.msk.f32.vlgmr.msra.gmra.mrb[70].mxu1 %vm3408_vm13, %v3712_v27 }
 0xf99   :  { %5477 = vmatpush3.bf16.msra.mxu0 %v5476_v34 }
 0xf9a   :  { %5484 = vmatprep.subr.bf16.mxu0 %v6306_v1 }
 0xf9c   :  { %5127 = vmatmul.mubr.msk.f32.vlgmr.msra.gmra.mrb[70].mxu0 %vm3408_vm13, %v3786_v22 }
 0xf9d   :  { %5486 = vmatpush3.bf16.msra.mxu0 %v5485_v37  ;;  %5156 = vmatprep.mubr.msk.f32.mxu0 %vm6307_vm0, %v6308_v2  ;;  %vm4225_vm0 = vcmask 25600  }
 0xf9e   :  { %5487 = vmatprep.subr.bf16.mxu0 %v6306_v1 }
 0xfa1   :  { %5489 = vmatpush3.bf16.msra.mxu0 %v5488_v40 }
 0xfa2   :  { %5490 = vmatprep.subr.bf16.mxu0 %v6306_v1 }
 0xfa5   :  { %5492 = vmatpush3.bf16.msra.mxu0 %v5491_v43 }
 0xfa6   :  { %5493 = vmatprep.subr.bf16.mxu0 %v6306_v1 }
 0xfa9   :  { %5495 = vmatpush3.bf16.msra.mxu0 %v5494_v46 }
0x1063   :  { %v3940_v47 = vpop.f32.mrb[68].mxu1 }
0x1064   :  { %v5117_v48 = vpop.f32.mrb[69].mxu1 }
0x1067   :  { %v3867_v49 = vpop.f32.mrb[68].mxu0 }
0x1068   :  { %v3941_v2 = vadd.f32 %v3940_v47, %v3867_v49  ;;  %v5106_v51 = vpop.f32.mrb[69].mxu0 }
0x106a   :  { %v3951_v52 = vadd.f32 %v4422_v50, %v3941_v2 }
0x106b   :  { %v4097_v53 = vpop.f32.mrb[70].mxu1 }
0x106c   :  { %v3952_v54 = vmax.f32 %v3951_v52, 0.0  ;;  %v5139_v55 = vpop.f32.mrb[71].mxu1 }
0x106e   :  { %5157 = vmatmul.mubr.msk.f32.vlgmr.msra.gmra.mrb[72].mxu0 %vm4125_vm14, %v3952_v54 }
0x106f   :  { %v4027_v56 = vpop.f32.mrb[70].mxu0 }
0x1070   :  { %v4098_v58 = vadd.f32 %v4097_v53, %v4027_v56  ;;  %v5128_v1 = vpop.f32.mrb[71].mxu0 }
0x1072   :  { %v4108_v59 = vadd.f32 %v4425_v57, %v4098_v58 }
0x1074   :  { %v4109_v61 = vmax.f32 %v4108_v59, 0.0 }
0x1076   :  { %v4206_v62 = vmul.f32 %v4428_v60, %v4109_v61 }
0x1078   :  { %v4208_v63 = vsel %vm4207_vm15, %v4206_v62, 0.0 }
0x1079   :  { %4209 = vadd.xlane.f32.xlu0 %v4208_v63 }
0x1106   :  { %v4210_v4 = vpop.xlane.xlu0 %4209 }
0x1107   :  { %v4218_v5 = vadd.f32 %v4429_v3, %v4210_v4 }
0x1109   :  { %4221 = vperm.xlu1 %5603, %v4218_v5  }
0x1141   :  { %v4195_v7 = vpop.f32.mrb[72].mxu0 }
0x1142   :  { %v4196_v8 = vadd.f32 %v4426_v6, %v4195_v7  ;;  %v5158_v9 = vpop.f32.mrb[73].mxu0 }
0x1144   :  { %v4226_v10 = vsel %vm4225_vm0, %v4196_v8, 0.0 }
0x1145   :  { %4227 = vadd.xlane.f32.xlu0 %v4226_v10 }
0x1188   :  { %v4222_v11 = vpop.permute.xlu1 %4221 }
0x1189   :  { %v4224_v13 = vadd.f32 %v4222_v11, %v4196_v8 }
0x11d2   :  { %v4228_v12 = vpop.xlane.xlu0 %4227 }
0x11d3   :  { %v4230_v14 = vmul.f32 0.25, %v4228_v12 }
0x11d5   :  { %v4231_v15 = vsub.f32 %v4224_v13, %v4230_v14 }
0x11d7   :  { %4232 = vst.msk [vmem:[#allocation44] sm:$0x3] %vm4225_vm0, %v4231_v15 }
0x11d8   :  { %6188 = shalt.err (!%p6185_p2)
}
0x11d9   :  { %s6189_s21 = scalar_lea.hbm %s6563_s29, 32 }
0x11da   :  { %p6190_p3 = scmp.ne.s32.totalorder %s6563_s29, %s6189_s21  ;;  %p6193_p4 = scmp.lt.u32.totalorder %s6189_s21, %s6563_s29 }
0x11dc   :  { %p6195_p5 = pnand %p6193_p4, %p6190_p3 }
0x11de   :  { %6198 = shalt.err (!%p6195_p5)
}
0x11df   :  { %4242 = dma.vmem_to_hbm [thread:$0]  %s4240_s10, 32, %s6563_s29, [#allocation5]  }
0x11e0   :  { %6227 = dma.done.wait [#allocation5], 32  }
0x11e1   :  { %6228 = vsyncadd [#allocation5], 4294967264 }
0x11e2   :  { %4246 = vsyncpa [#allocation4], 1 }
0x11e3   :  { %4247 = vsyncpa [#allocation7], 1 }
0x11e4   :  { %4248 = vsyncpa [#allocation10], 1 }
0x11e5   :  { %4249 = vsyncpa [#allocation13], 1 }
0x11e6   :  { %4250 = vsyncpa [#allocation16], 1 }
0x11e7   :  { %4251 = vsyncpa [#allocation19], 1 }
0x11e8   :  { %4252 = vsyncpa [#allocation22], 1 }
0x11e9   :  { %4253 = vsyncpa [#allocation25], 1 }
0x11ea   :  { %4254 = vsyncpa [#allocation28], 1 }
0x11eb   :  { %4255 = vsyncpa [#allocation31], 1 }
0x11ec   :  { %4256 = vsyncpa [#allocation34], 1 }
0x11ed   :  { %4257 = vsyncpa [#allocation37], 1 }
0x11ee   :  { %4258 = vsyncpa [#allocation40], 1 }
0x11ef   :  { %4259 = vsyncpa [#allocation43], 1 }
0x11f0   :  { %4260 = vsyncpa [#allocation5], 1 }

</bundles_post_ra>
